<compile_context>
chip_gen: v6e
topology: v6e:2x2x1
jax: 0.10.0
libtpu: 0.0.40
codegen_flags: <defaults>
</compile_context>

<pallas_src>
import functools

import jax
import jax.numpy as jnp
from jax import lax
from jax.experimental import pallas as pl
from jax.experimental.pallas import tpu as pltpu

_LANES = 128


# ----------------------------- Pallas kernel ------------------------------ #
def _eq_conv_kernel(x_ref, w_ref, b_ref, o_ref, acc_ref, *, kH, kW, th, W,
                    neg_slope):
    """One halo'd row tile of: LeakyReLU(conv2d(x, w) + b).

    x_ref  : (1, th+kH-1, W+kW-1, Cin)  bf16 halo'd input tile       (VMEM)
    w_ref  : (kH, kW, Cin, Cout_pad)    bf16 weight (eq-lr folded)   (VMEM)
    b_ref  : (1, Cout_pad)              f32 bias (eq-lr folded)      (VMEM)
    o_ref  : (1, th*W, Cout_pad)        f32 output tile              (VMEM)
    acc_ref: (th*W, Cout_pad)           f32 accumulator scratch      (VMEM)
    """
    acc_ref[...] = jnp.zeros_like(acc_ref)
    for kh in range(kH):
        for kw in range(kW):
            # Shifted tap of the halo'd tile, flattened to GEMM rows.
            tap = x_ref[0, kh:kh + th, kw:kw + W, :].reshape(th * W, -1)
            acc_ref[...] += jnp.dot(tap, w_ref[kh, kw],
                                    preferred_element_type=jnp.float32)
    out = acc_ref[...] + b_ref[...]
    out = jnp.where(out >= 0, out, neg_slope * out)
    o_ref[...] = out.reshape(1, *o_ref.shape[1:]).astype(o_ref.dtype)


# ---------------------------- tile-size picker ----------------------------- #
def _pick_tile_rows(N, H, W, Cin, Cout_pad, kH, kW):
    """Rows per tile: large enough to amortize grid overhead, fits VMEM."""
    Wp = W + kW - 1
    th = max(1, min(H, max(8, 1024 // max(W, 1))))

    def vmem_bytes(t):
        in_b = 2 * (t + kH - 1) * Wp * Cin * 2        # bf16, double-buffered
        out_b = 2 * t * W * Cout_pad * 4              # f32, double-buffered
        w_b = 2 * kH * kW * Cin * Cout_pad * 2        # bf16 weight
        acc_b = t * W * Cout_pad * 4                  # f32 accumulator scratch
        return in_b + out_b + w_b + acc_b

    budget = 24 * 1024 * 1024                         # safe on v7x's 64 MiB VMEM
    while th > 1 and vmem_bytes(th) > budget:
        th = max(1, th // 2)
    # Keep >= 2 grid steps so both v7x TensorCores are used.
    while th > 1 and N * (-(-H // th)) < 2:
        th = max(1, th // 2)
    return th


# ------------------------------ JAX wrapper -------------------------------- #
def equalized_conv2d(x_nchw, weight_oihw, bias, *, lr_multiplier=1.0,
                     stride=1, dilation=1, groups=1, neg_slope=0.01):
    """Forward of EqualizedConv2d (padding='same', LeakyReLU activation)."""
    # TODO(synk): stride/dilation/groups != 1 and non-LeakyReLU act_fn paths
    # of the PyTorch module are not implemented in this kernel.
    assert stride == 1 and dilation == 1 and groups == 1

    N, Cin, H, W = x_nchw.shape
    Cout, Cin_w, kH, kW = weight_oihw.shape
    assert Cin == Cin_w

    w_scale = lr_multiplier / float((Cin * kH * kW) ** 0.5)
    b_scale = float(lr_multiplier)

    # Lane-dense output channels.
    Cout_pad = -(-Cout // _LANES) * _LANES

    # Fold equalized-LR scales into the (small) parameters once; pad channels.
    w_hwio = jnp.transpose(weight_oihw, (2, 3, 1, 0)).astype(jnp.float32)
    w_hwio = (w_hwio * w_scale).astype(jnp.bfloat16)          # (kH,kW,Cin,Cout)
    w_hwio = jnp.pad(w_hwio, ((0, 0), (0, 0), (0, 0), (0, Cout_pad - Cout)))
    b2d = (bias.astype(jnp.float32) * b_scale).reshape(1, Cout)
    b2d = jnp.pad(b2d, ((0, 0), (0, Cout_pad - Cout)))

    # NCHW -> NHWC, bf16, torch-style 'same' zero padding.
    x = jnp.transpose(x_nchw, (0, 2, 3, 1)).astype(jnp.bfloat16)
    ph_lo = (kH - 1) // 2
    ph_hi = (kH - 1) - ph_lo
    pw_lo = (kW - 1) // 2
    pw_hi = (kW - 1) - pw_lo

    th = _pick_tile_rows(N, H, W, Cin, Cout_pad, kH, kW)
    nH = -(-H // th)
    H_pad = nH * th
    Wp = W + kW - 1

    xp = jnp.pad(x, ((0, 0), (ph_lo, ph_hi + (H_pad - H)), (pw_lo, pw_hi),
                     (0, 0)))                        # (N, H_pad+kH-1, Wp, Cin)

    # Halo'd row tiles: only the kH-1 halo rows are duplicated.
    tiles = jnp.stack(
        [xp[:, t * th:t * th + th + kH - 1] for t in range(nH)], axis=1)
    tiles = tiles.reshape(N * nH, th + kH - 1, Wp, Cin)
    T = N * nH

    kernel = functools.partial(_eq_conv_kernel, kH=kH, kW=kW, th=th, W=W,
                               neg_slope=float(neg_slope))

    flops = 2 * N * H * W * Cin * kH * kW * Cout
    bytes_accessed = int(tiles.size * 2 + w_hwio.size * 2 + b2d.size * 4
                         + T * th * W * Cout_pad * 4)

    out_flat = pl.pallas_call(
        kernel,
        out_shape=jax.ShapeDtypeStruct((T, th * W, Cout_pad), jnp.float32),
        grid=(T,),
        in_specs=[
            pl.BlockSpec((1, th + kH - 1, Wp, Cin), lambda i: (i, 0, 0, 0)),
            pl.BlockSpec((kH, kW, Cin, Cout_pad), lambda i: (0, 0, 0, 0)),
            pl.BlockSpec((1, Cout_pad), lambda i: (0, 0)),
        ],
        out_specs=pl.BlockSpec((1, th * W, Cout_pad), lambda i: (i, 0, 0)),
        scratch_shapes=[pltpu.VMEM((th * W, Cout_pad), jnp.float32)],
        compiler_params=pltpu.CompilerParams(
            dimension_semantics=("parallel",),
            vmem_limit_bytes=48 * 1024 * 1024),
        cost_estimate=pl.CostEstimate(flops=flops, transcendentals=0,
                                      bytes_accessed=bytes_accessed),
    )(tiles, w_hwio, b2d)

    # (T, th*W, Cout_pad) -> (N, H_pad, W, Cout_pad) -> crop -> NCHW.
    out = out_flat.reshape(N, H_pad, W, Cout_pad)[:, :H, :, :Cout]
    return jnp.transpose(out, (0, 3, 1, 2)).astype(x_nchw.dtype)


# ------------------------------ reference ---------------------------------- #
def _reference(x_nchw, weight_oihw, bias, *, lr_multiplier=1.0,
               neg_slope=0.01):
    Cout, Cin, kH, kW = weight_oihw.shape
    w_scale = lr_multiplier / float((Cin * kH * kW) ** 0.5)
    W_eff = weight_oihw * w_scale
    b_eff = bias * lr_multiplier
    tot_h, tot_w = kH - 1, kW - 1
    pad = [(tot_h // 2, tot_h - tot_h // 2), (tot_w // 2, tot_w - tot_w // 2)]
    y = lax.conv_general_dilated(
        x_nchw, W_eff, window_strides=(1, 1), padding=pad,
        dimension_numbers=("NCHW", "OIHW", "NCHW"))
    y = y + b_eff.reshape(1, Cout, 1, 1)
    return jnp.where(y >= 0, y, neg_slope * y)


# --------------------------------- main ------------------------------------ #
if __name__ == "__main__":
    key = jax.random.PRNGKey(0)
    k_x, k_w = jax.random.split(key)

    # Small shapes consistent with the PyTorch module.
    N, Cin, H, W = 2, 4, 16, 16
    Cout, kH, kW = 8, 3, 3
    lr_multiplier = 1.0
    bias_init = 0.0

    x = jax.random.normal(k_x, (N, Cin, H, W), dtype=jnp.float32)
    weight = jax.random.normal(k_w, (Cout, Cin, kH, kW),
                               dtype=jnp.float32) / lr_multiplier
    bias = jnp.full((Cout,), bias_init, dtype=jnp.float32)

    out = equalized_conv2d(x, weight, bias, lr_multiplier=lr_multiplier)
    out = jax.block_until_ready(out)

    ref = jax.block_until_ready(
        _reference(x, weight, bias, lr_multiplier=lr_multiplier))

    assert out.shape == (N, Cout, H, W)
    # bf16 operands (f32 accumulation) -> loosened tolerance vs f32 reference.
    assert jnp.allclose(out, ref, rtol=3e-2, atol=3e-2), \
        f"max abs err = {jnp.max(jnp.abs(out - ref))}"

    print("KERNEL_OK")
</pallas_src>

<mosaic_0001>
module attributes {stable_mosaic.version = 11 : i64} {
  func.func @_eq_conv_kernel(%arg0: i32, %arg1: memref<1x18x18x4xbf16, #tpu.memory_space<vmem>>, %arg2: memref<3x3x4x128xbf16, #tpu.memory_space<vmem>>, %arg3: memref<1x128xf32, #tpu.memory_space<vmem>>, %arg4: memref<1x256x128xf32, #tpu.memory_space<vmem>>, %arg5: memref<256x128xf32, #tpu.memory_space<vmem>>) attributes {dimension_semantics = [#tpu.dimension_semantics<parallel>], iteration_bounds = array<i64: 2>, scalar_prefetch = 0 : i64, scratch_operands = 1 : i64, tpu.core_type = #tpu.core_type<tc>, window_params = [{transform_indices = @transform_0, window_bounds = array<i64: 1, 18, 18, 4>}, {pipeline_mode = #tpu.pipeline_mode<synchronous>, transform_indices = @transform_1, window_bounds = array<i64: 3, 3, 4, 128>}, {pipeline_mode = #tpu.pipeline_mode<synchronous>, transform_indices = @transform_2, window_bounds = array<i64: 1, 128>}, {transform_indices = @transform_3, window_bounds = array<i64: 1, 256, 128>}]} {
    %cst = arith.constant 0.000000e+00 : f32
    %0 = vector.broadcast %cst : f32 to vector<256x128xf32>
    %c0 = arith.constant 0 : index
    %c0_0 = arith.constant 0 : index
    %1 = vector.load %arg5[%c0, %c0_0] : memref<256x128xf32, #tpu.memory_space<vmem>>, vector<256x128xf32>
    tpu.vector_store %arg5[%c0, %c0_0], %0 {strides = array<i32>} : memref<256x128xf32, #tpu.memory_space<vmem>>, vector<256x128xf32>,
    %c0_1 = arith.constant 0 : index
    %c0_2 = arith.constant 0 : index
    %c0_3 = arith.constant 0 : index
    %c0_4 = arith.constant 0 : index
    %2 = vector.load %arg1[%c0_1, %c0_2, %c0_3, %c0_4] : memref<1x18x18x4xbf16, #tpu.memory_space<vmem>>, vector<1x16x16x4xbf16>
    %3 = vector.shape_cast %2 : vector<1x16x16x4xbf16> to vector<16x16x4xbf16>
    %4 = vector.shape_cast %3 : vector<16x16x4xbf16> to vector<256x4xbf16>
    %c0_5 = arith.constant 0 : index
    %c0_6 = arith.constant 0 : index
    %5 = vector.load %arg5[%c0_5, %c0_6] : memref<256x128xf32, #tpu.memory_space<vmem>>, vector<256x128xf32>
    %c0_7 = arith.constant 0 : index
    %c0_8 = arith.constant 0 : index
    %c0_9 = arith.constant 0 : index
    %c0_10 = arith.constant 0 : index
    %6 = vector.load %arg2[%c0_7, %c0_8, %c0_9, %c0_10] : memref<3x3x4x128xbf16, #tpu.memory_space<vmem>>, vector<1x1x4x128xbf16>
    %7 = vector.shape_cast %6 : vector<1x1x4x128xbf16> to vector<4x128xbf16>
    %cst_11 = arith.constant dense<0.000000e+00> : vector<256x128xf32>
    %8 = tpu.matmul %4, %7, %cst_11 {dimension_numbers = #tpu.dot_dimension_numbers<[1], [0], [0], [1], [0, 0, 1, 1], [], []>} : vector<256x4xbf16>, vector<4x128xbf16>, vector<256x128xf32> -> vector<256x128xf32>
    %9 = arith.addf %5, %8 : vector<256x128xf32>
    %c0_12 = arith.constant 0 : index
    %c0_13 = arith.constant 0 : index
    %10 = vector.load %arg5[%c0_12, %c0_13] : memref<256x128xf32, #tpu.memory_space<vmem>>, vector<256x128xf32>
    tpu.vector_store %arg5[%c0_12, %c0_13], %9 {strides = array<i32>} : memref<256x128xf32, #tpu.memory_space<vmem>>, vector<256x128xf32>,
    %c0_14 = arith.constant 0 : index
    %c0_15 = arith.constant 0 : index
    %c1 = arith.constant 1 : index
    %c0_16 = arith.constant 0 : index
    %11 = vector.load %arg1[%c0_14, %c0_15, %c1, %c0_16] : memref<1x18x18x4xbf16, #tpu.memory_space<vmem>>, vector<1x16x16x4xbf16>
    %12 = vector.shape_cast %11 : vector<1x16x16x4xbf16> to vector<16x16x4xbf16>
    %13 = vector.shape_cast %12 : vector<16x16x4xbf16> to vector<256x4xbf16>
    %c0_17 = arith.constant 0 : index
    %c0_18 = arith.constant 0 : index
    %14 = vector.load %arg5[%c0_17, %c0_18] : memref<256x128xf32, #tpu.memory_space<vmem>>, vector<256x128xf32>
    %c0_19 = arith.constant 0 : index
    %c1_20 = arith.constant 1 : index
    %c0_21 = arith.constant 0 : index
    %c0_22 = arith.constant 0 : index
    %15 = vector.load %arg2[%c0_19, %c1_20, %c0_21, %c0_22] : memref<3x3x4x128xbf16, #tpu.memory_space<vmem>>, vector<1x1x4x128xbf16>
    %16 = vector.shape_cast %15 : vector<1x1x4x128xbf16> to vector<4x128xbf16>
    %cst_23 = arith.constant dense<0.000000e+00> : vector<256x128xf32>
    %17 = tpu.matmul %13, %16, %cst_23 {dimension_numbers = #tpu.dot_dimension_numbers<[1], [0], [0], [1], [0, 0, 1, 1], [], []>} : vector<256x4xbf16>, vector<4x128xbf16>, vector<256x128xf32> -> vector<256x128xf32>
    %18 = arith.addf %14, %17 : vector<256x128xf32>
    %c0_24 = arith.constant 0 : index
    %c0_25 = arith.constant 0 : index
    %19 = vector.load %arg5[%c0_24, %c0_25] : memref<256x128xf32, #tpu.memory_space<vmem>>, vector<256x128xf32>
    tpu.vector_store %arg5[%c0_24, %c0_25], %18 {strides = array<i32>} : memref<256x128xf32, #tpu.memory_space<vmem>>, vector<256x128xf32>,
    %c0_26 = arith.constant 0 : index
    %c0_27 = arith.constant 0 : index
    %c2 = arith.constant 2 : index
    %c0_28 = arith.constant 0 : index
    %20 = vector.load %arg1[%c0_26, %c0_27, %c2, %c0_28] : memref<1x18x18x4xbf16, #tpu.memory_space<vmem>>, vector<1x16x16x4xbf16>
    %21 = vector.shape_cast %20 : vector<1x16x16x4xbf16> to vector<16x16x4xbf16>
    %22 = vector.shape_cast %21 : vector<16x16x4xbf16> to vector<256x4xbf16>
    %c0_29 = arith.constant 0 : index
    %c0_30 = arith.constant 0 : index
    %23 = vector.load %arg5[%c0_29, %c0_30] : memref<256x128xf32, #tpu.memory_space<vmem>>, vector<256x128xf32>
    %c0_31 = arith.constant 0 : index
    %c2_32 = arith.constant 2 : index
    %c0_33 = arith.constant 0 : index
    %c0_34 = arith.constant 0 : index
    %24 = vector.load %arg2[%c0_31, %c2_32, %c0_33, %c0_34] : memref<3x3x4x128xbf16, #tpu.memory_space<vmem>>, vector<1x1x4x128xbf16>
    %25 = vector.shape_cast %24 : vector<1x1x4x128xbf16> to vector<4x128xbf16>
    %cst_35 = arith.constant dense<0.000000e+00> : vector<256x128xf32>
    %26 = tpu.matmul %22, %25, %cst_35 {dimension_numbers = #tpu.dot_dimension_numbers<[1], [0], [0], [1], [0, 0, 1, 1], [], []>} : vector<256x4xbf16>, vector<4x128xbf16>, vector<256x128xf32> -> vector<256x128xf32>
    %27 = arith.addf %23, %26 : vector<256x128xf32>
    %c0_36 = arith.constant 0 : index
    %c0_37 = arith.constant 0 : index
    %28 = vector.load %arg5[%c0_36, %c0_37] : memref<256x128xf32, #tpu.memory_space<vmem>>, vector<256x128xf32>
    tpu.vector_store %arg5[%c0_36, %c0_37], %27 {strides = array<i32>} : memref<256x128xf32, #tpu.memory_space<vmem>>, vector<256x128xf32>,
    %c0_38 = arith.constant 0 : index
    %c1_39 = arith.constant 1 : index
    %c0_40 = arith.constant 0 : index
    %c0_41 = arith.constant 0 : index
    %29 = vector.load %arg1[%c0_38, %c1_39, %c0_40, %c0_41] : memref<1x18x18x4xbf16, #tpu.memory_space<vmem>>, vector<1x16x16x4xbf16>
    %30 = vector.shape_cast %29 : vector<1x16x16x4xbf16> to vector<16x16x4xbf16>
    %31 = vector.shape_cast %30 : vector<16x16x4xbf16> to vector<256x4xbf16>
    %c0_42 = arith.constant 0 : index
    %c0_43 = arith.constant 0 : index
    %32 = vector.load %arg5[%c0_42, %c0_43] : memref<256x128xf32, #tpu.memory_space<vmem>>, vector<256x128xf32>
    %c1_44 = arith.constant 1 : index
    %c0_45 = arith.constant 0 : index
    %c0_46 = arith.constant 0 : index
    %c0_47 = arith.constant 0 : index
    %33 = vector.load %arg2[%c1_44, %c0_45, %c0_46, %c0_47] : memref<3x3x4x128xbf16, #tpu.memory_space<vmem>>, vector<1x1x4x128xbf16>
    %34 = vector.shape_cast %33 : vector<1x1x4x128xbf16> to vector<4x128xbf16>
    %cst_48 = arith.constant dense<0.000000e+00> : vector<256x128xf32>
    %35 = tpu.matmul %31, %34, %cst_48 {dimension_numbers = #tpu.dot_dimension_numbers<[1], [0], [0], [1], [0, 0, 1, 1], [], []>} : vector<256x4xbf16>, vector<4x128xbf16>, vector<256x128xf32> -> vector<256x128xf32>
    %36 = arith.addf %32, %35 : vector<256x128xf32>
    %c0_49 = arith.constant 0 : index
    %c0_50 = arith.constant 0 : index
    %37 = vector.load %arg5[%c0_49, %c0_50] : memref<256x128xf32, #tpu.memory_space<vmem>>, vector<256x128xf32>
    tpu.vector_store %arg5[%c0_49, %c0_50], %36 {strides = array<i32>} : memref<256x128xf32, #tpu.memory_space<vmem>>, vector<256x128xf32>,
    %c0_51 = arith.constant 0 : index
    %c1_52 = arith.constant 1 : index
    %c1_53 = arith.constant 1 : index
    %c0_54 = arith.constant 0 : index
    %38 = vector.load %arg1[%c0_51, %c1_52, %c1_53, %c0_54] : memref<1x18x18x4xbf16, #tpu.memory_space<vmem>>, vector<1x16x16x4xbf16>
    %39 = vector.shape_cast %38 : vector<1x16x16x4xbf16> to vector<16x16x4xbf16>
    %40 = vector.shape_cast %39 : vector<16x16x4xbf16> to vector<256x4xbf16>
    %c0_55 = arith.constant 0 : index
    %c0_56 = arith.constant 0 : index
    %41 = vector.load %arg5[%c0_55, %c0_56] : memref<256x128xf32, #tpu.memory_space<vmem>>, vector<256x128xf32>
    %c1_57 = arith.constant 1 : index
    %c1_58 = arith.constant 1 : index
    %c0_59 = arith.constant 0 : index
    %c0_60 = arith.constant 0 : index
    %42 = vector.load %arg2[%c1_57, %c1_58, %c0_59, %c0_60] : memref<3x3x4x128xbf16, #tpu.memory_space<vmem>>, vector<1x1x4x128xbf16>
    %43 = vector.shape_cast %42 : vector<1x1x4x128xbf16> to vector<4x128xbf16>
    %cst_61 = arith.constant dense<0.000000e+00> : vector<256x128xf32>
    %44 = tpu.matmul %40, %43, %cst_61 {dimension_numbers = #tpu.dot_dimension_numbers<[1], [0], [0], [1], [0, 0, 1, 1], [], []>} : vector<256x4xbf16>, vector<4x128xbf16>, vector<256x128xf32> -> vector<256x128xf32>
    %45 = arith.addf %41, %44 : vector<256x128xf32>
    %c0_62 = arith.constant 0 : index
    %c0_63 = arith.constant 0 : index
    %46 = vector.load %arg5[%c0_62, %c0_63] : memref<256x128xf32, #tpu.memory_space<vmem>>, vector<256x128xf32>
    tpu.vector_store %arg5[%c0_62, %c0_63], %45 {strides = array<i32>} : memref<256x128xf32, #tpu.memory_space<vmem>>, vector<256x128xf32>,
    %c0_64 = arith.constant 0 : index
    %c1_65 = arith.constant 1 : index
    %c2_66 = arith.constant 2 : index
    %c0_67 = arith.constant 0 : index
    %47 = vector.load %arg1[%c0_64, %c1_65, %c2_66, %c0_67] : memref<1x18x18x4xbf16, #tpu.memory_space<vmem>>, vector<1x16x16x4xbf16>
    %48 = vector.shape_cast %47 : vector<1x16x16x4xbf16> to vector<16x16x4xbf16>
    %49 = vector.shape_cast %48 : vector<16x16x4xbf16> to vector<256x4xbf16>
    %c0_68 = arith.constant 0 : index
    %c0_69 = arith.constant 0 : index
    %50 = vector.load %arg5[%c0_68, %c0_69] : memref<256x128xf32, #tpu.memory_space<vmem>>, vector<256x128xf32>
    %c1_70 = arith.constant 1 : index
    %c2_71 = arith.constant 2 : index
    %c0_72 = arith.constant 0 : index
    %c0_73 = arith.constant 0 : index
    %51 = vector.load %arg2[%c1_70, %c2_71, %c0_72, %c0_73] : memref<3x3x4x128xbf16, #tpu.memory_space<vmem>>, vector<1x1x4x128xbf16>
    %52 = vector.shape_cast %51 : vector<1x1x4x128xbf16> to vector<4x128xbf16>
    %cst_74 = arith.constant dense<0.000000e+00> : vector<256x128xf32>
    %53 = tpu.matmul %49, %52, %cst_74 {dimension_numbers = #tpu.dot_dimension_numbers<[1], [0], [0], [1], [0, 0, 1, 1], [], []>} : vector<256x4xbf16>, vector<4x128xbf16>, vector<256x128xf32> -> vector<256x128xf32>
    %54 = arith.addf %50, %53 : vector<256x128xf32>
    %c0_75 = arith.constant 0 : index
    %c0_76 = arith.constant 0 : index
    %55 = vector.load %arg5[%c0_75, %c0_76] : memref<256x128xf32, #tpu.memory_space<vmem>>, vector<256x128xf32>
    tpu.vector_store %arg5[%c0_75, %c0_76], %54 {strides = array<i32>} : memref<256x128xf32, #tpu.memory_space<vmem>>, vector<256x128xf32>,
    %c0_77 = arith.constant 0 : index
    %c2_78 = arith.constant 2 : index
    %c0_79 = arith.constant 0 : index
    %c0_80 = arith.constant 0 : index
    %56 = vector.load %arg1[%c0_77, %c2_78, %c0_79, %c0_80] : memref<1x18x18x4xbf16, #tpu.memory_space<vmem>>, vector<1x16x16x4xbf16>
    %57 = vector.shape_cast %56 : vector<1x16x16x4xbf16> to vector<16x16x4xbf16>
    %58 = vector.shape_cast %57 : vector<16x16x4xbf16> to vector<256x4xbf16>
    %c0_81 = arith.constant 0 : index
    %c0_82 = arith.constant 0 : index
    %59 = vector.load %arg5[%c0_81, %c0_82] : memref<256x128xf32, #tpu.memory_space<vmem>>, vector<256x128xf32>
    %c2_83 = arith.constant 2 : index
    %c0_84 = arith.constant 0 : index
    %c0_85 = arith.constant 0 : index
    %c0_86 = arith.constant 0 : index
    %60 = vector.load %arg2[%c2_83, %c0_84, %c0_85, %c0_86] : memref<3x3x4x128xbf16, #tpu.memory_space<vmem>>, vector<1x1x4x128xbf16>
    %61 = vector.shape_cast %60 : vector<1x1x4x128xbf16> to vector<4x128xbf16>
    %cst_87 = arith.constant dense<0.000000e+00> : vector<256x128xf32>
    %62 = tpu.matmul %58, %61, %cst_87 {dimension_numbers = #tpu.dot_dimension_numbers<[1], [0], [0], [1], [0, 0, 1, 1], [], []>} : vector<256x4xbf16>, vector<4x128xbf16>, vector<256x128xf32> -> vector<256x128xf32>
    %63 = arith.addf %59, %62 : vector<256x128xf32>
    %c0_88 = arith.constant 0 : index
    %c0_89 = arith.constant 0 : index
    %64 = vector.load %arg5[%c0_88, %c0_89] : memref<256x128xf32, #tpu.memory_space<vmem>>, vector<256x128xf32>
    tpu.vector_store %arg5[%c0_88, %c0_89], %63 {strides = array<i32>} : memref<256x128xf32, #tpu.memory_space<vmem>>, vector<256x128xf32>,
    %c0_90 = arith.constant 0 : index
    %c2_91 = arith.constant 2 : index
    %c1_92 = arith.constant 1 : index
    %c0_93 = arith.constant 0 : index
    %65 = vector.load %arg1[%c0_90, %c2_91, %c1_92, %c0_93] : memref<1x18x18x4xbf16, #tpu.memory_space<vmem>>, vector<1x16x16x4xbf16>
    %66 = vector.shape_cast %65 : vector<1x16x16x4xbf16> to vector<16x16x4xbf16>
    %67 = vector.shape_cast %66 : vector<16x16x4xbf16> to vector<256x4xbf16>
    %c0_94 = arith.constant 0 : index
    %c0_95 = arith.constant 0 : index
    %68 = vector.load %arg5[%c0_94, %c0_95] : memref<256x128xf32, #tpu.memory_space<vmem>>, vector<256x128xf32>
    %c2_96 = arith.constant 2 : index
    %c1_97 = arith.constant 1 : index
    %c0_98 = arith.constant 0 : index
    %c0_99 = arith.constant 0 : index
    %69 = vector.load %arg2[%c2_96, %c1_97, %c0_98, %c0_99] : memref<3x3x4x128xbf16, #tpu.memory_space<vmem>>, vector<1x1x4x128xbf16>
    %70 = vector.shape_cast %69 : vector<1x1x4x128xbf16> to vector<4x128xbf16>
    %cst_100 = arith.constant dense<0.000000e+00> : vector<256x128xf32>
    %71 = tpu.matmul %67, %70, %cst_100 {dimension_numbers = #tpu.dot_dimension_numbers<[1], [0], [0], [1], [0, 0, 1, 1], [], []>} : vector<256x4xbf16>, vector<4x128xbf16>, vector<256x128xf32> -> vector<256x128xf32>
    %72 = arith.addf %68, %71 : vector<256x128xf32>
    %c0_101 = arith.constant 0 : index
    %c0_102 = arith.constant 0 : index
    %73 = vector.load %arg5[%c0_101, %c0_102] : memref<256x128xf32, #tpu.memory_space<vmem>>, vector<256x128xf32>
    tpu.vector_store %arg5[%c0_101, %c0_102], %72 {strides = array<i32>} : memref<256x128xf32, #tpu.memory_space<vmem>>, vector<256x128xf32>,
    %c0_103 = arith.constant 0 : index
    %c2_104 = arith.constant 2 : index
    %c2_105 = arith.constant 2 : index
    %c0_106 = arith.constant 0 : index
    %74 = vector.load %arg1[%c0_103, %c2_104, %c2_105, %c0_106] : memref<1x18x18x4xbf16, #tpu.memory_space<vmem>>, vector<1x16x16x4xbf16>
    %75 = vector.shape_cast %74 : vector<1x16x16x4xbf16> to vector<16x16x4xbf16>
    %76 = vector.shape_cast %75 : vector<16x16x4xbf16> to vector<256x4xbf16>
    %c0_107 = arith.constant 0 : index
    %c0_108 = arith.constant 0 : index
    %77 = vector.load %arg5[%c0_107, %c0_108] : memref<256x128xf32, #tpu.memory_space<vmem>>, vector<256x128xf32>
    %c2_109 = arith.constant 2 : index
    %c2_110 = arith.constant 2 : index
    %c0_111 = arith.constant 0 : index
    %c0_112 = arith.constant 0 : index
    %78 = vector.load %arg2[%c2_109, %c2_110, %c0_111, %c0_112] : memref<3x3x4x128xbf16, #tpu.memory_space<vmem>>, vector<1x1x4x128xbf16>
    %79 = vector.shape_cast %78 : vector<1x1x4x128xbf16> to vector<4x128xbf16>
    %cst_113 = arith.constant dense<0.000000e+00> : vector<256x128xf32>
    %80 = tpu.matmul %76, %79, %cst_113 {dimension_numbers = #tpu.dot_dimension_numbers<[1], [0], [0], [1], [0, 0, 1, 1], [], []>} : vector<256x4xbf16>, vector<4x128xbf16>, vector<256x128xf32> -> vector<256x128xf32>
    %81 = arith.addf %77, %80 : vector<256x128xf32>
    %c0_114 = arith.constant 0 : index
    %c0_115 = arith.constant 0 : index
    %82 = vector.load %arg5[%c0_114, %c0_115] : memref<256x128xf32, #tpu.memory_space<vmem>>, vector<256x128xf32>
    tpu.vector_store %arg5[%c0_114, %c0_115], %81 {strides = array<i32>} : memref<256x128xf32, #tpu.memory_space<vmem>>, vector<256x128xf32>,
    %c0_116 = arith.constant 0 : index
    %c0_117 = arith.constant 0 : index
    %83 = vector.load %arg5[%c0_116, %c0_117] : memref<256x128xf32, #tpu.memory_space<vmem>>, vector<256x128xf32>
    %c0_118 = arith.constant 0 : index
    %c0_119 = arith.constant 0 : index
    %84 = vector.load %arg3[%c0_118, %c0_119] : memref<1x128xf32, #tpu.memory_space<vmem>>, vector<1x128xf32>
    %85 = vector.broadcast %84 : vector<1x128xf32> to vector<256x128xf32>
    %86 = arith.addf %83, %85 : vector<256x128xf32>
    %cst_120 = arith.constant 0.000000e+00 : f32
    %87 = vector.broadcast %cst_120 : f32 to vector<256x128xf32>
    %88 = arith.cmpf oge, %86, %87 : vector<256x128xf32>
    %cst_121 = arith.constant 0.00999999977 : f32
    %89 = vector.broadcast %cst_121 : f32 to vector<256x128xf32>
    %90 = arith.mulf %89, %86 : vector<256x128xf32>
    %91 = arith.select %88, %86, %90 : vector<256x128xi1>, vector<256x128xf32>
    %92 = vector.shape_cast %91 : vector<256x128xf32> to vector<1x256x128xf32>
    %c0_122 = arith.constant 0 : index
    %c0_123 = arith.constant 0 : index
    %c0_124 = arith.constant 0 : index
    %93 = vector.load %arg4[%c0_122, %c0_123, %c0_124] : memref<1x256x128xf32, #tpu.memory_space<vmem>>, vector<1x256x128xf32>
    tpu.vector_store %arg4[%c0_122, %c0_123, %c0_124], %92 {strides = array<i32>} : memref<1x256x128xf32, #tpu.memory_space<vmem>>, vector<1x256x128xf32>,
    return
  }
  func.func @transform_0(%arg0: i32) -> (i32, i32, i32, i32) {
    %c0_i32 = arith.constant 0 : i32
    %c0_i32_0 = arith.constant 0 : i32
    %c0_i32_1 = arith.constant 0 : i32
    %c0_i32_2 = arith.constant 0 : i32
    return %arg0, %c0_i32, %c0_i32_0, %c0_i32_1 : i32, i32, i32, i32
  }
  func.func @transform_1(%arg0: i32) -> (i32, i32, i32, i32) {
    %c0_i32 = arith.constant 0 : i32
    %c0_i32_0 = arith.constant 0 : i32
    %c0_i32_1 = arith.constant 0 : i32
    %c0_i32_2 = arith.constant 0 : i32
    %c0_i32_3 = arith.constant 0 : i32
    return %c0_i32, %c0_i32_0, %c0_i32_1, %c0_i32_2 : i32, i32, i32, i32
  }
  func.func @transform_2(%arg0: i32) -> (i32, i32) {
    %c0_i32 = arith.constant 0 : i32
    %c0_i32_0 = arith.constant 0 : i32
    %c0_i32_1 = arith.constant 0 : i32
    return %c0_i32, %c0_i32_0 : i32, i32
  }
  func.func @transform_3(%arg0: i32) -> (i32, i32, i32) {
    %c0_i32 = arith.constant 0 : i32
    %c0_i32_0 = arith.constant 0 : i32
    %c0_i32_1 = arith.constant 0 : i32
    return %arg0, %c0_i32, %c0_i32_0 : i32, i32, i32
  }
}

</mosaic_0001>

<bundles_post_ra>
// kernel: tpu_custom_call.1
= control target key start
LH: loop header
LB: loop body
LE: loop exit
PB: predicated region body
PF: predicated region fallthrough
CT: control target
= control target key end

     0   :  { %8 = vsyncpa [#allocation4], 0  ;;  %s8881_s0 = inlined_call_operand.vmem [shape: bf16[2,18,18,4], index: 0, kind: input, shape index: {}]   ;;  %s8882_s1 = inlined_call_operand.vmem [shape: bf16[3,3,4,128], index: 1, kind: input, shape index: {}]   ;;  %s8883_s2 = inlined_call_operand.vmem [shape: f32[1,128], index: 2, kind: input, shape index: {}]   ;;  %s8884_s3 = inlined_call_operand.hbm [shape: f32[2,256,128], index: 3, kind: output, shape index: {}]  }
   0x1   :  { %10 = vsyncpa [#allocation4 + $0x1], 0  ;;  %s7079_s12 = smov 0   ;;  %s7081_s13 = smov 0  }
   0x2   :  { %s7083_s14 = smov 0   ;;  %s7085_s15 = smov 0  }
   0x3 LB: > { %s7100_s16 = sadd.s32 4294967295, %s7054_s15   ;;  %s5820_s17 = sadd.s32 4294967294, %s7054_s15   ;;  %s7054_s15 = sphi %s7085_s15, %s8994_s15   ;;  %s7050_s14 = sphi %s7083_s14, %s8993_s14   ;;  %s7046_s13 = sphi %s7081_s13, %s8992_s13   ;;  %s7042_s12 = sphi %s7079_s12, %s8991_s12  }
   0x4   : > { %s7104_s18 = sadd.s32 1, %s7054_s15   ;;  %s91_s19 = sadd.s32 1, %s7050_s14 }
   0x5   : > { %s88_s20 = ssub.s32 %s7054_s15, %s7104_s18  ;;  %p101_p0 = scmp.ne.s32.totalorder %s7050_s14, %s7046_s13 }
   0x6   : > { %p89_p1 = scmp.eq.s32.totalorder %s88_s20, 0  ;;  %p102_p2 = scmp.eq.s32.totalorder %s7100_s16, 1 }
   0x7   : > { %p107_p3 = scmp.ne.s32.totalorder %s7046_s13, %s7042_s12  ;;  %p108_p4 = scmp.eq.s32.totalorder %s5820_s17, 1 }
   0x8   : > { %s7115_s21 = scalar_select %p89_p1, %s7050_s14, %s91_s19  }
   0x9   : > { %p7117_p5 = por %p102_p2, %p101_p0  ;;  %p7121_p6 = por %p108_p4, %p107_p3 }
   0xa   : > { %p5823_p7 = scmp.ge.s32.totalorder %s7054_s15, 1  ;;  %p140_p8 = scmp.lt.s32.totalorder %s7054_s15, 3 }
   0xc   : > { %p141_p9 = pnand %p5823_p7, %p140_p8 }
   0xe   : > { %144 = sbr.rel (%p141_p9) target bundleno = 572 (0x23c), region = 32 }
  0x13   : > { %v266_v0 = vld [vmem:[%s8882_s1] sm:$0x3]  ;;  %vm396_vm0 = vcmask 1041408   ;;  %p164_p10 = scmp.lt.s32.totalorder %s7100_s16, 1  ;;  %v5858_v2 = vld [vmem:[%s8882_s1 + $0x2] sm:$0x3] }
  0x14   : > { %6895 = vmatprep.subr.msk.bf16.mxu1 %vm396_vm0, %v266_v0  ;;  %6894 = vmatprep.subr.msk.bf16.mxu0 %vm396_vm0, %v266_v0  ;;  %v398_v1 = vsel %vm396_vm0, %v266_v0, 0  ;;  %v5907_v3 = vld [vmem:[%s8882_s1 + $0x4] sm:$0x3]  ;;  %vm347_vm1 = vcmask 31744   ;;  %v5972_v8 = vld [vmem:[%s8882_s1 + $0x6] sm:$0x3] }
  0x15   : > { %6893 = vmatpush3.bf16.msra.mxu1 %v398_v1  ;;  %6587 = vmatpush3.bf16.msra.mxu0 %v398_v1  ;;  %s165_s30 = scalar_select %p164_p10, %s7100_s16, 1  ;;  %v1760_v7 = vsel %vm396_vm0, %v5907_v3, 0  ;;  %v1191_v10 = vsel %vm396_vm0, %v5858_v2, 0  ;;  %v6053_v11 = vld [vmem:[%s8882_s1 + $0x8] sm:$0x3]  ;;  %vm1514_vm2 = vcmask 1042432  }
  0x16   : > { %6896 = vmatprep.subr.msk.bf16.mxu1 %vm396_vm0, %v5858_v2  ;;  %6897 = vmatprep.subr.msk.bf16.mxu0 %vm396_vm0, %v5907_v3  ;;  %vm673_vm3 = vsmask.f32 3328  ;;  %vm674_vm4 = vsmask.f32 7440  ;;  %v7178_v18 = vld [vmem:[%s8882_s1 + $0xa] sm:$0x3] }
  0x17   : > { %s6904_s4 = smul.u32 216, %s165_s30  ;;  %vm1515_vm5 = vcmask 1046532   ;;  %v7183_v19 = vsel %vm396_vm0, %v5972_v8, 0  ;;  %v7188_v21 = vsel %vm396_vm0, %v6053_v11, 0  ;;  %v7194_v24 = vsel %vm396_vm0, %v7178_v18, 0  ;;  %vm7219_vm7 = vmor %vm673_vm3, %vm674_vm4  ;;  %s161_s29 = sand.u32 1, %s7046_s13  }
  0x18   : > { %vm7205_vm6 = vmor %vm1514_vm2, %vm1515_vm5  ;;  %s5824_s5 = sshll.u32 %s161_s29, 8  ;;  %s7056_s19 = smov [#allocation3]  }
  0x19   : > { %s7146_s7 = scalar_lea.vmem %s8881_s0, %s6904_s4  ;;  %s8717_s6 = scalar_lea.vmem [#allocation3], %s5824_s5 }
  0x1a   : > { %v6946_v4 = vld [vmem:[%s7146_s7] sm:$0xff]   ;;  %v6948_v6 = vld [vmem:[%s7146_s7 + $0xc] sm:$0xff]   ;;  %v6950_v12 = vld [vmem:[%s7146_s7 + $0x18] sm:$0xff]   ;;  %s5758_s8 = sshll.u32 %s8717_s6, 4  ;;  %s6998_s20 = sshll.u32 %s7056_s19, 4  ;;  %s8836_s8 = int_to_ptr.vmem [resolvable:$true] %s5758_s8  ;;  %s6999_s20 = int_to_ptr.vmem [resolvable:$false] %s6998_s20 }
  0x1b   : > { %v6947_v5 = vld [vmem:[%s7146_s7 + $0x60] sm:$0xff]   ;;  %6588 = vmatprep.mubr.msk.bf16.mxu0 %vm347_vm1, %v6946_v4  ;;  %v6949_v9 = vld [vmem:[%s7146_s7 + $0x6c] sm:$0xff]   ;;  %v6951_v13 = vld [vmem:[%s7146_s7 + $0x78] sm:$0xff]   ;;  %s6994_s17 = scalar_lea.vmem %s8836_s8, 4096  ;;  %s7000_s24 = scalar_lea.vmem %s6999_s20, 8192 }
  0x1c   : > { %6604 = vmatprep.mubr.msk.bf16.mxu1 %vm347_vm1, %v6947_v5  ;;  %6589 = vmatmul.mubr.msk.bf16.vlgmr.msra.gmra.mxu0 %vm347_vm1, %v6948_v6  ;;  %v6952_v14 = vld [vmem:[%s7146_s7 + $0x24] sm:$0xff]   ;;  %v6954_v16 = vld [vmem:[%s7146_s7 + $0x30] sm:$0xff]   ;;  %v6956_v20 = vld [vmem:[%s7146_s7 + $0x3c] sm:$0xff]   ;;  %p6995_p11 = scmp.ne.s32.totalorder %s8836_s8, %s6994_s17  ;;  %p7001_p0 = scmp.lt.s32.totalorder %s8836_s8, %s6999_s20 }
  0x1d   : > { %6605 = vmatmul.mubr.msk.bf16.vlgmr.msra.gmra.mxu1 %vm347_vm1, %v6949_v9  ;;  %6655 = vmatpush3.bf16.msra.mxu0 %v1760_v7  ;;  %v6953_v15 = vld [vmem:[%s7146_s7 + $0x84] sm:$0xff]   ;;  %v6955_v17 = vld [vmem:[%s7146_s7 + $0x90] sm:$0xff]   ;;  %v6957_v22 = vld [vmem:[%s7146_s7 + $0x9c] sm:$0xff]   ;;  %p7002_p1 = scmp.lt.s32.totalorder %s7000_s24, %s6994_s17 }
  0x1e   : > { %6621 = vmatpush3.bf16.msra.mxu1 %v1191_v10  ;;  %6592 = vmatprep.mubr.msk.bf16.mxu0 %vm347_vm1, %v6950_v12  ;;  %v6958_v23 = vld [vmem:[%s7146_s7 + $0x48] sm:$0xff]   ;;  %v625_v26 = vld [vmem:[%s7146_s7] sm:$0xf]  ;;  %v626_v27 = vld [vmem:[%s7146_s7 + $0x4] sm:$0xf]  ;;  %p6996_p12 = pnand %p6995_p11, %p7117_p5 }
  0x1f   : > { %6608 = vmatprep.mubr.msk.bf16.mxu1 %vm347_vm1, %v6951_v13  ;;  %6898 = vmatprep.subr.msk.bf16.mxu1 %vm396_vm0, %v5972_v8  ;;  %v6959_v25 = vld [vmem:[%s7146_s7 + $0xa8] sm:$0xff]   ;;  %v677_v29 = vshrl.u32 %v625_v26, 16  ;;  %v680_v30 = vshll.u32 %v625_v26, 16  ;;  %v686_v31 = vshll.u32 %v626_v27, 16  ;;  %v690_v32 = vshrl.u32 %v626_v27, 16  ;;  %v6960_v2 = vld [vmem:[%s7146_s7 + $0x54] sm:$0xff]   ;;  %p7003_p2 = por %p7002_p1, %p7001_p0 }
  0x20   : > { %6899 = vmatprep.subr.msk.bf16.mxu0 %vm396_vm0, %v6053_v11  ;;  %v627_v28 = vld [vmem:[%s7146_s7 + $0x8] sm:$0x1]  ;;  %v1418_v33 = vld [vmem:[%s7146_s7] sm:$0xe]  ;;  %v1419_v35 = vld [vmem:[%s7146_s7 + $0x4] sm:$0xf]  ;;  %p6997_p13 = pneg %p6996_p12 }
  0x21   : > { %v696_v34 = vshll.u32 %v627_v28, 16  ;;  %v1420_v36 = vld [vmem:[%s7146_s7 + $0x8] sm:$0x1]  ;;  %v5891_v37 = vrot.slane %v1418_v33, 9  ;;  %v679_v38 = vrot.slane %v677_v29, 4  ;;  %v682_v39 = vrot.slane %v680_v30, 5 }
  0x22   : > { %v688_v40 = vrot.slane %v686_v31, 5  ;;  %v692_v41 = vrot.slane %v690_v32, 4  ;;  %v628_v43 = vld [vmem:[%s7146_s7 + $0xc] sm:$0xf]  ;;  %v1519_v45 = vrot.slane %v1419_v35, 5  ;;  %v1522_v46 = vrot.slane %v1420_v36, 5  ;;  %p7004_p3 = pnand %p7003_p2, %p6997_p13 }
  0x23   : > { %v698_v44 = vrot.slane %v696_v34, 5  ;;  %v629_v47 = vld [vmem:[%s7146_s7 + $0x10] sm:$0xf]  ;;  %v701_v48 = vshrl.u32 %v628_v43, 16  ;;  %v683_v49 = vor.u32 %v682_v39, %v679_v38  ;;  %v630_v51 = vld [vmem:[%s7146_s7 + $0x14] sm:$0x1] }
  0x24   : > { %6593 = vmatmul.mubr.msk.bf16.gmra.mxu0 %vm347_vm1, %v6952_v14  ;;  %v693_v50 = vor.u32 %v692_v41, %v688_v40  ;;  %v704_v52 = vshll.u32 %v628_v43, 16  ;;  %v710_v53 = vshll.u32 %v629_v47, 16  ;;  %v1421_v54 = vld [vmem:[%s7146_s7 + $0xc] sm:$0xe]  ;;  %v1520_v56 = vsel %vm7205_vm6, %v5891_v37, %v1519_v45  ;;  %v1422_v60 = vld [vmem:[%s7146_s7 + $0x10] sm:$0xf] }
  0x25   : > { %6609 = vmatmul.mubr.msk.bf16.gmra.mxu1 %vm347_vm1, %v6953_v15  ;;  %6596 = vmatprep.mubr.msk.bf16.mxu0 %vm347_vm1, %v6954_v16  ;;  %v1521_v57 = vrot.slane %v1519_v45, 4  ;;  %v703_v58 = vrot.slane %v701_v48, 4  ;;  %v714_v59 = vshrl.u32 %v629_v47, 16  ;;  %v684_v61 = vrot.slane %v683_v49, 4  ;;  %v1423_v1 = vld [vmem:[%s7146_s7 + $0x14] sm:$0x1] }
  0x26   : > { %6612 = vmatprep.mubr.msk.bf16.mxu1 %vm347_vm1, %v6955_v17  ;;  %v694_v62 = vrot.slane %v693_v50, 4  ;;  %v706_v63 = vrot.slane %v704_v52, 5  ;;  %v712_v0 = vrot.slane %v710_v53, 5  ;;  %v720_v5 = vshll.u32 %v630_v51, 16  ;;  %v631_v7 = vld [vmem:[%s7146_s7 + $0x18] sm:$0xf] }
  0x27   : > { %v1523_v3 = vsel %vm7205_vm6, %v1521_v57, %v1522_v46  ;;  %v716_v4 = vrot.slane %v714_v59, 4  ;;  %v5892_v6 = vrot.slane %v1421_v54, 9  ;;  %v6961_v8 = vld [vmem:[%s7146_s7 + $0xb4] sm:$0xff]   ;;  %v689_v9 = vsel %vm7219_vm7, %v684_v61, %v688_v40  ;;  %v632_v13 = vld [vmem:[%s7146_s7 + $0x1c] sm:$0xf] }
  0x28   : > { %v699_v10 = vsel %vm7219_vm7, %v694_v62, %v698_v44  ;;  %v5908_v11 = vcombine.low %v1520_v56, %v1523_v3  ;;  %v707_v12 = vor.u32 %v706_v63, %v703_v58  ;;  %v722_v16 = vrot.slane %v720_v5, 5  ;;  %v1424_v27 = vld [vmem:[%s7146_s7 + $0x18] sm:$0xe]  ;;  %v1425_v32 = vld [vmem:[%s7146_s7 + $0x1c] sm:$0xf] }
  0x29   : > { %v5859_v14 = vcombine.low %v689_v9, %v699_v10  ;;  %v717_v15 = vor.u32 %v716_v4, %v712_v0  ;;  %v1526_v17 = vrot.slane %v1422_v60, 5  ;;  %v728_v26 = vshll.u32 %v631_v7, 16  ;;  %v1426_v37 = vld [vmem:[%s7146_s7 + $0x20] sm:$0x1]  ;;  %v634_v43 = vld [vmem:[%s7146_s7 + $0x24] sm:$0xf] }
  0x2a   : > { %v734_v31 = vshll.u32 %v632_v13, 16  ;;  %v738_v36 = vshrl.u32 %v632_v13, 16  ;;  %v635_v48 = vld [vmem:[%s7146_s7 + $0x28] sm:$0xf]  ;;  %v5893_v50 = vrot.slane %v1424_v27, 9  ;;  %v1533_v51 = vrot.slane %v1425_v32, 5 }
  0x2b   : > { %v718_v28 = vrot.slane %v717_v15, 4  ;;  %v1527_v29 = vsel %vm7205_vm6, %v5892_v6, %v1526_v17  ;;  %v1528_v30 = vrot.slane %v1526_v17, 4  ;;  %v730_v35 = vrot.slane %v728_v26, 5  ;;  %v636_v53 = vld [vmem:[%s7146_s7 + $0x2c] sm:$0x1] }
  0x2c   : > { %6597 = vmatmul.mubr.msk.bf16.gmra.mxu0 %vm347_vm1, %v6956_v20  ;;  %v633_v20 = vld [vmem:[%s7146_s7 + $0x20] sm:$0x1]  ;;  %v736_v40 = vrot.slane %v734_v31, 5  ;;  %v740_v47 = vrot.slane %v738_v36, 4  ;;  %v1536_v52 = vrot.slane %v1426_v37, 5  ;;  %v749_v57 = vshrl.u32 %v634_v43, 16 }
  0x2d   : > { %6613 = vmatmul.mubr.msk.bf16.gmra.mxu1 %vm347_vm1, %v6957_v22  ;;  %6600 = vmatprep.mubr.msk.bf16.mxu0 %vm347_vm1, %v6958_v23  ;;  %v708_v22 = vrot.slane %v707_v12, 4  ;;  %v1529_v23 = vrot.slane %v1423_v1, 5  ;;  %v723_v38 = vsel %vm7219_vm7, %v718_v28, %v722_v16  ;;  %v744_v41 = vshll.u32 %v633_v20, 16  ;;  %v1427_v59 = vld [vmem:[%s7146_s7 + $0x24] sm:$0xe] }
  0x2e   : > { %6616 = vmatprep.mubr.msk.bf16.mxu1 %vm347_vm1, %v6959_v25  ;;  %v725_v25 = vshrl.u32 %v631_v7, 16  ;;  %v741_v56 = vor.u32 %v740_v47, %v736_v40  ;;  %v752_v58 = vshll.u32 %v634_v43, 16  ;;  %v1534_v60 = vsel %vm7205_vm6, %v5893_v50, %v1533_v51  ;;  %v1429_v5 = vld [vmem:[%s7146_s7 + $0x2c] sm:$0x1]  ;;  %v637_v10 = vld [vmem:[%s7146_s7 + $0x30] sm:$0xf] }
  0x2f   : > { %v713_v33 = vsel %vm7219_vm7, %v708_v22, %v712_v0  ;;  %v1530_v39 = vsel %vm7205_vm6, %v1528_v30, %v1529_v23  ;;  %v746_v49 = vrot.slane %v744_v41, 5  ;;  %v1535_v61 = vrot.slane %v1533_v51, 4  ;;  %v1428_v0 = vld [vmem:[%s7146_s7 + $0x28] sm:$0xf]  ;;  %v638_v15 = vld [vmem:[%s7146_s7 + $0x34] sm:$0xf] }
  0x30   : > { %v727_v34 = vrot.slane %v725_v25, 4  ;;  %v5860_v44 = vcombine.low %v713_v33, %v723_v38  ;;  %v5909_v45 = vcombine.low %v1527_v29, %v1530_v39  ;;  %v758_v62 = vshll.u32 %v635_v48, 16  ;;  %v639_v23 = vld [vmem:[%s7146_s7 + $0x38] sm:$0x1]  ;;  %v1430_v28 = vld [vmem:[%s7146_s7 + $0x30] sm:$0xe] }
  0x31   : > { %v762_v63 = vshrl.u32 %v635_v48, 16  ;;  %v751_v3 = vrot.slane %v749_v57, 4  ;;  %v754_v4 = vrot.slane %v752_v58, 5  ;;  %v1537_v6 = vsel %vm7205_vm6, %v1535_v61, %v1536_v52  ;;  %v1431_v32 = vld [vmem:[%s7146_s7 + $0x34] sm:$0xf] }
  0x32   : > { %v731_v46 = vor.u32 %v730_v35, %v727_v34  ;;  %v760_v7 = vrot.slane %v758_v62, 5  ;;  %v768_v9 = vshll.u32 %v636_v53, 16  ;;  %v5910_v12 = vcombine.low %v1534_v60, %v1537_v6  ;;  %v1432_v37 = vld [vmem:[%s7146_s7 + $0x38] sm:$0x1]  ;;  %v640_v41 = vld [vmem:[%s7146_s7 + $0x3c] sm:$0xf] }
  0x33   : > { %v755_v13 = vor.u32 %v754_v4, %v751_v3  ;;  %v1540_v22 = vrot.slane %v1428_v0, 5  ;;  %v773_v26 = vshrl.u32 %v637_v10, 16  ;;  %v776_v27 = vshll.u32 %v637_v10, 16  ;;  %v641_v47 = vld [vmem:[%s7146_s7 + $0x40] sm:$0xf] }
  0x34   : > { %6601 = vmatmul.mubr.msk.bf16.gmra.mxu0 %vm347_vm1, %v6960_v2  ;;  %v732_v54 = vrot.slane %v731_v46, 4  ;;  %v742_v2 = vrot.slane %v741_v56, 4  ;;  %v770_v20 = vrot.slane %v768_v9, 5  ;;  %v782_v31 = vshll.u32 %v638_v15, 16  ;;  %v642_v52 = vld [vmem:[%s7146_s7 + $0x44] sm:$0x1] }
  0x35   : > { %6617 = vmatmul.mubr.msk.bf16.gmra.mxu1 %vm347_vm1, %v6961_v8  ;;  %6656 = vmatprep.mubr.msk.bf16.mxu0 %vm347_vm1, %v5908_v11  ;;  %v764_v8 = vrot.slane %v762_v63, 4  ;;  %v756_v25 = vrot.slane %v755_v13, 4  ;;  %v1542_v30 = vrot.slane %v1540_v22, 4  ;;  %v775_v34 = vrot.slane %v773_v26, 4  ;;  %v1433_v58 = vld [vmem:[%s7146_s7 + $0x3c] sm:$0xe] }
  0x36   : > { %6622 = vmatprep.mubr.msk.bf16.mxu1 %vm347_vm1, %v5859_v14  ;;  %v737_v1 = vsel %vm7219_vm7, %v732_v54, %v736_v40  ;;  %v747_v11 = vsel %vm7219_vm7, %v742_v2, %v746_v49  ;;  %v5894_v14 = vrot.slane %v1427_v59, 9  ;;  %v778_v35 = vrot.slane %v776_v27, 5  ;;  %v1434_v63 = vld [vmem:[%s7146_s7 + $0x40] sm:$0xf]  ;;  %v1435_v4 = vld [vmem:[%s7146_s7 + $0x44] sm:$0x1] }
  0x37   : > { %v5861_v16 = vcombine.low %v737_v1, %v747_v11  ;;  %v765_v17 = vor.u32 %v764_v8, %v760_v7  ;;  %v761_v33 = vsel %vm7219_vm7, %v756_v25, %v760_v7  ;;  %v786_v36 = vshrl.u32 %v638_v15, 16  ;;  %v643_v9 = vld [vmem:[%s7146_s7 + $0x48] sm:$0xf] }
  0x38   : > { %v1541_v29 = vsel %vm7205_vm6, %v5894_v14, %v1540_v22  ;;  %v784_v39 = vrot.slane %v782_v31, 5  ;;  %v792_v40 = vshll.u32 %v639_v23, 16  ;;  %v5895_v49 = vrot.slane %v1430_v28, 9  ;;  %v644_v14 = vld [vmem:[%s7146_s7 + $0x4c] sm:$0xf] }
  0x39   : > { %v788_v46 = vrot.slane %v786_v36, 4  ;;  %v1547_v50 = vrot.slane %v1431_v32, 5  ;;  %v1550_v51 = vrot.slane %v1432_v37, 5  ;;  %v797_v56 = vshrl.u32 %v640_v41, 16  ;;  %v645_v22 = vld [vmem:[%s7146_s7 + $0x50] sm:$0x1] }
  0x3a   : > { %v794_v48 = vrot.slane %v792_v40, 5  ;;  %v800_v57 = vshll.u32 %v640_v41, 16  ;;  %v806_v61 = vshll.u32 %v641_v47, 16  ;;  %v810_v62 = vshrl.u32 %v641_v47, 16  ;;  %v1436_v27 = vld [vmem:[%s7146_s7 + $0x48] sm:$0xe] }
  0x3b   : > { %v789_v54 = vor.u32 %v788_v46, %v784_v39  ;;  %v1548_v59 = vsel %vm7205_vm6, %v5895_v49, %v1547_v50  ;;  %v1549_v60 = vrot.slane %v1547_v50, 4  ;;  %v799_v2 = vrot.slane %v797_v56, 4  ;;  %v1437_v31 = vld [vmem:[%s7146_s7 + $0x4c] sm:$0xf]  ;;  %v1438_v36 = vld [vmem:[%s7146_s7 + $0x50] sm:$0x1] }
  0x3c   : > { %6657 = vmatmul.mubr.msk.bf16.vlgmr.msra.gmra.mxu0 %vm347_vm1, %v5909_v45  ;;  %v779_v45 = vor.u32 %v778_v35, %v775_v34  ;;  %v802_v3 = vrot.slane %v800_v57, 5  ;;  %v808_v6 = vrot.slane %v806_v61, 5  ;;  %v812_v7 = vrot.slane %v810_v62, 4  ;;  %v646_v40 = vld [vmem:[%s7146_s7 + $0x54] sm:$0xf] }
  0x3d   : > { %6623 = vmatmul.mubr.msk.bf16.vlgmr.msra.gmra.mxu1 %vm347_vm1, %v5860_v44  ;;  %6723 = vmatpush3.bf16.msra.mxu0 %v7188_v21  ;;  %v1543_v21 = vrot.slane %v1429_v5, 5  ;;  %v790_v1 = vrot.slane %v789_v54, 4  ;;  %v1551_v5 = vsel %vm7205_vm6, %v1549_v60, %v1550_v51  ;;  %v816_v8 = vshll.u32 %v642_v52, 16  ;;  %v647_v46 = vld [vmem:[%s7146_s7 + $0x58] sm:$0xf] }
  0x3e   : > { %6689 = vmatpush3.bf16.msra.mxu1 %v7183_v19  ;;  %6660 = vmatprep.mubr.msk.bf16.mxu0 %vm347_vm1, %v5910_v12  ;;  %v766_v19 = vrot.slane %v765_v17, 4  ;;  %v780_v53 = vrot.slane %v779_v45, 4  ;;  %v5912_v11 = vcombine.low %v1548_v59, %v1551_v5  ;;  %v803_v12 = vor.u32 %v802_v3, %v799_v2  ;;  %v648_v51 = vld [vmem:[%s7146_s7 + $0x5c] sm:$0x1]  ;;  %v1439_v57 = vld [vmem:[%s7146_s7 + $0x54] sm:$0xe] }
  0x3f   : > { %6900 = vmatprep.subr.msk.bf16.mxu1 %vm396_vm0, %v7178_v18  ;;  %6626 = vmatprep.mubr.msk.bf16.mxu1 %vm347_vm1, %v5861_v16  ;;  %v1544_v38 = vsel %vm7205_vm6, %v1542_v30, %v1543_v21  ;;  %v795_v10 = vsel %vm7219_vm7, %v790_v1, %v794_v48  ;;  %v5896_v13 = vrot.slane %v1433_v58, 9  ;;  %v813_v16 = vor.u32 %v812_v7, %v808_v6  ;;  %v1440_v62 = vld [vmem:[%s7146_s7 + $0x58] sm:$0xf]  ;;  %v1441_v3 = vld [vmem:[%s7146_s7 + $0x5c] sm:$0x1] }
  0x40   : > { %v771_v18 = vsel %vm7219_vm7, %v766_v19, %v770_v20  ;;  %v5911_v44 = vcombine.low %v1541_v29, %v1544_v38  ;;  %v785_v0 = vsel %vm7219_vm7, %v780_v53, %v784_v39  ;;  %v818_v17 = vrot.slane %v816_v8, 5  ;;  %v649_v8 = vld [vmem:[%s7146_s7 + $0x60] sm:$0xf] }
  0x41   : > { %v5862_v43 = vcombine.low %v761_v33, %v771_v18  ;;  %v5863_v15 = vcombine.low %v785_v0, %v795_v10  ;;  %v1554_v20 = vrot.slane %v1434_v63, 5  ;;  %v804_v23 = vrot.slane %v803_v12, 4 }
  0x42   : > { %v1557_v25 = vrot.slane %v1435_v4, 5  ;;  %v821_v21 = vshrl.u32 %v643_v9, 16  ;;  %v824_v26 = vshll.u32 %v643_v9, 16  ;;  %v814_v28 = vrot.slane %v813_v16, 4 }
  0x43   : > { %v1555_v19 = vsel %vm7205_vm6, %v5896_v13, %v1554_v20  ;;  %v1556_v29 = vrot.slane %v1554_v20, 4  ;;  %v830_v30 = vshll.u32 %v644_v14, 16  ;;  %v809_v32 = vsel %vm7219_vm7, %v804_v23, %v808_v6  ;;  %v650_v13 = vld [vmem:[%s7146_s7 + $0x64] sm:$0xf]  ;;  %v651_v20 = vld [vmem:[%s7146_s7 + $0x68] sm:$0x1] }
  0x44   : > { %6661 = vmatmul.mubr.msk.bf16.gmra.mxu0 %vm347_vm1, %v5911_v44  ;;  %v823_v33 = vrot.slane %v821_v21, 4  ;;  %v826_v34 = vrot.slane %v824_v26, 5  ;;  %v834_v35 = vshrl.u32 %v644_v14, 16  ;;  %v819_v37 = vsel %vm7219_vm7, %v814_v28, %v818_v17  ;;  %v1442_v26 = vld [vmem:[%s7146_s7 + $0x60] sm:$0xe] }
  0x45   : > { %6627 = vmatmul.mubr.msk.bf16.gmra.mxu1 %vm347_vm1, %v5862_v43  ;;  %6664 = vmatprep.mubr.msk.bf16.mxu0 %vm347_vm1, %v5912_v11  ;;  %v1558_v18 = vsel %vm7205_vm6, %v1556_v29, %v1557_v25  ;;  %v832_v38 = vrot.slane %v830_v30, 5  ;;  %v840_v39 = vshll.u32 %v645_v22, 16  ;;  %v5864_v41 = vcombine.low %v809_v32, %v819_v37  ;;  %v1443_v30 = vld [vmem:[%s7146_s7 + $0x64] sm:$0xf] }
  0x46   : > { %6630 = vmatprep.mubr.msk.bf16.mxu1 %vm347_vm1, %v5863_v15  ;;  %v5913_v43 = vcombine.low %v1555_v19, %v1558_v18  ;;  %v827_v44 = vor.u32 %v826_v34, %v823_v33  ;;  %v836_v45 = vrot.slane %v834_v35, 4  ;;  %v5897_v48 = vrot.slane %v1436_v27, 9  ;;  %v1444_v35 = vld [vmem:[%s7146_s7 + $0x68] sm:$0x1] }
  0x47   : > { %v842_v47 = vrot.slane %v840_v39, 5  ;;  %v1561_v49 = vrot.slane %v1437_v31, 5  ;;  %v1564_v50 = vrot.slane %v1438_v36, 5  ;;  %v845_v54 = vshrl.u32 %v646_v40, 16  ;;  %v652_v39 = vld [vmem:[%s7146_s7 + $0x6c] sm:$0xf] }
  0x48   : > { %v828_v52 = vrot.slane %v827_v44, 4  ;;  %v837_v53 = vor.u32 %v836_v45, %v832_v38  ;;  %v848_v56 = vshll.u32 %v646_v40, 16  ;;  %v854_v60 = vshll.u32 %v647_v46, 16  ;;  %v653_v45 = vld [vmem:[%s7146_s7 + $0x70] sm:$0xf] }
  0x49   : > { %v1562_v58 = vsel %vm7205_vm6, %v5897_v48, %v1561_v49  ;;  %v1563_v59 = vrot.slane %v1561_v49, 4  ;;  %v858_v61 = vshrl.u32 %v647_v46, 16  ;;  %v847_v1 = vrot.slane %v845_v54, 4 }
  0x4a   : > { %v833_v63 = vsel %vm7219_vm7, %v828_v52, %v832_v38  ;;  %v838_v0 = vrot.slane %v837_v53, 4  ;;  %v850_v2 = vrot.slane %v848_v56, 5  ;;  %v856_v5 = vrot.slane %v854_v60, 5  ;;  %v1445_v56 = vld [vmem:[%s7146_s7 + $0x6c] sm:$0xe] }
  0x4b   : > { %v1565_v4 = vsel %vm7205_vm6, %v1563_v59, %v1564_v50  ;;  %v860_v6 = vrot.slane %v858_v61, 4  ;;  %v864_v7 = vshll.u32 %v648_v51, 16  ;;  %v5898_v12 = vrot.slane %v1439_v57, 9  ;;  %v654_v50 = vld [vmem:[%s7146_s7 + $0x74] sm:$0x1] }
  0x4c   : > { %6665 = vmatmul.mubr.msk.bf16.gmra.mxu0 %vm347_vm1, %v5913_v43  ;;  %v843_v9 = vsel %vm7219_vm7, %v838_v0, %v842_v47  ;;  %v5914_v10 = vcombine.low %v1562_v58, %v1565_v4  ;;  %v851_v11 = vor.u32 %v850_v2, %v847_v1  ;;  %v1568_v17 = vrot.slane %v1440_v62, 5  ;;  %v1446_v61 = vld [vmem:[%s7146_s7 + $0x70] sm:$0xf]  ;;  %v1447_v2 = vld [vmem:[%s7146_s7 + $0x74] sm:$0x1] }
  0x4d   : > { %6631 = vmatmul.mubr.msk.bf16.gmra.mxu1 %vm347_vm1, %v5864_v41  ;;  %v5865_v14 = vcombine.low %v833_v63, %v843_v9  ;;  %v861_v15 = vor.u32 %v860_v6, %v856_v5  ;;  %v866_v16 = vrot.slane %v864_v7, 5  ;;  %v1571_v23 = vrot.slane %v1441_v3, 5  ;;  %v655_v7 = vld [vmem:[%s7146_s7 + $0x78] sm:$0xf] }
  0x4e   : > { %6668 = vmatprep.mubr.msk.bf16.mxu0 %vm347_vm1, %v5914_v10  ;;  %v852_v22 = vrot.slane %v851_v11, 4  ;;  %v869_v25 = vshrl.u32 %v649_v8, 16  ;;  %v872_v21 = vshll.u32 %v649_v8, 16  ;;  %v1569_v28 = vsel %vm7205_vm6, %v5898_v12, %v1568_v17  ;;  %v656_v12 = vld [vmem:[%s7146_s7 + $0x7c] sm:$0xf] }
  0x4f   : > { %6634 = vmatprep.mubr.msk.bf16.mxu1 %vm347_vm1, %v5865_v14  ;;  %v862_v27 = vrot.slane %v861_v15, 4  ;;  %v1570_v19 = vrot.slane %v1568_v17, 4  ;;  %v878_v29 = vshll.u32 %v650_v13, 16  ;;  %v882_v34 = vshrl.u32 %v650_v13, 16  ;;  %v657_v17 = vld [vmem:[%s7146_s7 + $0x80] sm:$0x1] }
  0x50   : > { %v857_v31 = vsel %vm7219_vm7, %v852_v22, %v856_v5  ;;  %v871_v32 = vrot.slane %v869_v25, 4  ;;  %v874_v33 = vrot.slane %v872_v21, 5  ;;  %v888_v38 = vshll.u32 %v651_v20, 16  ;;  %v1448_v21 = vld [vmem:[%s7146_s7 + $0x78] sm:$0xe] }
  0x51   : > { %v867_v36 = vsel %vm7219_vm7, %v862_v27, %v866_v16  ;;  %v1572_v37 = vsel %vm7205_vm6, %v1570_v19, %v1571_v23  ;;  %v880_v18 = vrot.slane %v878_v29, 5  ;;  %v884_v44 = vrot.slane %v882_v34, 4  ;;  %v1449_v29 = vld [vmem:[%s7146_s7 + $0x7c] sm:$0xf]  ;;  %v1450_v34 = vld [vmem:[%s7146_s7 + $0x80] sm:$0x1] }
  0x52   : > { %v5866_v40 = vcombine.low %v857_v31, %v867_v36  ;;  %v5915_v41 = vcombine.low %v1569_v28, %v1572_v37  ;;  %v875_v43 = vor.u32 %v874_v33, %v871_v32  ;;  %v890_v46 = vrot.slane %v888_v38, 5  ;;  %v658_v38 = vld [vmem:[%s7146_s7 + $0x84] sm:$0xf] }
  0x53   : > { %v5899_v47 = vrot.slane %v1442_v26, 9  ;;  %v1575_v48 = vrot.slane %v1443_v30, 5  ;;  %v1578_v49 = vrot.slane %v1444_v35, 5  ;;  %v885_v52 = vor.u32 %v884_v44, %v880_v18  ;;  %v659_v44 = vld [vmem:[%s7146_s7 + $0x88] sm:$0xf] }
  0x54   : > { %6669 = vmatmul.mubr.msk.bf16.gmra.mxu0 %vm347_vm1, %v5915_v41  ;;  %v876_v51 = vrot.slane %v875_v43, 4  ;;  %v893_v53 = vshrl.u32 %v652_v39, 16  ;;  %v896_v54 = vshll.u32 %v652_v39, 16  ;;  %v902_v59 = vshll.u32 %v653_v45, 16 }
  0x55   : > { %6635 = vmatmul.mubr.msk.bf16.gmra.mxu1 %vm347_vm1, %v5866_v40  ;;  %v1576_v57 = vsel %vm7205_vm6, %v5899_v47, %v1575_v48  ;;  %v1577_v58 = vrot.slane %v1575_v48, 4  ;;  %v906_v60 = vshrl.u32 %v653_v45, 16  ;;  %v886_v63 = vrot.slane %v885_v52, 4 }
  0x56   : > { %v881_v62 = vsel %vm7219_vm7, %v876_v51, %v880_v18  ;;  %v895_v0 = vrot.slane %v893_v53, 4  ;;  %v898_v1 = vrot.slane %v896_v54, 5  ;;  %v904_v4 = vrot.slane %v902_v59, 5  ;;  %v1451_v54 = vld [vmem:[%s7146_s7 + $0x84] sm:$0xe] }
  0x57   : > { %v1579_v3 = vsel %vm7205_vm6, %v1577_v58, %v1578_v49  ;;  %v908_v5 = vrot.slane %v906_v60, 4  ;;  %v912_v6 = vshll.u32 %v654_v50, 16  ;;  %v891_v8 = vsel %vm7219_vm7, %v886_v63, %v890_v46  ;;  %v660_v49 = vld [vmem:[%s7146_s7 + $0x8c] sm:$0x1]  ;;  %v1452_v60 = vld [vmem:[%s7146_s7 + $0x88] sm:$0xf] }
  0x58   : > { %v5916_v9 = vcombine.low %v1576_v57, %v1579_v3  ;;  %v899_v10 = vor.u32 %v898_v1, %v895_v0  ;;  %v5900_v11 = vrot.slane %v1445_v56, 9  ;;  %v5867_v13 = vcombine.low %v881_v62, %v891_v8  ;;  %v1453_v1 = vld [vmem:[%s7146_s7 + $0x8c] sm:$0x1] }
  0x59   : > { %v909_v14 = vor.u32 %v908_v5, %v904_v4  ;;  %v914_v15 = vrot.slane %v912_v6, 5  ;;  %v1582_v16 = vrot.slane %v1446_v61, 5  ;;  %v1585_v22 = vrot.slane %v1447_v2, 5  ;;  %v661_v6 = vld [vmem:[%s7146_s7 + $0x90] sm:$0xf] }
  0x5a   : > { %6672 = vmatprep.mubr.msk.bf16.mxu0 %vm347_vm1, %v5916_v9  ;;  %v900_v20 = vrot.slane %v899_v10, 4  ;;  %v917_v23 = vshrl.u32 %v655_v7, 16  ;;  %v920_v25 = vshll.u32 %v655_v7, 16  ;;  %6638 = vmatprep.mubr.msk.bf16.mxu1 %vm347_vm1, %v5867_v13  ;;  %v926_v19 = vshll.u32 %v656_v12, 16 }
  0x5b   : > { %v910_v26 = vrot.slane %v909_v14, 4  ;;  %v1583_v27 = vsel %vm7205_vm6, %v5900_v11, %v1582_v16  ;;  %v1584_v28 = vrot.slane %v1582_v16, 4  ;;  %v930_v33 = vshrl.u32 %v656_v12, 16  ;;  %v662_v11 = vld [vmem:[%s7146_s7 + $0x94] sm:$0xf] }
  0x5c   : > { %v905_v30 = vsel %vm7219_vm7, %v900_v20, %v904_v4  ;;  %v919_v31 = vrot.slane %v917_v23, 4  ;;  %v922_v32 = vrot.slane %v920_v25, 5  ;;  %v928_v37 = vrot.slane %v926_v19, 5  ;;  %v663_v12 = vld [vmem:[%s7146_s7 + $0x98] sm:$0x1] }
  0x5d   : > { %v915_v35 = vsel %vm7219_vm7, %v910_v26, %v914_v15  ;;  %v1586_v36 = vsel %vm7205_vm6, %v1584_v28, %v1585_v22  ;;  %v936_v18 = vshll.u32 %v657_v17, 16  ;;  %v932_v43 = vrot.slane %v930_v33, 4  ;;  %v1454_v25 = vld [vmem:[%s7146_s7 + $0x90] sm:$0xe] }
  0x5e   : > { %v5868_v39 = vcombine.low %v905_v30, %v915_v35  ;;  %v5917_v40 = vcombine.low %v1583_v27, %v1586_v36  ;;  %v923_v41 = vor.u32 %v922_v32, %v919_v31  ;;  %v5901_v46 = vrot.slane %v1448_v21, 9  ;;  %v1455_v21 = vld [vmem:[%s7146_s7 + $0x94] sm:$0xf] }
  0x5f   : > { %v938_v45 = vrot.slane %v936_v18, 5  ;;  %v1589_v47 = vrot.slane %v1449_v29, 5  ;;  %v1592_v48 = vrot.slane %v1450_v34, 5  ;;  %v933_v51 = vor.u32 %v932_v43, %v928_v37  ;;  %v1456_v29 = vld [vmem:[%s7146_s7 + $0x98] sm:$0x1] }
  0x60   : > { %6639 = vmatmul.mubr.msk.bf16.gmra.mxu1 %vm347_vm1, %v5868_v39  ;;  %6673 = vmatmul.mubr.msk.bf16.gmra.mxu0 %vm347_vm1, %v5917_v40  ;;  %v924_v50 = vrot.slane %v923_v41, 4  ;;  %v941_v52 = vshrl.u32 %v658_v38, 16  ;;  %v944_v53 = vshll.u32 %v658_v38, 16  ;;  %v950_v58 = vshll.u32 %v659_v44, 16  ;;  %v664_v34 = vld [vmem:[%s7146_s7 + $0x9c] sm:$0xf] }
  0x61   : > { %v1590_v56 = vsel %vm7205_vm6, %v5901_v46, %v1589_v47  ;;  %v1591_v57 = vrot.slane %v1589_v47, 4  ;;  %v954_v59 = vshrl.u32 %v659_v44, 16  ;;  %v934_v62 = vrot.slane %v933_v51, 4  ;;  %v665_v43 = vld [vmem:[%s7146_s7 + $0xa0] sm:$0xf] }
  0x62   : > { %v929_v61 = vsel %vm7219_vm7, %v924_v50, %v928_v37  ;;  %v943_v63 = vrot.slane %v941_v52, 4  ;;  %v946_v0 = vrot.slane %v944_v53, 5  ;;  %v952_v3 = vrot.slane %v950_v58, 5  ;;  %v666_v44 = vld [vmem:[%s7146_s7 + $0xa4] sm:$0x1] }
  0x63   : > { %v1593_v2 = vsel %vm7205_vm6, %v1591_v57, %v1592_v48  ;;  %v956_v4 = vrot.slane %v954_v59, 4  ;;  %v960_v5 = vshll.u32 %v660_v49, 16  ;;  %v939_v7 = vsel %vm7219_vm7, %v934_v62, %v938_v45  ;;  %v1457_v49 = vld [vmem:[%s7146_s7 + $0x9c] sm:$0xe] }
  0x64   : > { %v5918_v8 = vcombine.low %v1590_v56, %v1593_v2  ;;  %v947_v9 = vor.u32 %v946_v0, %v943_v63  ;;  %v5902_v10 = vrot.slane %v1451_v54, 9  ;;  %v5869_v13 = vcombine.low %v929_v61, %v939_v7  ;;  %v1458_v54 = vld [vmem:[%s7146_s7 + $0xa0] sm:$0xf]  ;;  %v7427_v56 = vld [vmem:[%s8882_s1 + $0xc] sm:$0x3] }
  0x65   : > { %v957_v14 = vor.u32 %v956_v4, %v952_v3  ;;  %v962_v15 = vrot.slane %v960_v5, 5  ;;  %v1596_v16 = vrot.slane %v1452_v60, 5  ;;  %v1599_v20 = vrot.slane %v1453_v1, 5  ;;  %v1459_v61 = vld [vmem:[%s7146_s7 + $0xa4] sm:$0x1]  ;;  %6901 = vmatprep.subr.msk.bf16.mxu0 %vm396_vm0, %v7427_v56 }
  0x66   : > { %6676 = vmatprep.mubr.msk.bf16.mxu0 %vm347_vm1, %v5918_v8  ;;  %v948_v17 = vrot.slane %v947_v9, 4  ;;  %v965_v22 = vshrl.u32 %v661_v6, 16  ;;  %v968_v23 = vshll.u32 %v661_v6, 16  ;;  %6642 = vmatprep.mubr.msk.bf16.mxu1 %vm347_vm1, %v5869_v13  ;;  %v974_v19 = vshll.u32 %v662_v11, 16  ;;  %v667_v6 = vld [vmem:[%s7146_s7 + $0xa8] sm:$0xf] }
  0x67   : > { %v958_v26 = vrot.slane %v957_v14, 4  ;;  %v1597_v27 = vsel %vm7205_vm6, %v5902_v10, %v1596_v16  ;;  %v1598_v28 = vrot.slane %v1596_v16, 4  ;;  %v978_v33 = vshrl.u32 %v662_v11, 16  ;;  %v668_v11 = vld [vmem:[%s7146_s7 + $0xac] sm:$0xf] }
  0x68   : > { %v953_v30 = vsel %vm7219_vm7, %v948_v17, %v952_v3  ;;  %v967_v31 = vrot.slane %v965_v22, 4  ;;  %v970_v32 = vrot.slane %v968_v23, 5  ;;  %v976_v37 = vrot.slane %v974_v19, 5 }
  0x69   : > { %v963_v35 = vsel %vm7219_vm7, %v958_v26, %v962_v15  ;;  %v1600_v36 = vsel %vm7205_vm6, %v1598_v28, %v1599_v20  ;;  %v984_v18 = vshll.u32 %v663_v12, 16  ;;  %v980_v41 = vrot.slane %v978_v33, 4  ;;  %v669_v12 = vld [vmem:[%s7146_s7 + $0xb0] sm:$0x1] }
  0x6a   : > { %v5870_v38 = vcombine.low %v953_v30, %v963_v35  ;;  %v5919_v39 = vcombine.low %v1597_v27, %v1600_v36  ;;  %v971_v40 = vor.u32 %v970_v32, %v967_v31  ;;  %v5903_v46 = vrot.slane %v1454_v25, 9  ;;  %v1460_v25 = vld [vmem:[%s7146_s7 + $0xa8] sm:$0xe] }
  0x6b   : > { %v986_v45 = vrot.slane %v984_v18, 5  ;;  %v1603_v47 = vrot.slane %v1455_v21, 5  ;;  %v1606_v48 = vrot.slane %v1456_v29, 5  ;;  %v981_v51 = vor.u32 %v980_v41, %v976_v37  ;;  %v1461_v21 = vld [vmem:[%s7146_s7 + $0xac] sm:$0xf] }
  0x6c   : > { %6643 = vmatmul.mubr.msk.bf16.gmra.mxu1 %vm347_vm1, %v5870_v38  ;;  %6677 = vmatmul.mubr.msk.bf16.gmra.mxu0 %vm347_vm1, %v5919_v39  ;;  %v972_v50 = vrot.slane %v971_v40, 4  ;;  %v989_v52 = vshrl.u32 %v664_v34, 16  ;;  %v992_v53 = vshll.u32 %v664_v34, 16  ;;  %v998_v59 = vshll.u32 %v665_v43, 16  ;;  %v1462_v29 = vld [vmem:[%s7146_s7 + $0xb0] sm:$0x1] }
  0x6d   : > { %v1604_v57 = vsel %vm7205_vm6, %v5903_v46, %v1603_v47  ;;  %v1605_v58 = vrot.slane %v1603_v47, 4  ;;  %v1002_v60 = vshrl.u32 %v665_v43, 16  ;;  %v982_v63 = vrot.slane %v981_v51, 4  ;;  %v670_v34 = vld [vmem:[%s7146_s7 + $0xb4] sm:$0xf] }
  0x6e   : > { %v977_v62 = vsel %vm7219_vm7, %v972_v50, %v976_v37  ;;  %v991_v0 = vrot.slane %v989_v52, 4  ;;  %v994_v1 = vrot.slane %v992_v53, 5  ;;  %v1000_v3 = vrot.slane %v998_v59, 5  ;;  %v671_v43 = vld [vmem:[%s7146_s7 + $0xb8] sm:$0xf] }
  0x6f   : > { %v1607_v2 = vsel %vm7205_vm6, %v1605_v58, %v1606_v48  ;;  %v1004_v4 = vrot.slane %v1002_v60, 4  ;;  %v1008_v5 = vshll.u32 %v666_v44, 16  ;;  %v987_v7 = vsel %vm7219_vm7, %v982_v63, %v986_v45  ;;  %v672_v44 = vld [vmem:[%s7146_s7 + $0xbc] sm:$0x1] }
  0x70   : > { %v5920_v8 = vcombine.low %v1604_v57, %v1607_v2  ;;  %v995_v9 = vor.u32 %v994_v1, %v991_v0  ;;  %v5904_v10 = vrot.slane %v1457_v49, 9  ;;  %v5871_v13 = vcombine.low %v977_v62, %v987_v7  ;;  %v1463_v49 = vld [vmem:[%s7146_s7 + $0xb4] sm:$0xe]  ;;  %v1465_v1 = vld [vmem:[%s7146_s7 + $0xbc] sm:$0x1] }
  0x71   : > { %v1005_v14 = vor.u32 %v1004_v4, %v1000_v3  ;;  %v1010_v15 = vrot.slane %v1008_v5, 5  ;;  %v1610_v16 = vrot.slane %v1458_v54, 5  ;;  %v1613_v20 = vrot.slane %v1459_v61, 5  ;;  %v1464_v54 = vld [vmem:[%s7146_s7 + $0xb8] sm:$0xf] }
  0x72   : > { %6680 = vmatprep.mubr.msk.bf16.mxu0 %vm347_vm1, %v5920_v8  ;;  %v996_v17 = vrot.slane %v995_v9, 4  ;;  %v1013_v22 = vshrl.u32 %v667_v6, 16  ;;  %v1016_v23 = vshll.u32 %v667_v6, 16  ;;  %6646 = vmatprep.mubr.msk.bf16.mxu1 %vm347_vm1, %v5871_v13  ;;  %v1022_v19 = vshll.u32 %v668_v11, 16  ;;  %v6005_v6 = vld [vmem:[%s7146_s7 + $0xc] sm:$0xf] }
  0x73   : > { %v1006_v26 = vrot.slane %v1005_v14, 4  ;;  %v1611_v27 = vsel %vm7205_vm6, %v5904_v10, %v1610_v16  ;;  %v1612_v28 = vrot.slane %v1610_v16, 4  ;;  %v1026_v33 = vshrl.u32 %v668_v11, 16  ;;  %v6006_v11 = vld [vmem:[%s7146_s7 + $0x10] sm:$0xf] }
  0x74   : > { %v1001_v30 = vsel %vm7219_vm7, %v996_v17, %v1000_v3  ;;  %v1015_v31 = vrot.slane %v1013_v22, 4  ;;  %v1018_v32 = vrot.slane %v1016_v23, 5  ;;  %v1024_v37 = vrot.slane %v1022_v19, 5  ;;  %v6007_v16 = vld [vmem:[%s7146_s7 + $0x14] sm:$0x1] }
  0x75   : > { %v1011_v35 = vsel %vm7219_vm7, %v1006_v26, %v1010_v15  ;;  %v1614_v36 = vsel %vm7205_vm6, %v1612_v28, %v1613_v20  ;;  %v1032_v18 = vshll.u32 %v669_v12, 16  ;;  %v1028_v41 = vrot.slane %v1026_v33, 4  ;;  %v6009_v19 = vld [vmem:[%s7146_s7 + $0x1c] sm:$0xf] }
  0x76   : > { %v5872_v38 = vcombine.low %v1001_v30, %v1011_v35  ;;  %v5921_v39 = vcombine.low %v1611_v27, %v1614_v36  ;;  %v1019_v40 = vor.u32 %v1018_v32, %v1015_v31  ;;  %v5905_v46 = vrot.slane %v1460_v25, 9  ;;  %v6008_v25 = vld [vmem:[%s7146_s7 + $0x18] sm:$0xf]  ;;  %v6962_v30 = vld [vmem:[%s7146_s7 + $0xc] sm:$0xff]  }
  0x77   : > { %v1034_v45 = vrot.slane %v1032_v18, 5  ;;  %v1617_v47 = vrot.slane %v1461_v21, 5  ;;  %v1620_v48 = vrot.slane %v1462_v29, 5  ;;  %v1029_v51 = vor.u32 %v1028_v41, %v1024_v37  ;;  %v6010_v18 = vld [vmem:[%s7146_s7 + $0x20] sm:$0x1] }
  0x78   : > { %6647 = vmatmul.mubr.msk.bf16.gmra.mxu1 %vm347_vm1, %v5872_v38  ;;  %6681 = vmatmul.mubr.msk.bf16.gmra.mxu0 %vm347_vm1, %v5921_v39  ;;  %v1020_v50 = vrot.slane %v1019_v40, 4  ;;  %v1037_v52 = vshrl.u32 %v670_v34, 16  ;;  %v1040_v53 = vshll.u32 %v670_v34, 16  ;;  %v1046_v59 = vshll.u32 %v671_v43, 16 }
  0x79   : > { %v1618_v57 = vsel %vm7205_vm6, %v5905_v46, %v1617_v47  ;;  %v1619_v58 = vrot.slane %v1617_v47, 4  ;;  %v1050_v60 = vshrl.u32 %v671_v43, 16  ;;  %v1030_v62 = vrot.slane %v1029_v51, 4  ;;  %v6011_v43 = vld [vmem:[%s7146_s7 + $0x24] sm:$0xf] }
  0x7a   : > { %v1025_v61 = vsel %vm7219_vm7, %v1020_v50, %v1024_v37  ;;  %v1039_v63 = vrot.slane %v1037_v52, 4  ;;  %v1042_v0 = vrot.slane %v1040_v53, 5  ;;  %v1048_v3 = vrot.slane %v1046_v59, 5  ;;  %v6013_v59 = vld [vmem:[%s7146_s7 + $0x2c] sm:$0x1] }
  0x7b   : > { %v1621_v2 = vsel %vm7205_vm6, %v1619_v58, %v1620_v48  ;;  %v1052_v4 = vrot.slane %v1050_v60, 4  ;;  %v1056_v5 = vshll.u32 %v672_v44, 16  ;;  %v1035_v7 = vsel %vm7219_vm7, %v1030_v62, %v1034_v45  ;;  %v6012_v44 = vld [vmem:[%s7146_s7 + $0x28] sm:$0xf] }
  0x7c   : > { %v5922_v8 = vcombine.low %v1618_v57, %v1621_v2  ;;  %v1043_v9 = vor.u32 %v1042_v0, %v1039_v63  ;;  %v5906_v10 = vrot.slane %v1463_v49, 9  ;;  %v5873_v12 = vcombine.low %v1025_v61, %v1035_v7  ;;  %v6963_v0 = vld [vmem:[%s7146_s7 + $0x18] sm:$0xff]  }
  0x7d   : > { %v1053_v13 = vor.u32 %v1052_v4, %v1048_v3  ;;  %v1058_v14 = vrot.slane %v1056_v5, 5  ;;  %v1624_v15 = vrot.slane %v1464_v54, 5  ;;  %v1627_v20 = vrot.slane %v1465_v1, 5  ;;  %v6014_v5 = vld [vmem:[%s7146_s7 + $0x30] sm:$0xf] }
  0x7e   : > { %6684 = vmatprep.mubr.msk.bf16.mxu0 %vm347_vm1, %v5922_v8  ;;  %v1044_v17 = vrot.slane %v1043_v9, 4  ;;  %v2459_v22 = vshrl.u32 %v6005_v6, 16  ;;  %v2462_v23 = vshll.u32 %v6005_v6, 16  ;;  %6650 = vmatprep.mubr.msk.bf16.mxu1 %vm347_vm1, %v5873_v12  ;;  %v2468_v28 = vshll.u32 %v6006_v11, 16 }
  0x7f   : > { %v1054_v21 = vrot.slane %v1053_v13, 4  ;;  %v1625_v26 = vsel %vm7205_vm6, %v5906_v10, %v1624_v15  ;;  %v1626_v27 = vrot.slane %v1624_v15, 4  ;;  %v2472_v33 = vshrl.u32 %v6006_v11, 16  ;;  %v6964_v11 = vld [vmem:[%s7146_s7 + $0x24] sm:$0xff]  }
  0x80   : > { %v1049_v29 = vsel %vm7219_vm7, %v1044_v17, %v1048_v3  ;;  %v2461_v31 = vrot.slane %v2459_v22, 4  ;;  %v2464_v32 = vrot.slane %v2462_v23, 5  ;;  %v2470_v36 = vrot.slane %v2468_v28, 5 }
  0x81   : > { %v1059_v34 = vsel %vm7219_vm7, %v1054_v21, %v1058_v14  ;;  %v1628_v35 = vsel %vm7205_vm6, %v1626_v27, %v1627_v20  ;;  %v2478_v37 = vshll.u32 %v6007_v16, 16  ;;  %v2474_v41 = vrot.slane %v2472_v33, 4  ;;  %v6015_v14 = vld [vmem:[%s7146_s7 + $0x34] sm:$0xf] }
  0x82   : > { %v5874_v38 = vcombine.low %v1049_v29, %v1059_v34  ;;  %v5923_v39 = vcombine.low %v1625_v26, %v1628_v35  ;;  %v2465_v40 = vor.u32 %v2464_v32, %v2461_v31  ;;  %v2483_v46 = vshrl.u32 %v6008_v25, 16  ;;  %v6018_v35 = vld [vmem:[%s7146_s7 + $0x40] sm:$0xf] }
  0x83   : > { %v2480_v45 = vrot.slane %v2478_v37, 5  ;;  %v2486_v47 = vshll.u32 %v6008_v25, 16  ;;  %v2492_v48 = vshll.u32 %v6009_v19, 16  ;;  %v2475_v50 = vor.u32 %v2474_v41, %v2470_v36  ;;  %v6016_v25 = vld [vmem:[%s7146_s7 + $0x38] sm:$0x1] }
  0x84   : > { %6651 = vmatmul.mubr.msk.bf16.gmra.mxu1 %vm347_vm1, %v5874_v38  ;;  %6685 = vmatmul.mubr.msk.bf16.gmra.mxu0 %vm347_vm1, %v5923_v39  ;;  %v2466_v49 = vrot.slane %v2465_v40, 4  ;;  %v2496_v51 = vshrl.u32 %v6009_v19, 16  ;;  %v2502_v52 = vshll.u32 %v6010_v18, 16  ;;  %v2485_v53 = vrot.slane %v2483_v46, 4  ;;  %v6019_v39 = vld [vmem:[%s7146_s7 + $0x44] sm:$0x1] }
  0x85   : > { %6690 = vmatprep.mubr.msk.bf16.mxu1 %vm347_vm1, %v6962_v30  ;;  %v2488_v54 = vrot.slane %v2486_v47, 5  ;;  %v2494_v57 = vrot.slane %v2492_v48, 5  ;;  %v3962_v58 = vsel %vm396_vm0, %v7427_v56, 0  ;;  %v2476_v61 = vrot.slane %v2475_v50, 4  ;;  %v6017_v30 = vld [vmem:[%s7146_s7 + $0x3c] sm:$0xf] }
  0x86   : > { %v2471_v60 = vsel %vm7219_vm7, %v2466_v49, %v2470_v36  ;;  %v2498_v62 = vrot.slane %v2496_v51, 4  ;;  %v2504_v63 = vrot.slane %v2502_v52, 5  ;;  %v2507_v2 = vshrl.u32 %v6011_v43, 16  ;;  %v6020_v49 = vld [vmem:[%s7146_s7 + $0x48] sm:$0xf]  ;;  %v6966_v52 = vld [vmem:[%s7146_s7 + $0x3c] sm:$0xff]  }
  0x87   : > { %v2489_v1 = vor.u32 %v2488_v54, %v2485_v53  ;;  %v2510_v3 = vshll.u32 %v6011_v43, 16  ;;  %v2516_v4 = vshll.u32 %v6012_v44, 16  ;;  %v2481_v6 = vsel %vm7219_vm7, %v2476_v61, %v2480_v45  ;;  %v6965_v45 = vld [vmem:[%s7146_s7 + $0x30] sm:$0xff]  }
  0x88   : > { %v2499_v7 = vor.u32 %v2498_v62, %v2494_v57  ;;  %v2520_v56 = vshrl.u32 %v6012_v44, 16  ;;  %v2526_v8 = vshll.u32 %v6013_v59, 16  ;;  %v6054_v9 = vcombine.low %v2471_v60, %v2481_v6 }
  0x89   : > { %v2490_v10 = vrot.slane %v2489_v1, 4  ;;  %v2509_v12 = vrot.slane %v2507_v2, 4  ;;  %v2512_v13 = vrot.slane %v2510_v3, 5  ;;  %v2518_v16 = vrot.slane %v2516_v4, 5 }
  0x8a   : > { %v2500_v15 = vrot.slane %v2499_v7, 4  ;;  %v2522_v17 = vrot.slane %v2520_v56, 4  ;;  %v2528_v20 = vrot.slane %v2526_v8, 5  ;;  %6724 = vmatprep.mubr.msk.bf16.mxu0 %vm347_vm1, %v6054_v9  ;;  %v2531_v21 = vshrl.u32 %v6014_v5, 16  ;;  %v6023_v7 = vld [vmem:[%s7146_s7 + $0x54] sm:$0xf] }
  0x8b   : > { %v2495_v22 = vsel %vm7219_vm7, %v2490_v10, %v2494_v57  ;;  %v2513_v23 = vor.u32 %v2512_v13, %v2509_v12  ;;  %v2534_v26 = vshll.u32 %v6014_v5, 16  ;;  %v2540_v19 = vshll.u32 %v6015_v14, 16  ;;  %v6021_v57 = vld [vmem:[%s7146_s7 + $0x4c] sm:$0xf] }
  0x8c   : > { %6691 = vmatmul.mubr.msk.bf16.vlgmr.msra.gmra.mxu1 %vm347_vm1, %v6963_v0  ;;  %v2505_v27 = vsel %vm7219_vm7, %v2500_v15, %v2504_v63  ;;  %v2523_v28 = vor.u32 %v2522_v17, %v2518_v16  ;;  %v2544_v29 = vshrl.u32 %v6015_v14, 16  ;;  %v2533_v33 = vrot.slane %v2531_v21, 4  ;;  %v6022_v0 = vld [vmem:[%s7146_s7 + $0x50] sm:$0x1]  ;;  %v6967_v13 = vld [vmem:[%s7146_s7 + $0x48] sm:$0xff]  }
  0x8d   : > { %v6055_v31 = vcombine.low %v2495_v22, %v2505_v27  ;;  %6757 = vmatpush3.bf16.msra.mxu1 %v7194_v24  ;;  %6694 = vmatprep.mubr.msk.bf16.mxu1 %vm347_vm1, %v6964_v11  ;;  %v2514_v32 = vrot.slane %v2513_v23, 4  ;;  %v2536_v34 = vrot.slane %v2534_v26, 5  ;;  %v2542_v37 = vrot.slane %v2540_v19, 5  ;;  %v6024_v11 = vld [vmem:[%s7146_s7 + $0x58] sm:$0xf] }
  0x8e   : > { %v2524_v36 = vrot.slane %v2523_v28, 4  ;;  %v2546_v18 = vrot.slane %v2544_v29, 4  ;;  %v2550_v38 = vshll.u32 %v6016_v25, 16  ;;  %v2555_v41 = vshrl.u32 %v6017_v30, 16  ;;  %v6968_v22 = vld [vmem:[%s7146_s7 + $0x54] sm:$0xff]  }
  0x8f   : > { %6725 = vmatmul.mubr.msk.bf16.vlgmr.msra.gmra.mxu0 %vm347_vm1, %v6055_v31  ;;  %v2519_v40 = vsel %vm7219_vm7, %v2514_v32, %v2518_v16  ;;  %v2537_v24 = vor.u32 %v2536_v34, %v2533_v33  ;;  %v2558_v43 = vshll.u32 %v6017_v30, 16  ;;  %v2564_v48 = vshll.u32 %v6018_v35, 16  ;;  %v6025_v23 = vld [vmem:[%s7146_s7 + $0x5c] sm:$0x1]  ;;  %v6026_v29 = vld [vmem:[%s7146_s7 + $0x60] sm:$0xf] }
  0x90   : > { %6791 = vmatpush3.bf16.msra.mxu0 %v3962_v58  ;;  %v2529_v44 = vsel %vm7219_vm7, %v2524_v36, %v2528_v20  ;;  %v2547_v46 = vor.u32 %v2546_v18, %v2542_v37  ;;  %v2552_v47 = vrot.slane %v2550_v38, 5  ;;  %v2557_v53 = vrot.slane %v2555_v41, 4  ;;  %v6027_v34 = vld [vmem:[%s7146_s7 + $0x64] sm:$0xf]  ;;  %v6028_v41 = vld [vmem:[%s7146_s7 + $0x68] sm:$0x1] }
  0x91   : > { %v6056_v50 = vcombine.low %v2519_v40, %v2529_v44  ;;  %v2538_v51 = vrot.slane %v2537_v24, 4  ;;  %v2560_v54 = vrot.slane %v2558_v43, 5  ;;  %v2566_v60 = vrot.slane %v2564_v48, 5  ;;  %v6029_v43 = vld [vmem:[%s7146_s7 + $0x6c] sm:$0xf] }
  0x92   : > { %v2548_v59 = vrot.slane %v2547_v46, 4  ;;  %v2568_v61 = vshrl.u32 %v6018_v35, 16  ;;  %v2574_v58 = vshll.u32 %v6019_v39, 16  ;;  %v2579_v1 = vshrl.u32 %v6020_v49, 16  ;;  %v6030_v48 = vld [vmem:[%s7146_s7 + $0x70] sm:$0xf] }
  0x93   : > { %6728 = vmatprep.mubr.msk.bf16.mxu0 %vm347_vm1, %v6056_v50  ;;  %v2543_v62 = vsel %vm7219_vm7, %v2538_v51, %v2542_v37  ;;  %v2561_v63 = vor.u32 %v2560_v54, %v2557_v53  ;;  %v2582_v2 = vshll.u32 %v6020_v49, 16  ;;  %v2588_v6 = vshll.u32 %v6021_v57, 16 }
  0x94   : > { %6695 = vmatmul.mubr.msk.bf16.gmra.mxu1 %vm347_vm1, %v6965_v45  ;;  %v2553_v3 = vsel %vm7219_vm7, %v2548_v59, %v2552_v47  ;;  %v2570_v4 = vrot.slane %v2568_v61, 4  ;;  %v2576_v5 = vrot.slane %v2574_v58, 5  ;;  %v2581_v9 = vrot.slane %v2579_v1, 4 }
  0x95   : > { %v6057_v56 = vcombine.low %v2543_v62, %v2553_v3  ;;  %6698 = vmatprep.mubr.msk.bf16.mxu1 %vm347_vm1, %v6966_v52  ;;  %v2562_v8 = vrot.slane %v2561_v63, 4  ;;  %v2584_v10 = vrot.slane %v2582_v2, 5  ;;  %v2590_v14 = vrot.slane %v2588_v6, 5  ;;  %v6969_v63 = vld [vmem:[%s7146_s7 + $0x60] sm:$0xff]   ;;  %v6031_v3 = vld [vmem:[%s7146_s7 + $0x74] sm:$0x1] }
  0x96   : > { %v2571_v12 = vor.u32 %v2570_v4, %v2566_v60  ;;  %v2592_v15 = vshrl.u32 %v6021_v57, 16  ;;  %v2598_v16 = vshll.u32 %v6022_v0, 16  ;;  %v2603_v25 = vshrl.u32 %v6023_v7, 16  ;;  %v6970_v6 = vld [vmem:[%s7146_s7 + $0x6c] sm:$0xff]  }
  0x97   : > { %6729 = vmatmul.mubr.msk.bf16.gmra.mxu0 %vm347_vm1, %v6057_v56  ;;  %v2567_v17 = vsel %vm7219_vm7, %v2562_v8, %v2566_v60  ;;  %v2585_v20 = vor.u32 %v2584_v10, %v2581_v9  ;;  %v2606_v21 = vshll.u32 %v6023_v7, 16  ;;  %v2612_v19 = vshll.u32 %v6024_v11, 16  ;;  %v6032_v9 = vld [vmem:[%s7146_s7 + $0x78] sm:$0xf] }
  0x98   : > { %v2572_v26 = vrot.slane %v2571_v12, 4  ;;  %v2594_v27 = vrot.slane %v2592_v15, 4  ;;  %v2600_v28 = vrot.slane %v2598_v16, 5  ;;  %v2605_v31 = vrot.slane %v2603_v25, 4 }
  0x99   : > { %v2586_v30 = vrot.slane %v2585_v20, 4  ;;  %v2608_v32 = vrot.slane %v2606_v21, 5  ;;  %v2616_v33 = vshrl.u32 %v6024_v11, 16  ;;  %v2614_v37 = vrot.slane %v2612_v19, 5 }
  0x9a   : > { %v2577_v35 = vsel %vm7219_vm7, %v2572_v26, %v2576_v5  ;;  %v2595_v36 = vor.u32 %v2594_v27, %v2590_v14  ;;  %v2622_v18 = vshll.u32 %v6025_v23, 16  ;;  %v2627_v46 = vshrl.u32 %v6026_v29, 16 }
  0x9b   : > { %v6058_v38 = vcombine.low %v2567_v17, %v2577_v35  ;;  %v2591_v39 = vsel %vm7219_vm7, %v2586_v30, %v2590_v14  ;;  %v2609_v40 = vor.u32 %v2608_v32, %v2605_v31  ;;  %v2618_v24 = vrot.slane %v2616_v33, 4  ;;  %v6033_v14 = vld [vmem:[%s7146_s7 + $0x7c] sm:$0xf]  ;;  %v6035_v30 = vld [vmem:[%s7146_s7 + $0x84] sm:$0xf] }
  0x9c   : > { %6699 = vmatmul.mubr.msk.bf16.gmra.mxu1 %vm347_vm1, %v6967_v13  ;;  %v2596_v44 = vrot.slane %v2595_v36, 4  ;;  %v2624_v45 = vrot.slane %v2622_v18, 5  ;;  %v2630_v47 = vshll.u32 %v6026_v29, 16  ;;  %v2636_v51 = vshll.u32 %v6027_v34, 16  ;;  %v7576_v31 = vld [vmem:[%s8882_s1 + $0xe] sm:$0x3] }
  0x9d   : > { %6732 = vmatprep.mubr.msk.bf16.mxu0 %vm347_vm1, %v6058_v38  ;;  %6702 = vmatprep.mubr.msk.bf16.mxu1 %vm347_vm1, %v6968_v22  ;;  %v2610_v49 = vrot.slane %v2609_v40, 4  ;;  %v2619_v50 = vor.u32 %v2618_v24, %v2614_v37  ;;  %v2640_v52 = vshrl.u32 %v6027_v34, 16  ;;  %v2629_v54 = vrot.slane %v2627_v46, 4  ;;  %v6034_v22 = vld [vmem:[%s7146_s7 + $0x80] sm:$0x1]  ;;  %v6972_v46 = vld [vmem:[%s7146_s7 + $0x84] sm:$0xff]  }
  0x9e   : > { %v2601_v53 = vsel %vm7219_vm7, %v2596_v44, %v2600_v28  ;;  %v2632_v57 = vrot.slane %v2630_v47, 5  ;;  %v2646_v59 = vshll.u32 %v6028_v41, 16  ;;  %v2638_v62 = vrot.slane %v2636_v51, 5  ;;  %v6036_v36 = vld [vmem:[%s7146_s7 + $0x88] sm:$0xf]  ;;  %6902 = vmatprep.subr.msk.bf16.mxu1 %vm396_vm0, %v7576_v31 }
  0x9f   : > { %v6059_v60 = vcombine.low %v2591_v39, %v2601_v53  ;;  %v2615_v61 = vsel %vm7219_vm7, %v2610_v49, %v2614_v37  ;;  %v2620_v58 = vrot.slane %v2619_v50, 4  ;;  %v2642_v1 = vrot.slane %v2640_v52, 4  ;;  %v6971_v39 = vld [vmem:[%s7146_s7 + $0x78] sm:$0xff]   ;;  %v6037_v24 = vld [vmem:[%s7146_s7 + $0x8c] sm:$0x1] }
  0xa0   : > { %v2633_v0 = vor.u32 %v2632_v57, %v2629_v54  ;;  %v2648_v2 = vrot.slane %v2646_v59, 5  ;;  %v2651_v4 = vshrl.u32 %v6029_v43, 16  ;;  %v2654_v7 = vshll.u32 %v6029_v43, 16  ;;  %v6038_v41 = vld [vmem:[%s7146_s7 + $0x90] sm:$0xf] }
  0xa1   : > { %6733 = vmatmul.mubr.msk.bf16.gmra.mxu0 %vm347_vm1, %v6059_v60  ;;  %v2625_v5 = vsel %vm7219_vm7, %v2620_v58, %v2624_v45  ;;  %v2660_v56 = vshll.u32 %v6030_v48, 16  ;;  %v2664_v8 = vshrl.u32 %v6030_v48, 16  ;;  %v2643_v12 = vor.u32 %v2642_v1, %v2638_v62  ;;  %v7595_v52 = vld [vmem:[%s8882_s1 + $0x10] sm:$0x3]  ;;  %v6039_v60 = vld [vmem:[%s7146_s7 + $0x94] sm:$0xf] }
  0xa2   : > { %v6060_v10 = vcombine.low %v2615_v61, %v2625_v5  ;;  %v2634_v11 = vrot.slane %v2633_v0, 4  ;;  %v2653_v13 = vrot.slane %v2651_v4, 4  ;;  %v2656_v15 = vrot.slane %v2654_v7, 5  ;;  %6903 = vmatprep.subr.msk.bf16.mxu0 %vm396_vm0, %v7595_v52  ;;  %v6040_v0 = vld [vmem:[%s7146_s7 + $0x98] sm:$0x1] }
  0xa3   : > { %v2662_v16 = vrot.slane %v2660_v56, 5  ;;  %v2666_v17 = vrot.slane %v2664_v8, 4  ;;  %v2670_v20 = vshll.u32 %v6031_v3, 16  ;;  %v2644_v25 = vrot.slane %v2643_v12, 4  ;;  %v6041_v1 = vld [vmem:[%s7146_s7 + $0x9c] sm:$0xf] }
  0xa4   : > { %6736 = vmatprep.mubr.msk.bf16.mxu0 %vm347_vm1, %v6060_v10  ;;  %6703 = vmatmul.mubr.msk.bf16.gmra.mxu1 %vm347_vm1, %v6969_v63  ;;  %v2639_v23 = vsel %vm7219_vm7, %v2634_v11, %v2638_v62  ;;  %v2675_v21 = vshrl.u32 %v6032_v9, 16  ;;  %v2678_v26 = vshll.u32 %v6032_v9, 16  ;;  %v2657_v27 = vor.u32 %v2656_v15, %v2653_v13 }
  0xa5   : > { %6706 = vmatprep.mubr.msk.bf16.mxu1 %vm347_vm1, %v6970_v6  ;;  %v2667_v28 = vor.u32 %v2666_v17, %v2662_v16  ;;  %v2672_v19 = vrot.slane %v2670_v20, 5  ;;  %v2684_v29 = vshll.u32 %v6033_v14, 16  ;;  %v2649_v32 = vsel %vm7219_vm7, %v2644_v25, %v2648_v2  ;;  %v6974_v20 = vld [vmem:[%s7146_s7 + $0x9c] sm:$0xff]  }
  0xa6   : > { %v2677_v33 = vrot.slane %v2675_v21, 4  ;;  %v2680_v34 = vrot.slane %v2678_v26, 5  ;;  %v2688_v35 = vshrl.u32 %v6033_v14, 16  ;;  %v6061_v37 = vcombine.low %v2639_v23, %v2649_v32 }
  0xa7   : > { %v2658_v18 = vrot.slane %v2657_v27, 4  ;;  %v2668_v38 = vrot.slane %v2667_v28, 4  ;;  %v2686_v40 = vrot.slane %v2684_v29, 5  ;;  %v2694_v45 = vshll.u32 %v6034_v22, 16  ;;  %v6042_v22 = vld [vmem:[%s7146_s7 + $0xa0] sm:$0xf] }
  0xa8   : > { %v2681_v43 = vor.u32 %v2680_v34, %v2677_v33  ;;  %v2690_v44 = vrot.slane %v2688_v35, 4  ;;  %v2699_v47 = vshrl.u32 %v6035_v30, 16  ;;  %v2702_v50 = vshll.u32 %v6035_v30, 16  ;;  %v6043_v29 = vld [vmem:[%s7146_s7 + $0xa4] sm:$0x1] }
  0xa9   : > { %6737 = vmatmul.mubr.msk.bf16.gmra.mxu0 %vm347_vm1, %v6061_v37  ;;  %v2663_v48 = vsel %vm7219_vm7, %v2658_v18, %v2662_v16  ;;  %v2673_v49 = vsel %vm7219_vm7, %v2668_v38, %v2672_v19  ;;  %v2708_v51 = vshll.u32 %v6036_v36, 16  ;;  %v2696_v59 = vrot.slane %v2694_v45, 5  ;;  %v6973_v16 = vld [vmem:[%s7146_s7 + $0x90] sm:$0xff]  }
  0xaa   : > { %v6062_v53 = vcombine.low %v2663_v48, %v2673_v49  ;;  %v2682_v54 = vrot.slane %v2681_v43, 4  ;;  %v2691_v57 = vor.u32 %v2690_v44, %v2686_v40  ;;  %v2701_v61 = vrot.slane %v2699_v47, 4  ;;  %v6046_v48 = vld [vmem:[%s7146_s7 + $0xb0] sm:$0x1] }
  0xab   : > { %v2704_v58 = vrot.slane %v2702_v50, 5  ;;  %v2710_v62 = vrot.slane %v2708_v51, 5  ;;  %v2712_v63 = vshrl.u32 %v6036_v36, 16  ;;  %v2718_v4 = vshll.u32 %v6037_v24, 16  ;;  %v6044_v36 = vld [vmem:[%s7146_s7 + $0xa8] sm:$0xf] }
  0xac   : > { %6740 = vmatprep.mubr.msk.bf16.mxu0 %vm347_vm1, %v6062_v53  ;;  %6707 = vmatmul.mubr.msk.bf16.gmra.mxu1 %vm347_vm1, %v6971_v39  ;;  %v2687_v2 = vsel %vm7219_vm7, %v2682_v54, %v2686_v40  ;;  %v2692_v3 = vrot.slane %v2691_v57, 4  ;;  %v2723_v5 = vshrl.u32 %v6038_v41, 16  ;;  %v2726_v56 = vshll.u32 %v6038_v41, 16  ;;  %v6045_v40 = vld [vmem:[%s7146_s7 + $0xac] sm:$0xf] }
  0xad   : > { %6710 = vmatprep.mubr.msk.bf16.mxu1 %vm347_vm1, %v6972_v46  ;;  %v2705_v6 = vor.u32 %v2704_v58, %v2701_v61  ;;  %v2714_v7 = vrot.slane %v2712_v63, 4  ;;  %v2732_v8 = vshll.u32 %v6039_v60, 16  ;;  %v2720_v10 = vrot.slane %v2718_v4, 5  ;;  %v6975_v53 = vld [vmem:[%s7146_s7 + $0xa8] sm:$0xff]   ;;  %v6048_v63 = vld [vmem:[%s7146_s7 + $0xb8] sm:$0xf] }
  0xae   : > { %v2697_v9 = vsel %vm7219_vm7, %v2692_v3, %v2696_v59  ;;  %v2725_v11 = vrot.slane %v2723_v5, 4  ;;  %v2736_v12 = vshrl.u32 %v6039_v60, 16  ;;  %v2728_v17 = vrot.slane %v2726_v56, 5  ;;  %v6047_v59 = vld [vmem:[%s7146_s7 + $0xb4] sm:$0xf] }
  0xaf   : > { %v6063_v13 = vcombine.low %v2687_v2, %v2697_v9  ;;  %v2706_v14 = vrot.slane %v2705_v6, 4  ;;  %v2715_v15 = vor.u32 %v2714_v7, %v2710_v62  ;;  %v2734_v23 = vrot.slane %v2732_v8, 5  ;;  %v6976_v6 = vld [vmem:[%s7146_s7 + $0xb4] sm:$0xff]   ;;  %v6049_v7 = vld [vmem:[%s7146_s7 + $0xbc] sm:$0x1] }
  0xb0   : > { %v2738_v25 = vrot.slane %v2736_v12, 4  ;;  %v2742_v21 = vshll.u32 %v6040_v0, 16  ;;  %v2747_v26 = vshrl.u32 %v6041_v1, 16  ;;  %v2729_v19 = vor.u32 %v2728_v17, %v2725_v11 }
  0xb1   : > { %6741 = vmatmul.mubr.msk.bf16.gmra.mxu0 %vm347_vm1, %v6063_v13  ;;  %v2711_v27 = vsel %vm7219_vm7, %v2706_v14, %v2710_v62  ;;  %v2716_v28 = vrot.slane %v2715_v15, 4  ;;  %v2750_v30 = vshll.u32 %v6041_v1, 16  ;;  %v2756_v35 = vshll.u32 %v6042_v22, 16  ;;  %v6050_v13 = vld [vmem:[%s7146_s7 + $0xc0] sm:$0xf] }
  0xb2   : > { %v2739_v32 = vor.u32 %v2738_v25, %v2734_v23  ;;  %v2744_v33 = vrot.slane %v2742_v21, 5  ;;  %v2749_v34 = vrot.slane %v2747_v26, 4  ;;  %v2730_v18 = vrot.slane %v2729_v19, 4  ;;  %v6052_v26 = vld [vmem:[%s7146_s7 + $0xc8] sm:$0x1] }
  0xb3   : > { %v2721_v37 = vsel %vm7219_vm7, %v2716_v28, %v2720_v10  ;;  %v2752_v38 = vrot.slane %v2750_v30, 5  ;;  %v2760_v39 = vshrl.u32 %v6042_v22, 16  ;;  %v2758_v43 = vrot.slane %v2756_v35, 5  ;;  %v6086_v30 = vld [vmem:[%s7146_s7 + $0xc] sm:$0xe] }
  0xb4   : > { %v6064_v24 = vcombine.low %v2711_v27, %v2721_v37  ;;  %6711 = vmatmul.mubr.msk.bf16.gmra.mxu1 %vm347_vm1, %v6973_v16  ;;  %v2740_v41 = vrot.slane %v2739_v32, 4  ;;  %v2766_v44 = vshll.u32 %v6043_v29, 16  ;;  %v2735_v45 = vsel %vm7219_vm7, %v2730_v18, %v2734_v23  ;;  %v6087_v32 = vld [vmem:[%s7146_s7 + $0x10] sm:$0xf]  ;;  %v6088_v37 = vld [vmem:[%s7146_s7 + $0x14] sm:$0x1] }
  0xb5   : > { %6714 = vmatprep.mubr.msk.bf16.mxu1 %vm347_vm1, %v6974_v20  ;;  %v2753_v46 = vor.u32 %v2752_v38, %v2749_v34  ;;  %v2762_v47 = vrot.slane %v2760_v39, 4  ;;  %v2771_v49 = vshrl.u32 %v6044_v36, 16  ;;  %v2774_v54 = vshll.u32 %v6044_v36, 16  ;;  %v6051_v20 = vld [vmem:[%s7146_s7 + $0xc4] sm:$0xf] }
  0xb6   : > { %6744 = vmatprep.mubr.msk.bf16.mxu0 %vm347_vm1, %v6064_v24  ;;  %v2745_v50 = vsel %vm7219_vm7, %v2740_v41, %v2744_v33  ;;  %v2768_v51 = vrot.slane %v2766_v44, 5  ;;  %v2780_v57 = vshll.u32 %v6045_v40, 16  ;;  %v2784_v2 = vshrl.u32 %v6045_v40, 16  ;;  %v6089_v24 = vld [vmem:[%s7146_s7 + $0x18] sm:$0xe] }
  0xb7   : > { %v6065_v60 = vcombine.low %v2735_v45, %v2745_v50  ;;  %v2754_v61 = vrot.slane %v2753_v46, 4  ;;  %v2763_v58 = vor.u32 %v2762_v47, %v2758_v43  ;;  %v2773_v62 = vrot.slane %v2771_v49, 4  ;;  %v6090_v47 = vld [vmem:[%s7146_s7 + $0x1c] sm:$0xf] }
  0xb8   : > { %v2776_v0 = vrot.slane %v2774_v54, 5  ;;  %v2782_v1 = vrot.slane %v2780_v57, 5  ;;  %v2790_v3 = vshll.u32 %v6046_v48, 16  ;;  %v2795_v56 = vshrl.u32 %v6047_v59, 16  ;;  %v6091_v48 = vld [vmem:[%s7146_s7 + $0x20] sm:$0x1] }
  0xb9   : > { %6745 = vmatmul.mubr.msk.bf16.gmra.mxu0 %vm347_vm1, %v6065_v60  ;;  %v2759_v4 = vsel %vm7219_vm7, %v2754_v61, %v2758_v43  ;;  %v2764_v5 = vrot.slane %v2763_v58, 4  ;;  %v2798_v8 = vshll.u32 %v6047_v59, 16  ;;  %v2786_v10 = vrot.slane %v2784_v2, 4  ;;  %v6977_v43 = vld [vmem:[%s7146_s7 + $0xc0] sm:$0xff]   ;;  %v6093_v58 = vld [vmem:[%s7146_s7 + $0x28] sm:$0xf] }
  0xba   : > { %v2777_v9 = vor.u32 %v2776_v0, %v2773_v62  ;;  %v2792_v11 = vrot.slane %v2790_v3, 5  ;;  %v2804_v12 = vshll.u32 %v6048_v63, 16  ;;  %v2797_v15 = vrot.slane %v2795_v56, 4  ;;  %v6092_v54 = vld [vmem:[%s7146_s7 + $0x24] sm:$0xe] }
  0xbb   : > { %v2769_v14 = vsel %vm7219_vm7, %v2764_v5, %v2768_v51  ;;  %v2800_v16 = vrot.slane %v2798_v8, 5  ;;  %v2808_v17 = vshrl.u32 %v6048_v63, 16  ;;  %v2787_v25 = vor.u32 %v2786_v10, %v2782_v1  ;;  %v6094_v2 = vld [vmem:[%s7146_s7 + $0x2c] sm:$0x1]  ;;  %v6095_v3 = vld [vmem:[%s7146_s7 + $0x30] sm:$0xe] }
  0xbc   : > { %v6066_v22 = vcombine.low %v2759_v4, %v2769_v14  ;;  %6715 = vmatmul.mubr.msk.bf16.gmra.mxu1 %vm347_vm1, %v6975_v53  ;;  %v2778_v23 = vrot.slane %v2777_v9, 4  ;;  %v2806_v21 = vrot.slane %v2804_v12, 5  ;;  %v2814_v19 = vshll.u32 %v6049_v7, 16  ;;  %v6097_v12 = vld [vmem:[%s7146_s7 + $0x38] sm:$0x1] }
  0xbd   : > { %6718 = vmatprep.mubr.msk.bf16.mxu1 %vm347_vm1, %v6976_v6  ;;  %v2801_v27 = vor.u32 %v2800_v16, %v2797_v15  ;;  %v2810_v28 = vrot.slane %v2808_v17, 4  ;;  %v2819_v29 = vshrl.u32 %v6050_v13, 16  ;;  %v2788_v34 = vrot.slane %v2787_v25, 4  ;;  %v6978_v16 = vld [vmem:[%s7146_s7 + $0x18] sm:$0xff]  }
  0xbe   : > { %6748 = vmatprep.mubr.msk.bf16.mxu0 %vm347_vm1, %v6066_v22  ;;  %v2783_v33 = vsel %vm7219_vm7, %v2778_v23, %v2782_v1  ;;  %v2822_v35 = vshll.u32 %v6050_v13, 16  ;;  %v2828_v36 = vshll.u32 %v6051_v20, 16  ;;  %v2816_v39 = vrot.slane %v2814_v19, 5  ;;  %v6098_v13 = vld [vmem:[%s7146_s7 + $0x3c] sm:$0xe] }
  0xbf   : > { %v2802_v18 = vrot.slane %v2801_v27, 4  ;;  %v2811_v38 = vor.u32 %v2810_v28, %v2806_v21  ;;  %v2821_v40 = vrot.slane %v2819_v29, 4  ;;  %v2793_v41 = vsel %vm7219_vm7, %v2788_v34, %v2792_v11  ;;  %v6096_v11 = vld [vmem:[%s7146_s7 + $0x34] sm:$0xf]  ;;  %v6099_v22 = vld [vmem:[%s7146_s7 + $0x40] sm:$0xf] }
  0xc0   : > { %v2824_v44 = vrot.slane %v2822_v35, 5  ;;  %v2830_v45 = vrot.slane %v2828_v36, 5  ;;  %v2832_v46 = vshrl.u32 %v6051_v20, 16  ;;  %v6067_v49 = vcombine.low %v2783_v33, %v2793_v41  ;;  %v6100_v23 = vld [vmem:[%s7146_s7 + $0x44] sm:$0x1] }
  0xc1   : > { %v2807_v50 = vsel %vm7219_vm7, %v2802_v18, %v2806_v21  ;;  %v2812_v51 = vrot.slane %v2811_v38, 4  ;;  %v2838_v53 = vshll.u32 %v6052_v26, 16  ;;  %v6134_v60 = vrot.slane %v6086_v30, 9  ;;  %v6102_v28 = vld [vmem:[%s7146_s7 + $0x4c] sm:$0xf] }
  0xc2   : > { %v2825_v57 = vor.u32 %v2824_v44, %v2821_v40  ;;  %v2834_v59 = vrot.slane %v2832_v46, 4  ;;  %v3298_v61 = vrot.slane %v6087_v32, 5  ;;  %6749 = vmatmul.mubr.msk.bf16.gmra.mxu0 %vm347_vm1, %v6067_v49  ;;  %v3301_v0 = vrot.slane %v6088_v37, 5  ;;  %v6103_v32 = vld [vmem:[%s7146_s7 + $0x50] sm:$0x1] }
  0xc3   : > { %v2817_v62 = vsel %vm7219_vm7, %v2812_v51, %v2816_v39  ;;  %v2840_v63 = vrot.slane %v2838_v53, 5  ;;  %v6135_v1 = vrot.slane %v6089_v24, 9  ;;  %v3305_v8 = vrot.slane %v6090_v47, 5  ;;  %v6104_v37 = vld [vmem:[%s7146_s7 + $0x54] sm:$0xe] }
  0xc4   : > { %v6068_v4 = vcombine.low %v2807_v50, %v2817_v62  ;;  %6719 = vmatmul.mubr.msk.bf16.gmra.mxu1 %vm347_vm1, %v6977_v43  ;;  %v2826_v5 = vrot.slane %v2825_v57, 4  ;;  %v2835_v6 = vor.u32 %v2834_v59, %v2830_v45  ;;  %v3299_v7 = vsel %vm7205_vm6, %v6134_v60, %v3298_v61  ;;  %v6105_v18 = vld [vmem:[%s7146_s7 + $0x58] sm:$0xf]  ;;  %v6106_v41 = vld [vmem:[%s7146_s7 + $0x5c] sm:$0x1]  ;;  %v6979_v59 = vld [vmem:[%s7146_s7 + $0x24] sm:$0xff]  }
  0xc5   : > { %v3300_v56 = vrot.slane %v3298_v61, 4  ;;  %v3308_v9 = vrot.slane %v6091_v48, 5  ;;  %v4752_v10 = vsel %vm396_vm0, %v7576_v31, 0  ;;  %v7678_v17 = vsel %vm396_vm0, %v7595_v52, 0  ;;  %v6101_v31 = vld [vmem:[%s7146_s7 + $0x48] sm:$0xe] }
  0xc6   : > { %6752 = vmatprep.mubr.msk.bf16.mxu0 %vm347_vm1, %v6068_v4  ;;  %v2831_v14 = vsel %vm7219_vm7, %v2826_v5, %v2830_v45  ;;  %v2836_v15 = vrot.slane %v2835_v6, 4  ;;  %v6136_v20 = vrot.slane %v6092_v54, 9  ;;  %v3306_v21 = vsel %vm7205_vm6, %v6135_v1, %v3305_v8  ;;  %v6107_v43 = vld [vmem:[%s7146_s7 + $0x60] sm:$0xe]  ;;  %v6108_v53 = vld [vmem:[%s7146_s7 + $0x64] sm:$0xf] }
  0xc7   : > { %v3302_v25 = vsel %vm7205_vm6, %v3300_v56, %v3301_v0  ;;  %v3307_v26 = vrot.slane %v3305_v8, 4  ;;  %v3312_v27 = vrot.slane %v6093_v58, 5  ;;  %v3315_v29 = vrot.slane %v6094_v2, 5  ;;  %v6109_v54 = vld [vmem:[%s7146_s7 + $0x68] sm:$0x1] }
  0xc8   : > { %v2841_v19 = vsel %vm7219_vm7, %v2836_v15, %v2840_v63  ;;  %v6151_v52 = vcombine.low %v3299_v7, %v3302_v25  ;;  %v6137_v30 = vrot.slane %v6095_v3, 9  ;;  %v3319_v39 = vrot.slane %v6096_v11, 5  ;;  %v6110_v57 = vld [vmem:[%s7146_s7 + $0x6c] sm:$0xe]  ;;  %v6111_v63 = vld [vmem:[%s7146_s7 + $0x70] sm:$0xf] }
  0xc9   : > { %v6069_v33 = vcombine.low %v2831_v14, %v2841_v19  ;;  %v3309_v34 = vsel %vm7205_vm6, %v3307_v26, %v3308_v9  ;;  %v3313_v35 = vsel %vm7205_vm6, %v6136_v20, %v3312_v27  ;;  %v3314_v36 = vrot.slane %v3312_v27, 4  ;;  %v6112_v0 = vld [vmem:[%s7146_s7 + $0x74] sm:$0x1]  ;;  %v6113_v1 = vld [vmem:[%s7146_s7 + $0x78] sm:$0xe] }
  0xca   : > { %6758 = vmatprep.mubr.msk.bf16.mxu1 %vm347_vm1, %v6151_v52  ;;  %v6152_v38 = vcombine.low %v3306_v21, %v3309_v34  ;;  %v3322_v40 = vrot.slane %v6097_v12, 5  ;;  %v6138_v24 = vrot.slane %v6098_v13, 9  ;;  %v3326_v45 = vrot.slane %v6099_v22, 5  ;;  %v6114_v6 = vld [vmem:[%s7146_s7 + $0x7c] sm:$0xf]  ;;  %v6980_v12 = vld [vmem:[%s7146_s7 + $0x30] sm:$0xff]  }
  0xcb   : > { %6753 = vmatmul.mubr.msk.bf16.gmra.mxu0 %vm347_vm1, %v6069_v33  ;;  %v3316_v44 = vsel %vm7205_vm6, %v3314_v36, %v3315_v29  ;;  %v3329_v46 = vrot.slane %v6100_v23, 5  ;;  %v6139_v47 = vrot.slane %v6101_v31, 9  ;;  %v7707_v49 = vsel %vm7205_vm6, %v6137_v30, %v3319_v39  ;;  %v6116_v11 = vld [vmem:[%s7146_s7 + $0x84] sm:$0xe]  ;;  %v6117_v20 = vld [vmem:[%s7146_s7 + $0x88] sm:$0xf] }
  0xcc   : > { %6792 = vmatprep.mubr.msk.bf16.mxu0 %vm347_vm1, %v6978_v16  ;;  %6759 = vmatmul.mubr.msk.bf16.vlgmr.msra.gmra.mxu1 %vm347_vm1, %v6152_v38  ;;  %v6153_v48 = vcombine.low %v3313_v35, %v3316_v44  ;;  %v3321_v50 = vrot.slane %v3319_v39, 4  ;;  %v3333_v51 = vrot.slane %v6102_v28, 5  ;;  %v3327_v60 = vsel %vm7205_vm6, %v6138_v24, %v3326_v45  ;;  %v6118_v21 = vld [vmem:[%s7146_s7 + $0x8c] sm:$0x1]  ;;  %v6119_v52 = vld [vmem:[%s7146_s7 + $0x90] sm:$0xe] }
  0xcd   : > { %6825 = vmatpush3.bf16.msra.mxu1 %v4752_v10  ;;  %v3328_v61 = vrot.slane %v3326_v45, 4  ;;  %v3336_v58 = vrot.slane %v6103_v32, 5  ;;  %v6140_v62 = vrot.slane %v6104_v37, 9  ;;  %v3340_v5 = vrot.slane %v6105_v18, 5  ;;  %v6115_v10 = vld [vmem:[%s7146_s7 + $0x80] sm:$0x1] }
  0xce   : > { %6762 = vmatprep.mubr.msk.bf16.mxu1 %vm347_vm1, %v6153_v48  ;;  %v3323_v2 = vsel %vm7205_vm6, %v3321_v50, %v3322_v40  ;;  %v7723_v3 = vsel %vm7205_vm6, %v6139_v47, %v3333_v51  ;;  %v3335_v4 = vrot.slane %v3333_v51, 4  ;;  %v3343_v8 = vrot.slane %v6106_v41, 5  ;;  %v6120_v35 = vld [vmem:[%s7146_s7 + $0x94] sm:$0xf]  ;;  %v7760_v36 = vld [vmem:[%s7146_s7 + $0x98] sm:$0x1] }
  0xcf   : > { %v6154_v7 = vcombine.low %v7707_v49, %v3323_v2  ;;  %v3330_v56 = vsel %vm7205_vm6, %v3328_v61, %v3329_v46  ;;  %v6141_v9 = vrot.slane %v6107_v43, 9  ;;  %v7738_v15 = vsel %vm7205_vm6, %v6140_v62, %v3340_v5  ;;  %v6122_v37 = vld [vmem:[%s7146_s7 + $0x9c] sm:$0xe]  ;;  %v6123_v41 = vld [vmem:[%s7146_s7 + $0xa0] sm:$0xf] }
  0xd0   : > { %v6155_v13 = vcombine.low %v3327_v60, %v3330_v56  ;;  %v7734_v14 = vsel %vm7205_vm6, %v3335_v4, %v3336_v58  ;;  %v3342_v16 = vrot.slane %v3340_v5, 4  ;;  %v3347_v23 = vrot.slane %v6108_v53, 5  ;;  %v6124_v43 = vld [vmem:[%s7146_s7 + $0xa4] sm:$0x1]  ;;  %v6125_v44 = vld [vmem:[%s7146_s7 + $0xa8] sm:$0xe] }
  0xd1   : > { %v6156_v22 = vcombine.low %v7723_v3, %v7734_v14  ;;  %v3350_v31 = vrot.slane %v6109_v54, 5  ;;  %v6142_v25 = vrot.slane %v6110_v57, 9  ;;  %v3354_v27 = vrot.slane %v6111_v63, 5  ;;  %v6126_v49 = vld [vmem:[%s7146_s7 + $0xac] sm:$0xf]  ;;  %v6981_v61 = vld [vmem:[%s7146_s7 + $0x3c] sm:$0xff]  }
  0xd2   : > { %v7746_v26 = vsel %vm7205_vm6, %v3342_v16, %v3343_v8  ;;  %v3357_v28 = vrot.slane %v6112_v0, 5  ;;  %v6143_v19 = vrot.slane %v6113_v1, 9  ;;  %v7754_v30 = vsel %vm7205_vm6, %v6141_v9, %v3347_v23  ;;  %v6128_v60 = vld [vmem:[%s7146_s7 + $0xb4] sm:$0xe]  ;;  %v6129_v2 = vld [vmem:[%s7146_s7 + $0xb8] sm:$0xf] }
  0xd3   : > { %6793 = vmatmul.mubr.msk.bf16.vlgmr.msra.gmra.mxu0 %vm347_vm1, %v6979_v59  ;;  %v6157_v29 = vcombine.low %v7738_v15, %v7746_v26  ;;  %v3349_v32 = vrot.slane %v3347_v23, 4  ;;  %v3361_v34 = vrot.slane %v6114_v6, 5  ;;  %v7767_v18 = vsel %vm7205_vm6, %v6142_v25, %v3354_v27  ;;  %v6127_v59 = vld [vmem:[%s7146_s7 + $0xb0] sm:$0x1]  ;;  %v6982_v4 = vld [vmem:[%s7146_s7 + $0x48] sm:$0xff]   ;;  %v6983_v26 = vld [vmem:[%s7146_s7 + $0x54] sm:$0xff]  }
  0xd4   : > { %6859 = vmatpush3.bf16.msra.mxu0 %v7678_v17  ;;  %6796 = vmatprep.mubr.msk.bf16.mxu0 %vm347_vm1, %v6980_v12  ;;  %v3356_v38 = vrot.slane %v3354_v27, 4  ;;  %v3364_v40 = vrot.slane %v6115_v10, 5  ;;  %v6144_v24 = vrot.slane %v6116_v11, 9  ;;  %v3368_v48 = vrot.slane %v6117_v20, 5  ;;  %v6130_v9 = vld [vmem:[%s7146_s7 + $0xbc] sm:$0x1] }
  0xd5   : > { %6763 = vmatmul.mubr.msk.bf16.gmra.mxu1 %vm347_vm1, %v6154_v7  ;;  %v7777_v17 = vsel %vm7205_vm6, %v3349_v32, %v3350_v31  ;;  %v7781_v45 = vsel %vm7205_vm6, %v6143_v19, %v3361_v34  ;;  %v3363_v46 = vrot.slane %v3361_v34, 4  ;;  %v3371_v54 = vrot.slane %v6118_v21, 5  ;;  %v6131_v20 = vld [vmem:[%s7146_s7 + $0xc0] sm:$0xe]  ;;  %v6329_v15 = vld [vmem:[%s7146_s7 + $0x18] sm:$0xe] }
  0xd6   : > { %6766 = vmatprep.mubr.msk.bf16.mxu1 %vm347_vm1, %v6155_v13  ;;  %v6158_v50 = vcombine.low %v7754_v30, %v7777_v17  ;;  %v7791_v51 = vsel %vm7205_vm6, %v3356_v38, %v3357_v28  ;;  %v6145_v57 = vrot.slane %v6119_v52, 9  ;;  %v7808_v0 = vsel %vm7205_vm6, %v6144_v24, %v3368_v48  ;;  %v6132_v28 = vld [vmem:[%s7146_s7 + $0xc4] sm:$0xf]  ;;  %v6253_v14 = vld [vmem:[%s7146_s7 + $0x2c] sm:$0x1] }
  0xd7   : > { %v6159_v58 = vcombine.low %v7767_v18, %v7791_v51  ;;  %v7802_v62 = vsel %vm7205_vm6, %v3363_v46, %v3364_v40  ;;  %v3370_v1 = vrot.slane %v3368_v48, 4  ;;  %v3375_v7 = vrot.slane %v6120_v35, 5  ;;  %v6254_v51 = vld [vmem:[%s7146_s7 + $0x30] sm:$0xf] }
  0xd8   : > { %v3378_v56 = vrot.slane %v7760_v36, 5  ;;  %v6146_v8 = vrot.slane %v6122_v37, 9  ;;  %v3382_v12 = vrot.slane %v6123_v41, 5  ;;  %v3385_v13 = vrot.slane %v6124_v43, 5  ;;  %v6133_v41 = vld [vmem:[%s7146_s7 + $0xc8] sm:$0x1] }
  0xd9   : > { %v7822_v11 = vsel %vm7205_vm6, %v3370_v1, %v3371_v54  ;;  %v6147_v16 = vrot.slane %v6125_v44, 9  ;;  %v7831_v25 = vsel %vm7205_vm6, %v6145_v57, %v3375_v7  ;;  %v3377_v21 = vrot.slane %v3375_v7, 4  ;;  %v6248_v43 = vld [vmem:[%s7146_s7 + $0x18] sm:$0xf]  ;;  %v6249_v57 = vld [vmem:[%s7146_s7 + $0x1c] sm:$0xf] }
  0xda   : > { %v3389_v27 = vrot.slane %v6126_v49, 5  ;;  %v7839_v52 = vsel %vm7205_vm6, %v6146_v8, %v3382_v12  ;;  %v3384_v32 = vrot.slane %v3382_v12, 4  ;;  %v3392_v34 = vrot.slane %v6127_v59, 5  ;;  %v6984_v8 = vld [vmem:[%s7146_s7 + $0x60] sm:$0xff]  }
  0xdb   : > { %6797 = vmatmul.mubr.msk.bf16.gmra.mxu0 %vm347_vm1, %v6981_v61  ;;  %v6148_v35 = vrot.slane %v6128_v60, 9  ;;  %v7846_v37 = vsel %vm7205_vm6, %v3377_v21, %v3378_v56  ;;  %v3396_v24 = vrot.slane %v6129_v2, 5  ;;  %v3399_v49 = vrot.slane %v6130_v9, 5  ;;  %v6250_v61 = vld [vmem:[%s7146_s7 + $0x20] sm:$0x1] }
  0xdc   : > { %v7756_v33 = vpop.f32.mrf.mxu0  ;;  %6800 = vmatprep.mubr.msk.bf16.mxu0 %vm347_vm1, %v6982_v4  ;;  %v7850_v38 = vsel %vm7205_vm6, %v6147_v16, %v3389_v27  ;;  %v3391_v40 = vrot.slane %v3389_v27, 4  ;;  %v7864_v48 = vsel %vm7205_vm6, %v3384_v32, %v3385_v13  ;;  %v6149_v54 = vrot.slane %v6131_v20, 9  ;;  %v6330_v56 = vld [vmem:[%s7146_s7 + $0x1c] sm:$0xf]  ;;  %v6331_v21 = vld [vmem:[%s7146_s7 + $0x20] sm:$0x1] }
  0xdd   : > { %v7769_v39 = vpop.f32.mrf.mxu1  ;;  %6767 = vmatmul.mubr.msk.bf16.gmra.mxu1 %vm347_vm1, %v6156_v22  ;;  %v7881_v59 = vsel %vm7205_vm6, %v6148_v35, %v3396_v24  ;;  %v3398_v60 = vrot.slane %v3396_v24, 4  ;;  %v3403_v2 = vrot.slane %v6132_v28, 5  ;;  %v3406_v4 = vrot.slane %v6133_v41, 5 }
  0xde   : > { %v7783_v47 = vpop.f32.mrf.mxu0  ;;  %6770 = vmatprep.mubr.msk.bf16.mxu1 %vm347_vm1, %v6157_v29  ;;  %v7877_v22 = vsel %vm7205_vm6, %v3391_v40, %v3392_v34  ;;  %v4238_v7 = vshrl.u32 %v6248_v43, 16  ;;  %v4241_v13 = vshll.u32 %v6248_v43, 16  ;;  %v4247_v16 = vshll.u32 %v6249_v57, 16 }
  0xdf   : > { %v7793_v53 = vpop.f32.mrf.mxu1  ;;  %v7896_v12 = vsel %vm7205_vm6, %v3398_v60, %v3399_v49  ;;  %v4251_v20 = vshrl.u32 %v6249_v57, 16  ;;  %v7905_v32 = vsel %vm7205_vm6, %v6149_v54, %v3403_v2  ;;  %v3405_v34 = vrot.slane %v3403_v2, 4  ;;  %v6251_v57 = vld [vmem:[%s7146_s7 + $0x24] sm:$0xf] }
  0xe0   : > { %v7804_v63 = vpop.f32.mrf.mxu0  ;;  %v4240_v35 = vrot.slane %v4238_v7, 4  ;;  %v4243_v24 = vrot.slane %v4241_v13, 5  ;;  %v4249_v41 = vrot.slane %v4247_v16, 5  ;;  %v4257_v49 = vshll.u32 %v6250_v61, 16  ;;  %v6252_v7 = vld [vmem:[%s7146_s7 + $0x28] sm:$0xf] }
  0xe1   : > { %v7814_v6 = vpop.f32.mrf.mxu1  ;;  %v4253_v43 = vrot.slane %v4251_v20, 4  ;;  %v7915_v28 = vsel %vm7205_vm6, %v3405_v34, %v3406_v4  ;;  %v6377_v54 = vrot.slane %v6329_v15, 9  ;;  %v5077_v29 = vrot.slane %v6330_v56, 5  ;;  %v6332_v34 = vld [vmem:[%s7146_s7 + $0x24] sm:$0xe] }
  0xe2   : > { %v7818_v10 = vpop.f32.mrf.mxu0  ;;  %v5080_v2 = vrot.slane %v6331_v21, 5  ;;  %v4259_v20 = vrot.slane %v4257_v49, 5  ;;  %v4265_v21 = vshll.u32 %v6251_v57, 16  ;;  %v6334_v49 = vld [vmem:[%s7146_s7 + $0x2c] sm:$0x1]  ;;  %v4281_v18 = vshll.u32 %v6253_v14, 16 }
  0xe3   : > { %v7825_v23 = vpop.f32.mrf.mxu1  ;;  %6801 = vmatmul.mubr.msk.bf16.gmra.mxu0 %vm347_vm1, %v6983_v26  ;;  %v4244_v26 = vor.u32 %v4243_v24, %v4240_v35  ;;  %v4254_v16 = vor.u32 %v4253_v43, %v4249_v41  ;;  %v7932_v4 = vsel %vm7205_vm6, %v6377_v54, %v5077_v29  ;;  %v5079_v56 = vrot.slane %v5077_v29, 4  ;;  %v6333_v35 = vld [vmem:[%s7146_s7 + $0x28] sm:$0xf]  ;;  %v6985_v29 = vld [vmem:[%s7146_s7 + $0x6c] sm:$0xff]  }
  0xe4   : > { %8891 = vst [vmem:[#allocation6_spill] sm:$0xff] %v7825_v23  ;;  %v7835_v19 = vpop.f32.mrf.mxu0  ;;  %6804 = vmatprep.mubr.msk.bf16.mxu0 %vm347_vm1, %v6984_v8  ;;  %v4262_v8 = vshrl.u32 %v6251_v57, 16  ;;  %v4271_v24 = vshll.u32 %v6252_v7, 16  ;;  %v4275_v43 = vshrl.u32 %v6252_v7, 16  ;;  %v4267_v44 = vrot.slane %v4265_v21, 5 }
  0xe5   : > { %v7842_v36 = vpop.f32.mrf.mxu1  ;;  %6771 = vmatmul.mubr.msk.bf16.gmra.mxu1 %vm347_vm1, %v6158_v50  ;;  %v4245_v17 = vrot.slane %v4244_v26, 4  ;;  %v4255_v50 = vrot.slane %v4254_v16, 4  ;;  %v7948_v57 = vsel %vm7205_vm6, %v5079_v56, %v5080_v2  ;;  %v6255_v2 = vld [vmem:[%s7146_s7 + $0x34] sm:$0xf] }
  0xe6   : > { %8892 = vst [vmem:[#allocation7_spill] sm:$0xff] %v7842_v36  ;;  %v7860_v46 = vpop.f32.mrf.mxu0  ;;  %6774 = vmatprep.mubr.msk.bf16.mxu1 %vm347_vm1, %v6159_v58  ;;  %v4264_v61 = vrot.slane %v4262_v8, 4  ;;  %v6986_v58 = vld [vmem:[%s7146_s7 + $0x78] sm:$0xff]   ;;  %v4273_v5 = vrot.slane %v4271_v24, 5  ;;  %v4277_v21 = vrot.slane %v4275_v43, 4 }
  0xe7   : > { %v7871_v3 = vpop.f32.mrf.mxu1  ;;  %v4250_v26 = vsel %vm7219_vm7, %v4245_v17, %v4249_v41  ;;  %v4260_v7 = vsel %vm7219_vm7, %v4255_v50, %v4259_v20  ;;  %v5084_v41 = vrot.slane %v6333_v35, 5  ;;  %v5087_v17 = vrot.slane %v6334_v49, 5  ;;  %v6256_v20 = vld [vmem:[%s7146_s7 + $0x38] sm:$0x1] }
  0xe8   : > { %8893 = vst [vmem:[#allocation8_spill] sm:$0xff] %v7871_v3  ;;  %v7886_v1 = vpop.f32.mrf.mxu0  ;;  %v7963_v8 = vcombine.low %v4250_v26, %v4260_v7  ;;  %v4268_v14 = vor.u32 %v4267_v44, %v4264_v61  ;;  %v4286_v50 = vshrl.u32 %v6254_v51, 16  ;;  %v4289_v26 = vshll.u32 %v6254_v51, 16  ;;  %v6335_v44 = vld [vmem:[%s7146_s7 + $0x30] sm:$0xe] }
  0xe9   : > { %v7892_v9 = vpop.f32.mrf.mxu1  ;;  %v4295_v7 = vshll.u32 %v6255_v2, 16  ;;  %v5086_v35 = vrot.slane %v5084_v41, 4  ;;  %v4299_v49 = vshrl.u32 %v6255_v2, 16  ;;  %v8902_v2 = vcombine.low %v7808_v0, %v7822_v11 }
  0xea   : > { %8894 = vst [vmem:[#allocation9_spill] sm:$0xff] %v7892_v9  ;;  %v7899_v27 = vpop.f32.mrf.mxu0  ;;  %v4269_v16 = vrot.slane %v4268_v14, 4  ;;  %v4288_v43 = vrot.slane %v4286_v50, 4 }
  0xeb   : > { %v7907_v40 = vpop.f32.mrf.mxu1  ;;  %6805 = vmatmul.mubr.msk.bf16.gmra.mxu0 %vm347_vm1, %v6985_v29  ;;  %v6336_v29 = vld [vmem:[%s7146_s7 + $0x34] sm:$0xf] }
  0xec   : > { %8895 = vst [vmem:[#allocation10_spill] sm:$0xff] %v7907_v40  ;;  %v7911_v60 = vpop.f32.mrf.mxu0  ;;  %v4278_v40 = vor.u32 %v4277_v21, %v4273_v5  ;;  %6808 = vmatprep.mubr.msk.bf16.mxu0 %vm347_vm1, %v6986_v58  ;;  %v4274_v58 = vsel %vm7219_vm7, %v4269_v16, %v4273_v5  ;;  %v4291_v21 = vrot.slane %v4289_v26, 5  ;;  %v6379_v5 = vrot.slane %v6335_v44, 9  ;;  %v6987_v16 = vld [vmem:[%s7146_s7 + $0x84] sm:$0xff]  }
  0xed   : > { %v7919_v13 = vpop.f32.mrf.mxu1 }
  0xee   : > { %8896 = vst [vmem:[#allocation11_spill] sm:$0xff] %v7919_v13  ;;  %v7928_v15 = vpop.f32.mrf.mxu0  ;;  %v6378_v13 = vrot.slane %v6332_v34, 9  ;;  %v4279_v14 = vrot.slane %v4278_v40, 4  ;;  %v6257_v40 = vld [vmem:[%s7146_s7 + $0x3c] sm:$0xf]  ;;  %v4292_v11 = vor.u32 %v4291_v21, %v4288_v43 }
  0xef   : > { %v7940_v30 = vpop.f32.mrf.mxu1 }
  0xf0   : > { %8897 = vst [vmem:[#allocation12_spill] sm:$0xff] %v7940_v30  ;;  %v7944_v54 = vpop.f32.mrf.mxu0  ;;  %v4283_v30 = vrot.slane %v4281_v18, 5  ;;  %v7977_v34 = vsel %vm7205_vm6, %v6378_v13, %v5084_v41  ;;  %v8901_v18 = vcombine.low %v7781_v45, %v7802_v62  ;;  %v4297_v13 = vrot.slane %v4295_v7, 5  ;;  %v6337_v41 = vld [vmem:[%s7146_s7 + $0x38] sm:$0x1] }
  0xf1   : > { %v7952_v31 = vpop.f32.mrf.mxu1  ;;  %v7997_v45 = vsel %vm7205_vm6, %v5086_v35, %v5087_v17  ;;  %v4301_v62 = vrot.slane %v4299_v49, 4  ;;  %v5094_v49 = vrot.slane %v6337_v41, 5  ;;  %v4293_v3 = vrot.slane %v4292_v11, 4  ;;  %v6338_v41 = vld [vmem:[%s7146_s7 + $0x3c] sm:$0xe] }
  0xf2   : > { %8898 = vst [vmem:[#allocation13_spill] sm:$0xff] %v7952_v31  ;;  %v7961_v56 = vpop.f32.mrf.mxu0  ;;  %6775 = vmatmul.mubr.msk.bf16.gmra.mxu1 %vm347_vm1, %v8901_v18  ;;  %v4305_v18 = vshll.u32 %v6256_v20, 16  ;;  %v4284_v7 = vsel %vm7219_vm7, %v4279_v14, %v4283_v30 }
  0xf3   : > { %v7965_v31 = vpop.f32.mrf.mxu1  ;;  %6778 = vmatprep.mubr.msk.bf16.mxu1 %vm347_vm1, %v8902_v2  ;;  %v5091_v2 = vrot.slane %v6336_v29, 5  ;;  %v8011_v20 = vcombine.low %v4274_v58, %v4284_v7  ;;  %v4302_v44 = vor.u32 %v4301_v62, %v4297_v13  ;;  %v4310_v29 = vshrl.u32 %v6257_v40, 16  ;;  %6809 = vmatmul.mubr.msk.bf16.gmra.mxu0 %vm347_vm1, %v6987_v16 }
  0xf4   : > { %8899 = vst [vmem:[#allocation14_spill] sm:$0xff] %v7965_v31  ;;  %v7969_v24 = vpop.f32.mrf.mxu0  ;;  %v4307_v35 = vrot.slane %v4305_v18, 5  ;;  %v6259_v31 = vld [vmem:[%s7146_s7 + $0x44] sm:$0x1]  ;;  %v4313_v58 = vshll.u32 %v6257_v40, 16  ;;  %v4298_v11 = vsel %vm7219_vm7, %v4293_v3, %v4297_v13  ;;  %v6380_v16 = vrot.slane %v6338_v41, 9 }
  0xf5   : > { %v7973_v61 = vpop.f32.mrf.mxu1  ;;  %v8018_v30 = vsel %vm7205_vm6, %v6379_v5, %v5091_v2  ;;  %v5093_v43 = vrot.slane %v5091_v2, 4  ;;  %v4303_v21 = vrot.slane %v4302_v44, 4  ;;  %v4312_v2 = vrot.slane %v4310_v29, 4  ;;  %v6260_v13 = vld [vmem:[%s7146_s7 + $0x48] sm:$0xf] }
  0xf6   : > { %8900 = vst [vmem:[#allocation15_spill] sm:$0xff] %v7973_v61  ;;  %v7984_v51 = vpop.f32.mrf.mxu0  ;;  %v6988_v61 = vld [vmem:[%s7146_s7 + $0x90] sm:$0xff]   ;;  %v4329_v0 = vshll.u32 %v6259_v31, 16  ;;  %v4315_v44 = vrot.slane %v4313_v58, 5 }
  0xf7   : > { %v7993_v50 = vpop.f32.mrf.mxu1  ;;  %v8028_v5 = vsel %vm7205_vm6, %v5093_v43, %v5094_v49  ;;  %6812 = vmatprep.mubr.msk.bf16.mxu0 %vm347_vm1, %v6988_v61  ;;  %v8906_v49 = vcombine.low %v7831_v25, %v7846_v37 }
  0xf8   : > { %8903 = vst [vmem:[#allocation16_spill] sm:$0xff] %v7993_v50  ;;  %v8001_v26 = vpop.f32.mrf.mxu0  ;;  %v6258_v50 = vld [vmem:[%s7146_s7 + $0x40] sm:$0xf]  ;;  %v4331_v29 = vrot.slane %v4329_v0, 5  ;;  %v4334_v0 = vshrl.u32 %v6260_v13, 16 }
  0xf9   : > { %v8009_v17 = vpop.f32.mrf.mxu1  ;;  %v4319_v7 = vshll.u32 %v6258_v50, 16  ;;  %v4323_v62 = vshrl.u32 %v6258_v50, 16  ;;  %v4308_v50 = vsel %vm7219_vm7, %v4303_v21, %v4307_v35  ;;  %v8907_v21 = vcombine.low %v7839_v52, %v7864_v48 }
  0xfa   : > { %8904 = vst [vmem:[#allocation17_spill] sm:$0xff] %v8009_v17  ;;  %v8014_v9 = vpop.f32.mrf.mxu0  ;;  %v6339_v17 = vld [vmem:[%s7146_s7 + $0x40] sm:$0xf]  ;;  %6779 = vmatmul.mubr.msk.bf16.gmra.mxu1 %vm347_vm1, %v8906_v49  ;;  %v8043_v43 = vcombine.low %v4298_v11, %v4308_v50  ;;  %v6261_v50 = vld [vmem:[%s7146_s7 + $0x4c] sm:$0xf] }
  0xfb   : > { %v8020_v14 = vpop.f32.mrf.mxu1  ;;  %v4321_v3 = vrot.slane %v4319_v7, 5  ;;  %v4325_v35 = vrot.slane %v4323_v62, 4  ;;  %6782 = vmatprep.mubr.msk.bf16.mxu1 %vm347_vm1, %v8907_v21  ;;  %v4316_v7 = vor.u32 %v4315_v44, %v4312_v2  ;;  %v5098_v25 = vrot.slane %v6339_v17, 5  ;;  %v6989_v49 = vld [vmem:[%s7146_s7 + $0x9c] sm:$0xff]   ;;  %v6990_v62 = vld [vmem:[%s7146_s7 + $0xa8] sm:$0xff]  }
  0xfc   : > { %8905 = vst [vmem:[#allocation18_spill] sm:$0xff] %v8020_v14  ;;  %v6658_v18 = vpop.f32.mrf.mxu0  ;;  %v6340_v14 = vld [vmem:[%s7146_s7 + $0x44] sm:$0x1]  ;;  %v4336_v44 = vrot.slane %v4334_v0, 4  ;;  %6813 = vmatmul.mubr.msk.bf16.gmra.mxu0 %vm347_vm1, %v6989_v49 }
  0xfd   : > { %v6624_v40 = vpop.f32.mrf.mxu1  ;;  %v5101_v37 = vrot.slane %v6340_v14, 5  ;;  %v4317_v52 = vrot.slane %v4316_v7, 4  ;;  %v8057_v48 = vsel %vm7205_vm6, %v6380_v16, %v5098_v25  ;;  %v5100_v17 = vrot.slane %v5098_v25, 4  ;;  %v6262_v16 = vld [vmem:[%s7146_s7 + $0x50] sm:$0x1]  ;;  %6816 = vmatprep.mubr.msk.bf16.mxu0 %vm347_vm1, %v6990_v62 }
  0xfe   : > { %v1356_v31 = vadd.f32 %v6624_v40, %v7756_v33  ;;  %v1796_v61 = vpop.f32.mrf.mxu0  ;;  %v4326_v40 = vor.u32 %v4325_v35, %v4321_v3  ;;  %v4337_v14 = vshll.u32 %v6260_v13, 16  ;;  %v4343_v13 = vshll.u32 %v6261_v50, 16  ;;  %v6342_v25 = vld [vmem:[%s7146_s7 + $0x4c] sm:$0xf] }
  0xff   : > { %v1227_v58 = vpop.f32.mrf.mxu1  ;;  %v4322_v35 = vsel %vm7219_vm7, %v4317_v52, %v4321_v3  ;;  %v8066_v21 = vsel %vm7205_vm6, %v5100_v17, %v5101_v37  ;;  %v6343_v37 = vld [vmem:[%s7146_s7 + $0x50] sm:$0x1]  ;;  %v6263_v17 = vld [vmem:[%s7146_s7 + $0x54] sm:$0xf]  ;;  %v4353_v62 = vshll.u32 %v6262_v16, 16 }
 0x100   : > { %v8050_v36 = vadd.f32 %v6658_v18, %v1356_v31  ;;  %v1354_v33 = vadd.f32 %v1227_v58, %v7783_v47  ;;  %v6659_v11 = vpop.f32.mrf.mxu0  ;;  %v4327_v2 = vrot.slane %v4326_v40, 4  ;;  %v4339_v58 = vrot.slane %v4337_v14, 5 }
 0x101   : > { %v6625_v23 = vpop.f32.mrf.mxu1  ;;  %v6397_v3 = vcombine.low %v8057_v48, %v8066_v21  ;;  %v4345_v49 = vrot.slane %v4343_v13, 5  ;;  %v4355_v16 = vrot.slane %v4353_v62, 5  ;;  %v6264_v13 = vld [vmem:[%s7146_s7 + $0x58] sm:$0xf] }
 0x102   : > { %v8059_v41 = vadd.f32 %v1796_v61, %v1354_v33  ;;  %v1357_v18 = vadd.f32 %v6625_v23, %v7804_v63  ;;  %v1799_v47 = vpop.f32.mrf.mxu0  ;;  %v6341_v61 = vld [vmem:[%s7146_s7 + $0x48] sm:$0xe]  ;;  %v4332_v7 = vsel %vm7219_vm7, %v4327_v2, %v4331_v29  ;;  %v4340_v52 = vor.u32 %v4339_v58, %v4336_v44  ;;  %v6991_v58 = vld [vmem:[%s7146_s7 + $0xb4] sm:$0xff]  }
 0x103   : > { %v1230_v31 = vpop.f32.mrf.mxu1  ;;  %v8081_v0 = vcombine.low %v4322_v35, %v4332_v7  ;;  %v8909_v2 = vcombine.low %v7881_v59, %v7896_v12 }
 0x104   : > { %v8071_v63 = vadd.f32 %v6659_v11, %v1357_v18  ;;  %v1355_v23 = vadd.f32 %v1230_v31, %v7818_v10  ;;  %v6662_v40 = vpop.f32.mrf.mxu0  ;;  %v4347_v11 = vshrl.u32 %v6261_v50, 16  ;;  %v8908_v10 = vcombine.low %v7850_v38, %v7877_v22  ;;  %6817 = vmatmul.mubr.msk.bf16.gmra.mxu0 %vm347_vm1, %v6991_v58 }
 0x105   : > { %v6628_v33 = vpop.f32.mrf.mxu1  ;;  %v6381_v18 = vrot.slane %v6341_v61, 9  ;;  %v4341_v31 = vrot.slane %v4340_v52, 4  ;;  %v5105_v38 = vrot.slane %v6342_v25, 5  ;;  %v5108_v22 = vrot.slane %v6343_v37, 5  ;;  %v6265_v52 = vld [vmem:[%s7146_s7 + $0x5c] sm:$0x1] }
 0x106   : > { %6783 = vmatmul.mubr.msk.bf16.gmra.mxu1 %vm347_vm1, %v8908_v10  ;;  %v8088_v29 = vadd.f32 %v1799_v47, %v1355_v23  ;;  %v1360_v14 = vadd.f32 %v6628_v33, %v7835_v19  ;;  %v1812_v44 = vpop.f32.mrf.mxu0  ;;  %v4349_v35 = vrot.slane %v4347_v11, 4  ;;  %v4358_v61 = vshrl.u32 %v6263_v17, 16  ;;  %v6992_v23 = vld [vmem:[%s7146_s7 + $0xc0] sm:$0xff]  }
 0x107   : > { %6786 = vmatprep.mubr.msk.bf16.mxu1 %vm347_vm1, %v8909_v2  ;;  %v1243_v50 = vpop.f32.mrf.mxu1  ;;  %v4346_v7 = vsel %vm7219_vm7, %v4341_v31, %v4345_v49  ;;  %v8105_v25 = vsel %vm7205_vm6, %v6381_v18, %v5105_v38  ;;  %v5107_v37 = vrot.slane %v5105_v38, 4  ;;  %v4361_v10 = vshll.u32 %v6263_v17, 16  ;;  %v6345_v31 = vld [vmem:[%s7146_s7 + $0x58] sm:$0xf]  ;;  %v6346_v38 = vld [vmem:[%s7146_s7 + $0x5c] sm:$0x1]  ;;  %6820 = vmatprep.mubr.msk.bf16.mxu0 %vm347_vm1, %v6992_v23 }
 0x108   : > { %v8096_v47 = vadd.f32 %v6662_v40, %v1360_v14  ;;  %v1358_v19 = vadd.f32 %v1243_v50, %v7860_v46  ;;  %v6663_v12 = vpop.f32.mrf.mxu0  ;;  %v4350_v33 = vor.u32 %v4349_v35, %v4345_v49  ;;  %v4360_v11 = vrot.slane %v4358_v61, 4  ;;  %v6344_v14 = vld [vmem:[%s7146_s7 + $0x54] sm:$0xe] }
 0x109   : > { %v6629_v59 = vpop.f32.mrf.mxu1  ;;  %v8114_v49 = vsel %vm7205_vm6, %v5107_v37, %v5108_v22  ;;  %v4367_v50 = vshll.u32 %v6264_v13, 16  ;;  %v4371_v18 = vshrl.u32 %v6264_v13, 16  ;;  %v4363_v35 = vrot.slane %v4361_v10, 5 }
 0x10a   : > { %v8107_v40 = vadd.f32 %v1812_v44, %v1358_v19  ;;  %v1361_v46 = vadd.f32 %v6629_v59, %v7886_v1  ;;  %v4351_v2 = vrot.slane %v4350_v33, 4  ;;  %v6398_v17 = vcombine.low %v8105_v25, %v8114_v49  ;;  %v6266_v19 = vld [vmem:[%s7146_s7 + $0x60] sm:$0xf]  ;;  %v1815_v22 = vpop.f32.mrf.mxu0 }
 0x10b   : > { %v1246_v62 = vpop.f32.mrf.mxu1  ;;  %v4369_v61 = vrot.slane %v4367_v50, 5  ;;  %v4373_v59 = vrot.slane %v4371_v18, 4  ;;  %v4377_v58 = vshll.u32 %v6265_v52, 16  ;;  %v6382_v23 = vrot.slane %v6344_v14, 9 }
 0x10c   : > { %v8118_v44 = vadd.f32 %v6663_v12, %v1361_v46  ;;  %v1359_v1 = vadd.f32 %v1246_v62, %v7899_v27  ;;  %v4356_v13 = vsel %vm7219_vm7, %v4351_v2, %v4355_v16  ;;  %v6267_v12 = vld [vmem:[%s7146_s7 + $0x64] sm:$0xf]  ;;  %v8910_v27 = vcombine.low %v7905_v32, %v7915_v28  ;;  %v6993_v2 = vld [vmem:[%s7146_s7 + $0xcc] sm:$0xff]  }
 0x10d   : > { %v8135_v37 = vcombine.low %v4346_v7, %v4356_v13  ;;  %v4364_v46 = vor.u32 %v4363_v35, %v4360_v11  ;;  %v4374_v10 = vor.u32 %v4373_v59, %v4369_v61  ;;  %v4379_v16 = vrot.slane %v4377_v58, 5  ;;  %v6347_v59 = vld [vmem:[%s7146_s7 + $0x60] sm:$0xe]  ;;  %6821 = vmatmul.mubr.msk.bf16.gmra.mxu0 %vm347_vm1, %v6993_v2 }
 0x10e   : > { %6787 = vmatmul.mubr.msk.bf16.gmra.mxu1 %vm347_vm1, %v8910_v27  ;;  %v8133_v33 = vadd.f32 %v1815_v22, %v1359_v1  ;;  %v5112_v62 = vrot.slane %v6345_v31, 5  ;;  %v5115_v52 = vrot.slane %v6346_v38, 5  ;;  %v4382_v28 = vshrl.u32 %v6266_v19, 16  ;;  %v6632_v1 = vpop.f32.mrf.mxu1  ;;  %v6666_v22 = vpop.f32.mrf.mxu0  ;;  %v6268_v38 = vld [vmem:[%s7146_s7 + $0x68] sm:$0x1] }
 0x10f   : > { %6826 = vmatprep.mubr.msk.bf16.mxu1 %vm347_vm1, %v7963_v8  ;;  %v4365_v50 = vrot.slane %v4364_v46, 4  ;;  %v4385_v32 = vshll.u32 %v6266_v19, 16  ;;  %v4391_v18 = vshll.u32 %v6267_v12, 16  ;;  %v4375_v7 = vrot.slane %v4374_v10, 4 }
 0x110   : > { %v8142_v11 = vsel %vm7205_vm6, %v6382_v23, %v5112_v62  ;;  %v5114_v8 = vrot.slane %v5112_v62, 4  ;;  %v4395_v14 = vshrl.u32 %v6267_v12, 16  ;;  %v1364_v31 = vadd.f32 %v6632_v1, %v7911_v60  ;;  %v1259_v46 = vpop.f32.mrf.mxu1  ;;  %v1828_v23 = vpop.f32.mrf.mxu0  ;;  %v6348_v60 = vld [vmem:[%s7146_s7 + $0x64] sm:$0xf]  ;;  %v6349_v62 = vld [vmem:[%s7146_s7 + $0x68] sm:$0x1] }
 0x111   : > { %v4370_v35 = vsel %vm7219_vm7, %v4365_v50, %v4369_v61  ;;  %v4384_v13 = vrot.slane %v4382_v28, 4  ;;  %v4387_v19 = vrot.slane %v4385_v32, 5  ;;  %v4380_v58 = vsel %vm7219_vm7, %v4375_v7, %v4379_v16  ;;  %v6269_v32 = vld [vmem:[%s7146_s7 + $0x6c] sm:$0xf] }
 0x112   : > { %v8153_v27 = vsel %vm7205_vm6, %v5114_v8, %v5115_v52  ;;  %v4393_v12 = vrot.slane %v4391_v18, 5  ;;  %v4397_v10 = vrot.slane %v4395_v14, 4  ;;  %v8158_v61 = vadd.f32 %v6666_v22, %v1364_v31  ;;  %v6633_v18 = vpop.f32.mrf.mxu1  ;;  %v6667_v1 = vpop.f32.mrf.mxu0 }
 0x113   : > { %v8160_v50 = vcombine.low %v4370_v35, %v4380_v58  ;;  %v6399_v28 = vcombine.low %v8142_v11, %v8153_v27  ;;  %v1362_v16 = vadd.f32 %v1259_v46, %v7928_v15  ;;  %v8911_v52 = vcombine.low %v7932_v4, %v7948_v57 }
 0x114   : > { %v4388_v7 = vor.u32 %v4387_v19, %v4384_v13  ;;  %v4398_v2 = vor.u32 %v4397_v10, %v4393_v12  ;;  %v4401_v22 = vshll.u32 %v6268_v38, 16  ;;  %v6383_v8 = vrot.slane %v6347_v59, 9  ;;  %v1262_v57 = vpop.f32.mrf.mxu1  ;;  %v6270_v19 = vld [vmem:[%s7146_s7 + $0x70] sm:$0xf]  ;;  %v1831_v10 = vpop.f32.mrf.mxu0 }
 0x115   : > { %6860 = vmatprep.mubr.msk.bf16.mxu0 %vm347_vm1, %v8911_v52  ;;  %v8172_v14 = vadd.f32 %v1828_v23, %v1362_v16  ;;  %v1365_v15 = vadd.f32 %v6633_v18, %v7944_v54  ;;  %v5119_v31 = vrot.slane %v6348_v60, 5  ;;  %v5122_v4 = vrot.slane %v6349_v62, 5  ;;  %v6271_v23 = vld [vmem:[%s7146_s7 + $0x74] sm:$0x1]  ;;  %v6351_v18 = vld [vmem:[%s7146_s7 + $0x70] sm:$0xf] }
 0x116   : > { %6827 = vmatmul.mubr.msk.bf16.vlgmr.msra.gmra.mxu1 %vm347_vm1, %v8011_v20  ;;  %v4389_v35 = vrot.slane %v4388_v7, 4  ;;  %v4399_v13 = vrot.slane %v4398_v2, 4  ;;  %v4403_v38 = vrot.slane %v4401_v22, 5  ;;  %v4406_v59 = vshrl.u32 %v6269_v32, 16 }
 0x117   : > { %6830 = vmatprep.mubr.msk.bf16.mxu1 %vm347_vm1, %v8043_v43  ;;  %v8178_v20 = vadd.f32 %v6667_v1, %v1365_v15  ;;  %v1363_v58 = vadd.f32 %v1262_v57, %v7961_v56  ;;  %v8183_v54 = vsel %vm7205_vm6, %v6383_v8, %v5119_v31  ;;  %v5121_v46 = vrot.slane %v5119_v31, 4  ;;  %v6350_v43 = vld [vmem:[%s7146_s7 + $0x6c] sm:$0xe]  ;;  %v6352_v56 = vld [vmem:[%s7146_s7 + $0x74] sm:$0x1] }
 0x118   : > { %v4394_v60 = vsel %vm7219_vm7, %v4389_v35, %v4393_v12  ;;  %v4404_v62 = vsel %vm7219_vm7, %v4399_v13, %v4403_v38  ;;  %v4408_v16 = vrot.slane %v4406_v59, 4  ;;  %v4409_v52 = vshll.u32 %v6269_v32, 16  ;;  %v6272_v8 = vld [vmem:[%s7146_s7 + $0x78] sm:$0xf] }
 0x119   : > { %v8193_v1 = vadd.f32 %v1831_v10, %v1363_v58  ;;  %v8195_v7 = vcombine.low %v4394_v60, %v4404_v62  ;;  %v8199_v2 = vsel %vm7205_vm6, %v5121_v46, %v5122_v4  ;;  %v4415_v22 = vshll.u32 %v6270_v19, 16  ;;  %v6273_v58 = vld [vmem:[%s7146_s7 + $0x7c] sm:$0xf]  ;;  %v6636_v46 = vpop.f32.mrf.mxu1  ;;  %v6670_v10 = vpop.f32.mrf.mxu0 }
 0x11a   : > { %v6400_v12 = vcombine.low %v8183_v54, %v8199_v2  ;;  %v4411_v15 = vrot.slane %v4409_v52, 5  ;;  %v4419_v31 = vshrl.u32 %v6270_v19, 16  ;;  %v4425_v57 = vshll.u32 %v6271_v23, 16 }
 0x11b   : > { %v8912_v32 = vcombine.low %v7977_v34, %v7997_v45  ;;  %v4417_v35 = vrot.slane %v4415_v22, 5  ;;  %v6384_v13 = vrot.slane %v6350_v43, 9  ;;  %v5126_v38 = vrot.slane %v6351_v18, 5  ;;  %v1275_v52 = vpop.f32.mrf.mxu1  ;;  %v1844_v18 = vpop.f32.mrf.mxu0 }
 0x11c   : > { %v5129_v59 = vrot.slane %v6352_v56, 5  ;;  %v8913_v4 = vcombine.low %v8018_v30, %v8028_v5  ;;  %v4412_v19 = vor.u32 %v4411_v15, %v4408_v16  ;;  %v4421_v23 = vrot.slane %v4419_v31, 4  ;;  %v6274_v56 = vld [vmem:[%s7146_s7 + $0x80] sm:$0x1] }
 0x11d   : > { %6861 = vmatmul.mubr.msk.bf16.vlgmr.msra.gmra.mxu0 %vm347_vm1, %v8912_v32  ;;  %v4427_v60 = vrot.slane %v4425_v57, 5  ;;  %v4430_v62 = vshrl.u32 %v6272_v8, 16  ;;  %v1368_v34 = vadd.f32 %v6636_v46, %v7969_v24  ;;  %v8218_v45 = vsel %vm7205_vm6, %v6384_v13, %v5126_v38  ;;  %v6353_v57 = vld [vmem:[%s7146_s7 + $0x78] sm:$0xe]  ;;  %v6354_v32 = vld [vmem:[%s7146_s7 + $0x7c] sm:$0xf]  ;;  %v6671_v46 = vpop.f32.mrf.mxu0 }
 0x11e   : > { %6864 = vmatprep.mubr.msk.bf16.mxu0 %vm347_vm1, %v8913_v4  ;;  %6831 = vmatmul.mubr.msk.bf16.gmra.mxu1 %vm347_vm1, %v8081_v0  ;;  %v5128_v30 = vrot.slane %v5126_v38, 4  ;;  %v4433_v5 = vshll.u32 %v6272_v8, 16  ;;  %v4413_v43 = vrot.slane %v4412_v19, 4  ;;  %v4422_v16 = vor.u32 %v4421_v23, %v4417_v35  ;;  %v6637_v4 = vpop.f32.mrf.mxu1 }
 0x11f   : > { %6834 = vmatprep.mubr.msk.bf16.mxu1 %vm347_vm1, %v8135_v37  ;;  %v4432_v22 = vrot.slane %v4430_v62, 4  ;;  %v4439_v0 = vshll.u32 %v6273_v58, 16  ;;  %v8223_v15 = vadd.f32 %v6670_v10, %v1368_v34  ;;  %v1366_v31 = vadd.f32 %v1275_v52, %v7984_v51  ;;  %v6355_v62 = vld [vmem:[%s7146_s7 + $0x80] sm:$0x1] }
 0x120   : > { %v8227_v24 = vsel %vm7205_vm6, %v5128_v30, %v5129_v59  ;;  %v4435_v8 = vrot.slane %v4433_v5, 5  ;;  %v4418_v37 = vsel %vm7219_vm7, %v4413_v43, %v4417_v35  ;;  %v4423_v13 = vrot.slane %v4422_v16, 4  ;;  %v1278_v34 = vpop.f32.mrf.mxu1  ;;  %v6275_v16 = vld [vmem:[%s7146_s7 + $0x84] sm:$0xf] }
 0x121   : > { %v6401_v38 = vcombine.low %v8218_v45, %v8227_v24  ;;  %v4441_v10 = vrot.slane %v4439_v0, 5  ;;  %v8236_v19 = vadd.f32 %v1844_v18, %v1366_v31  ;;  %v1369_v59 = vadd.f32 %v6637_v4, %v8001_v26  ;;  %v6356_v31 = vld [vmem:[%s7146_s7 + $0x84] sm:$0xe]  ;;  %v6358_v4 = vld [vmem:[%s7146_s7 + $0x8c] sm:$0x1] }
 0x122   : > { %v4436_v51 = vor.u32 %v4435_v8, %v4432_v22  ;;  %v4443_v23 = vshrl.u32 %v6273_v58, 16  ;;  %v4428_v35 = vsel %vm7219_vm7, %v4423_v13, %v4427_v60  ;;  %v4449_v30 = vshll.u32 %v6274_v56, 16  ;;  %v6276_v22 = vld [vmem:[%s7146_s7 + $0x88] sm:$0xf]  ;;  %v6277_v60 = vld [vmem:[%s7146_s7 + $0x8c] sm:$0x1]  ;;  %v1847_v56 = vpop.f32.mrf.mxu0 }
 0x123   : > { %v6385_v5 = vrot.slane %v6353_v57, 9  ;;  %v5133_v43 = vrot.slane %v6354_v32, 5  ;;  %v6304_v52 = vcombine.low %v4418_v37, %v4428_v35  ;;  %v8247_v26 = vadd.f32 %v6671_v46, %v1369_v59  ;;  %v6357_v8 = vld [vmem:[%s7146_s7 + $0x88] sm:$0xf] }
 0x124   : > { %v1367_v58 = vadd.f32 %v1278_v34, %v8014_v9  ;;  %v4437_v18 = vrot.slane %v4436_v51, 4  ;;  %v4445_v0 = vrot.slane %v4443_v23, 4  ;;  %v4451_v48 = vrot.slane %v4449_v30, 5  ;;  %v6278_v23 = vld [vmem:[%s7146_s7 + $0x90] sm:$0xf]  ;;  %v6640_v34 = vpop.f32.mrf.mxu1 }
 0x125   : > { %6865 = vmatmul.mubr.msk.bf16.gmra.mxu0 %vm347_vm1, %v6397_v3  ;;  %v8258_v21 = vsel %vm7205_vm6, %v6385_v5, %v5133_v43  ;;  %v5135_v3 = vrot.slane %v5133_v43, 4  ;;  %v5136_v49 = vrot.slane %v6355_v62, 5  ;;  %v4457_v32 = vshll.u32 %v6275_v16, 16 }
 0x126   : > { %6868 = vmatprep.mubr.msk.bf16.mxu0 %vm347_vm1, %v6398_v17  ;;  %6835 = vmatmul.mubr.msk.bf16.gmra.mxu1 %vm347_vm1, %v8160_v50  ;;  %v8263_v9 = vadd.f32 %v1847_v56, %v1367_v58  ;;  %v4442_v25 = vsel %vm7219_vm7, %v4437_v18, %v4441_v10  ;;  %v4454_v17 = vshrl.u32 %v6275_v16, 16  ;;  %v4446_v57 = vor.u32 %v4445_v0, %v4441_v10  ;;  %v1291_v56 = vpop.f32.mrf.mxu1 }
 0x127   : > { %6838 = vmatprep.mubr.msk.bf16.mxu1 %vm347_vm1, %v8195_v7  ;;  %v4463_v37 = vshll.u32 %v6276_v22, 16  ;;  %v4467_v13 = vshrl.u32 %v6276_v22, 16  ;;  %v8273_v50 = vsel %vm7205_vm6, %v5135_v3, %v5136_v49  ;;  %v4473_v59 = vshll.u32 %v6277_v60, 16  ;;  %v6674_v7 = vpop.f32.mrf.mxu0  ;;  %v6279_v3 = vld [vmem:[%s7146_s7 + $0x94] sm:$0xf] }
 0x128   : > { %v4456_v46 = vrot.slane %v4454_v17, 4  ;;  %v6386_v51 = vrot.slane %v6356_v31, 9  ;;  %v4447_v62 = vrot.slane %v4446_v57, 4  ;;  %v6402_v35 = vcombine.low %v8258_v21, %v8273_v50  ;;  %v6641_v27 = vpop.f32.mrf.mxu1  ;;  %v6363_v21 = vld [vmem:[%s7146_s7 + $0xa0] sm:$0xf] }
 0x129   : > { %v4459_v10 = vrot.slane %v4457_v32, 5  ;;  %v4465_v30 = vrot.slane %v4463_v37, 5  ;;  %v1372_v5 = vadd.f32 %v6640_v34, %v7769_v39  ;;  %v4469_v43 = vrot.slane %v4467_v13, 4  ;;  %v1860_v0 = vpop.f32.mrf.mxu0  ;;  %v6280_v13 = vld [vmem:[%s7146_s7 + $0x98] sm:$0x1]  ;;  %v8914_v34 = vld [vmem:[#allocation6_spill] sm:$0xff] }
 0x12a   : > { %v4475_v16 = vrot.slane %v4473_v59, 5  ;;  %v5140_v58 = vrot.slane %v6357_v8, 5  ;;  %v4452_v18 = vsel %vm7219_vm7, %v4447_v62, %v4451_v48  ;;  %v5143_v60 = vrot.slane %v6358_v4, 5  ;;  %v6359_v59 = vld [vmem:[%s7146_s7 + $0x90] sm:$0xe] }
 0x12b   : > { %v4460_v22 = vor.u32 %v4459_v10, %v4456_v46  ;;  %v4478_v31 = vshrl.u32 %v6278_v23, 16  ;;  %v6305_v49 = vcombine.low %v4442_v25, %v4452_v18  ;;  %v8286_v39 = vadd.f32 %v6674_v7, %v1372_v5  ;;  %v6361_v10 = vld [vmem:[%s7146_s7 + $0x98] sm:$0x1]  ;;  %v6364_v50 = vld [vmem:[%s7146_s7 + $0xa4] sm:$0x1] }
 0x12c   : > { %v4470_v17 = vor.u32 %v4469_v43, %v4465_v30  ;;  %v8290_v8 = vsel %vm7205_vm6, %v6386_v51, %v5140_v58  ;;  %v5142_v57 = vrot.slane %v5140_v58, 4  ;;  %v1370_v11 = vadd.f32 %v1291_v56, %v7793_v53 }
 0x12d   : > { %6869 = vmatmul.mubr.msk.bf16.gmra.mxu0 %vm347_vm1, %v6399_v28  ;;  %v4461_v48 = vrot.slane %v4460_v22, 4  ;;  %v6675_v28 = vpop.f32.mrf.mxu0  ;;  %v4480_v25 = vrot.slane %v4478_v31, 4  ;;  %v1373_v37 = vadd.f32 %v6641_v27, %v7814_v6  ;;  %v4481_v54 = vshll.u32 %v6278_v23, 16  ;;  %v6360_v6 = vld [vmem:[%s7146_s7 + $0x94] sm:$0xf] }
 0x12e   : > { %6872 = vmatprep.mubr.msk.bf16.mxu0 %vm347_vm1, %v6400_v12  ;;  %6839 = vmatmul.mubr.msk.bf16.gmra.mxu1 %vm347_vm1, %v6304_v52  ;;  %v4471_v32 = vrot.slane %v4470_v17, 4  ;;  %v4487_v2 = vshll.u32 %v6279_v3, 16  ;;  %v8305_v12 = vsel %vm7205_vm6, %v5142_v57, %v5143_v60  ;;  %v8307_v4 = vadd.f32 %v1860_v0, %v1370_v11  ;;  %v1294_v52 = vpop.f32.mrf.mxu1 }
 0x12f   : > { %6842 = vmatprep.mubr.msk.bf16.mxu1 %vm347_vm1, %v6305_v49  ;;  %v4466_v53 = vsel %vm7219_vm7, %v4461_v48, %v4465_v30  ;;  %v4491_v46 = vshrl.u32 %v6279_v3, 16  ;;  %v6403_v23 = vcombine.low %v8290_v8, %v8305_v12  ;;  %v8315_v62 = vadd.f32 %v6675_v28, %v1373_v37  ;;  %v6281_v30 = vld [vmem:[%s7146_s7 + $0x9c] sm:$0xf]  ;;  %v1863_v43 = vpop.f32.mrf.mxu0  ;;  %v6282_v3 = vld [vmem:[%s7146_s7 + $0xa0] sm:$0xf] }
 0x130   : > { %v4476_v51 = vsel %vm7219_vm7, %v4471_v32, %v4475_v16  ;;  %v1371_v7 = vadd.f32 %v1294_v52, %v8914_v34  ;;  %v4483_v58 = vrot.slane %v4481_v54, 5  ;;  %v4489_v18 = vrot.slane %v4487_v2, 5  ;;  %v6283_v28 = vld [vmem:[%s7146_s7 + $0xa4] sm:$0x1]  ;;  %v6362_v54 = vld [vmem:[%s7146_s7 + $0x9c] sm:$0xe] }
 0x131   : > { %v6306_v5 = vcombine.low %v4466_v53, %v4476_v51  ;;  %v4493_v22 = vrot.slane %v4491_v46, 4  ;;  %v4497_v56 = vshll.u32 %v6280_v13, 16  ;;  %v6387_v0 = vrot.slane %v6359_v59, 9  ;;  %v6644_v13 = vpop.f32.mrf.mxu1  ;;  %v6678_v45 = vpop.f32.mrf.mxu0  ;;  %v8915_v53 = vld [vmem:[#allocation7_spill] sm:$0xff] }
 0x132   : > { %v8320_v60 = vadd.f32 %v1863_v43, %v1371_v7  ;;  %v5147_v16 = vrot.slane %v6360_v6, 5  ;;  %v4484_v31 = vor.u32 %v4483_v58, %v4480_v25  ;;  %v5150_v17 = vrot.slane %v6361_v10, 5 }
 0x133   : > { %v4494_v49 = vor.u32 %v4493_v22, %v4489_v18  ;;  %v4502_v48 = vshrl.u32 %v6281_v30, 16  ;;  %v4499_v57 = vrot.slane %v4497_v56, 5  ;;  %v4505_v32 = vshll.u32 %v6281_v30, 16  ;;  %v1307_v7 = vpop.f32.mrf.mxu1  ;;  %v1876_v10 = vpop.f32.mrf.mxu0  ;;  %v6284_v22 = vld [vmem:[%s7146_s7 + $0xa8] sm:$0xf] }
 0x134   : > { %v5148_v11 = vsel %vm7205_vm6, %v6387_v0, %v5147_v16  ;;  %v5149_v27 = vrot.slane %v5147_v16, 4  ;;  %v4485_v25 = vrot.slane %v4484_v31, 4  ;;  %v1376_v52 = vadd.f32 %v6644_v13, %v8915_v53  ;;  %v6285_v13 = vld [vmem:[%s7146_s7 + $0xac] sm:$0xf]  ;;  %v6286_v53 = vld [vmem:[%s7146_s7 + $0xb0] sm:$0x1] }
 0x135   : > { %6873 = vmatmul.mubr.msk.bf16.gmra.mxu0 %vm347_vm1, %v6401_v38  ;;  %v4495_v37 = vrot.slane %v4494_v49, 4  ;;  %v4504_v24 = vrot.slane %v4502_v48, 4  ;;  %v4511_v38 = vshll.u32 %v6282_v3, 16  ;;  %v4507_v46 = vrot.slane %v4505_v32, 5  ;;  %v6645_v31 = vpop.f32.mrf.mxu1  ;;  %v8916_v48 = vld [vmem:[#allocation8_spill] sm:$0xff] }
 0x136   : > { %6876 = vmatprep.mubr.msk.bf16.mxu0 %vm347_vm1, %v6402_v35  ;;  %6843 = vmatmul.mubr.msk.bf16.gmra.mxu1 %vm347_vm1, %v6306_v5  ;;  %v5151_v2 = vsel %vm7205_vm6, %v5149_v27, %v5150_v17  ;;  %v4515_v59 = vshrl.u32 %v6282_v3, 16  ;;  %v4490_v35 = vsel %vm7219_vm7, %v4485_v25, %v4489_v18  ;;  %v8345_v5 = vadd.f32 %v6678_v45, %v1376_v52  ;;  %v6679_v18 = vpop.f32.mrf.mxu0 }
 0x137   : > { %v4500_v6 = vsel %vm7219_vm7, %v4495_v37, %v4499_v57  ;;  %v6404_v51 = vcombine.low %v5148_v11, %v5151_v2  ;;  %v4513_v34 = vrot.slane %v4511_v38, 5  ;;  %v4508_v43 = vor.u32 %v4507_v46, %v4504_v24  ;;  %v8917_v11 = vld [vmem:[#allocation9_spill] sm:$0xff]  ;;  %v8918_v46 = vld [vmem:[#allocation10_spill] sm:$0xff] }
 0x138   : > { %v6307_v30 = vcombine.low %v4490_v35, %v4500_v6  ;;  %v4517_v58 = vrot.slane %v4515_v59, 4  ;;  %v4521_v56 = vshll.u32 %v6283_v28, 16  ;;  %v6388_v0 = vrot.slane %v6362_v54, 9  ;;  %v1310_v28 = vpop.f32.mrf.mxu1  ;;  %v1879_v12 = vpop.f32.mrf.mxu0 }
 0x139   : > { %v5154_v16 = vrot.slane %v6363_v21, 5  ;;  %v5157_v3 = vrot.slane %v6364_v50, 5  ;;  %v4509_v49 = vrot.slane %v4508_v43, 4  ;;  %v1374_v57 = vadd.f32 %v1307_v7, %v8916_v48  ;;  %v6365_v21 = vld [vmem:[%s7146_s7 + $0xa8] sm:$0xe] }
 0x13a   : > { %6846 = vmatprep.mubr.msk.bf16.mxu1 %vm347_vm1, %v6307_v30  ;;  %v4518_v17 = vor.u32 %v4517_v58, %v4513_v34  ;;  %v1377_v27 = vadd.f32 %v6645_v31, %v8917_v11  ;;  %v4523_v32 = vrot.slane %v4521_v56, 5  ;;  %v4526_v45 = vshrl.u32 %v6284_v22, 16  ;;  %v6366_v50 = vld [vmem:[%s7146_s7 + $0xac] sm:$0xf]  ;;  %v6287_v30 = vld [vmem:[%s7146_s7 + $0xb4] sm:$0xf]  ;;  %v6648_v48 = vpop.f32.mrf.mxu1 }
 0x13b   : > { %v5155_v25 = vsel %vm7205_vm6, %v6388_v0, %v5154_v16  ;;  %v5156_v37 = vrot.slane %v5154_v16, 4  ;;  %v4514_v24 = vsel %vm7219_vm7, %v4509_v49, %v4513_v34  ;;  %v8360_v54 = vadd.f32 %v1876_v10, %v1374_v57  ;;  %v6367_v10 = vld [vmem:[%s7146_s7 + $0xb0] sm:$0x1]  ;;  %v6288_v31 = vld [vmem:[%s7146_s7 + $0xb8] sm:$0xf]  ;;  %v6682_v57 = vpop.f32.mrf.mxu0 }
 0x13c   : > { %v4519_v38 = vrot.slane %v4518_v17, 4  ;;  %v8362_v2 = vadd.f32 %v6679_v18, %v1377_v27  ;;  %v1375_v8 = vadd.f32 %v1310_v28, %v8918_v46  ;;  %v4529_v59 = vshll.u32 %v6284_v22, 16  ;;  %v1323_v46 = vpop.f32.mrf.mxu1 }
 0x13d   : > { %6877 = vmatmul.mubr.msk.bf16.gmra.mxu0 %vm347_vm1, %v6403_v23  ;;  %v5158_v52 = vsel %vm7205_vm6, %v5156_v37, %v5157_v3  ;;  %v4528_v23 = vrot.slane %v4526_v45, 4  ;;  %v4535_v34 = vshll.u32 %v6285_v13, 16  ;;  %v4539_v7 = vshrl.u32 %v6285_v13, 16  ;;  %v8919_v37 = vld [vmem:[#allocation11_spill] sm:$0xff]  ;;  %v6289_v13 = vld [vmem:[%s7146_s7 + $0xbc] sm:$0x1] }
 0x13e   : > { %6880 = vmatprep.mubr.msk.bf16.mxu0 %vm347_vm1, %v6404_v51  ;;  %v4524_v35 = vsel %vm7219_vm7, %v4519_v38, %v4523_v32  ;;  %v6405_v6 = vcombine.low %v5155_v25, %v5158_v52  ;;  %v8375_v43 = vadd.f32 %v1879_v12, %v1375_v8  ;;  %v4531_v58 = vrot.slane %v4529_v59, 5  ;;  %v6368_v52 = vld [vmem:[%s7146_s7 + $0xb4] sm:$0xe]  ;;  %v1892_v8 = vpop.f32.mrf.mxu0 }
 0x13f   : > { %v6308_v51 = vcombine.low %v4514_v24, %v4524_v35  ;;  %v4545_v56 = vshll.u32 %v6286_v53, 16  ;;  %v4537_v0 = vrot.slane %v4535_v34, 5  ;;  %v4541_v16 = vrot.slane %v4539_v7, 4  ;;  %v6370_v35 = vld [vmem:[%s7146_s7 + $0xbc] sm:$0x1] }
 0x140   : > { %v6389_v22 = vrot.slane %v6365_v21, 9  ;;  %v5161_v3 = vrot.slane %v6366_v50, 5  ;;  %v4532_v18 = vor.u32 %v4531_v58, %v4528_v23  ;;  %v5164_v17 = vrot.slane %v6367_v10, 5  ;;  %v6369_v50 = vld [vmem:[%s7146_s7 + $0xb8] sm:$0xf]  ;;  %v6683_v58 = vpop.f32.mrf.mxu0 }
 0x141   : > { %6847 = vmatmul.mubr.msk.bf16.gmra.mxu1 %vm347_vm1, %v6308_v51  ;;  %v4547_v49 = vrot.slane %v4545_v56, 5  ;;  %v4550_v11 = vshrl.u32 %v6287_v30, 16  ;;  %v4542_v27 = vor.u32 %v4541_v16, %v4537_v0  ;;  %v1380_v28 = vadd.f32 %v6648_v48, %v8919_v37  ;;  %v6649_v51 = vpop.f32.mrf.mxu1  ;;  %v6290_v48 = vld [vmem:[%s7146_s7 + $0xc0] sm:$0xf] }
 0x142   : > { %v5162_v32 = vsel %vm7205_vm6, %v6389_v22, %v5161_v3  ;;  %v5163_v25 = vrot.slane %v5161_v3, 4  ;;  %v4533_v45 = vrot.slane %v4532_v18, 4  ;;  %v4553_v38 = vshll.u32 %v6287_v30, 16 }
 0x143   : > { %v4552_v24 = vrot.slane %v4550_v11, 4  ;;  %v4559_v53 = vshll.u32 %v6288_v31, 16  ;;  %v4543_v12 = vrot.slane %v4542_v27, 4  ;;  %v8387_v59 = vadd.f32 %v6682_v57, %v1380_v28  ;;  %v8920_v27 = vld [vmem:[#allocation12_spill] sm:$0xff] }
 0x144   : > { %v5165_v23 = vsel %vm7205_vm6, %v5163_v25, %v5164_v17  ;;  %v4563_v21 = vshrl.u32 %v6288_v31, 16  ;;  %v4538_v34 = vsel %vm7219_vm7, %v4533_v45, %v4537_v0  ;;  %v4555_v10 = vrot.slane %v4553_v38, 5  ;;  %v1326_v0 = vpop.f32.mrf.mxu1  ;;  %v8921_v25 = vld [vmem:[#allocation13_spill] sm:$0xff]  ;;  %v8922_v45 = vld [vmem:[#allocation14_spill] sm:$0xff]  ;;  %v1895_v38 = vpop.f32.mrf.mxu0 }
 0x145   : > { %6881 = vmatmul.mubr.msk.bf16.gmra.mxu0 %vm347_vm1, %v6405_v6  ;;  %v6406_v7 = vcombine.low %v5162_v32, %v5165_v23  ;;  %v4561_v30 = vrot.slane %v4559_v53, 5  ;;  %v4548_v6 = vsel %vm7219_vm7, %v4543_v12, %v4547_v49  ;;  %v4569_v16 = vshll.u32 %v6289_v13, 16  ;;  %v6291_v53 = vld [vmem:[%s7146_s7 + $0xc4] sm:$0xf] }
 0x146   : > { %v4565_v56 = vrot.slane %v4563_v21, 4  ;;  %v6390_v22 = vrot.slane %v6368_v52, 9  ;;  %v6309_v3 = vcombine.low %v4538_v34, %v4548_v6  ;;  %v4556_v31 = vor.u32 %v4555_v10, %v4552_v24  ;;  %v6373_v6 = vld [vmem:[%s7146_s7 + $0xc8] sm:$0x1] }
 0x147   : > { %6884 = vmatprep.mubr.msk.bf16.mxu0 %vm347_vm1, %v6406_v7  ;;  %v5168_v18 = vrot.slane %v6369_v50, 5  ;;  %v5171_v17 = vrot.slane %v6370_v35, 5  ;;  %v4571_v11 = vrot.slane %v4569_v16, 5  ;;  %v1378_v32 = vadd.f32 %v1323_v46, %v8920_v27  ;;  %v6292_v46 = vld [vmem:[%s7146_s7 + $0xc8] sm:$0x1] }
 0x148   : > { %v4566_v57 = vor.u32 %v4565_v56, %v4561_v30  ;;  %v1381_v49 = vadd.f32 %v6649_v51, %v8921_v25  ;;  %6850 = vmatprep.mubr.msk.bf16.mxu1 %vm347_vm1, %v6309_v3  ;;  %v4557_v37 = vrot.slane %v4556_v31, 4  ;;  %v1379_v24 = vadd.f32 %v1326_v0, %v8922_v45  ;;  %v6371_v50 = vld [vmem:[%s7146_s7 + $0xc0] sm:$0xe]  ;;  %v6372_v51 = vld [vmem:[%s7146_s7 + $0xc4] sm:$0xf]  ;;  %v6686_v0 = vpop.f32.mrf.mxu0 }
 0x149   : > { %v5169_v28 = vsel %vm7205_vm6, %v6390_v22, %v5168_v18  ;;  %v5170_v13 = vrot.slane %v5168_v18, 4  ;;  %v8404_v12 = vadd.f32 %v1892_v8, %v1378_v32  ;;  %v4574_v21 = vshrl.u32 %v6290_v48, 16  ;;  %v6652_v18 = vpop.f32.mrf.mxu1  ;;  %v6294_v25 = vld [vmem:[%s7146_s7 + $0xd0] sm:$0xf] }
 0x14a   : > { %v4567_v52 = vrot.slane %v4566_v57, 4  ;;  %v8406_v23 = vadd.f32 %v6683_v58, %v1381_v49  ;;  %v4562_v35 = vsel %vm7219_vm7, %v4557_v37, %v4561_v30  ;;  %v8414_v7 = vadd.f32 %v1895_v38, %v1379_v24  ;;  %v6293_v57 = vld [vmem:[%s7146_s7 + $0xcc] sm:$0xf]  ;;  %v1908_v24 = vpop.f32.mrf.mxu0 }
 0x14b   : > { %v5172_v34 = vsel %vm7205_vm6, %v5170_v13, %v5171_v17  ;;  %v4577_v10 = vshll.u32 %v6290_v48, 16  ;;  %v4576_v56 = vrot.slane %v4574_v21, 4  ;;  %v4583_v16 = vshll.u32 %v6291_v53, 16  ;;  %v1339_v45 = vpop.f32.mrf.mxu1 }
 0x14c   : > { %v4572_v8 = vsel %vm7219_vm7, %v4567_v52, %v4571_v11  ;;  %v6407_v58 = vcombine.low %v5169_v28, %v5172_v34  ;;  %v4587_v31 = vshrl.u32 %v6291_v53, 16  ;;  %v4593_v30 = vshll.u32 %v6292_v46, 16  ;;  %v8923_v28 = vld [vmem:[#allocation15_spill] sm:$0xff]  ;;  %v6295_v52 = vld [vmem:[%s7146_s7 + $0xd4] sm:$0x1] }
 0x14d   : > { %v6310_v22 = vcombine.low %v4562_v35, %v4572_v8  ;;  %v4579_v3 = vrot.slane %v4577_v10, 5  ;;  %v4585_v17 = vrot.slane %v4583_v16, 5  ;;  %v6391_v48 = vrot.slane %v6371_v50, 9  ;;  %v6653_v8 = vpop.f32.mrf.mxu1 }
 0x14e   : > { %6885 = vmatmul.mubr.msk.bf16.gmra.mxu0 %vm347_vm1, %v6407_v58  ;;  %v5175_v27 = vrot.slane %v6372_v51, 5  ;;  %v5178_v32 = vrot.slane %v6373_v6, 5  ;;  %v4589_v49 = vrot.slane %v4587_v31, 4  ;;  %v4595_v37 = vrot.slane %v4593_v30, 5  ;;  %v6374_v51 = vld [vmem:[%s7146_s7 + $0xcc] sm:$0xe]  ;;  %v6687_v58 = vpop.f32.mrf.mxu0 }
 0x14f   : > { %6851 = vmatmul.mubr.msk.bf16.gmra.mxu1 %vm347_vm1, %v6310_v22  ;;  %v4580_v11 = vor.u32 %v4579_v3, %v4576_v56  ;;  %v1384_v13 = vadd.f32 %v6652_v18, %v8923_v28  ;;  %v4598_v46 = vshrl.u32 %v6293_v57, 16  ;;  %v4601_v21 = vshll.u32 %v6293_v57, 16  ;;  %v6375_v6 = vld [vmem:[%s7146_s7 + $0xd0] sm:$0xf]  ;;  %v6376_v31 = vld [vmem:[%s7146_s7 + $0xd4] sm:$0x1] }
 0x150   : > { %v5176_v38 = vsel %vm7205_vm6, %v6391_v48, %v5175_v27  ;;  %v5177_v53 = vrot.slane %v5175_v27, 4  ;;  %v4590_v35 = vor.u32 %v4589_v49, %v4585_v17  ;;  %v4607_v10 = vshll.u32 %v6294_v25, 16  ;;  %s6432_s7 = sshll.u32 %s7100_s16, 12  ;;  %s8841_s16 = scalar_lea.sflag [#allocation4], %s161_s29 }
 0x151   : > { %v4581_v50 = vrot.slane %v4580_v11, 4  ;;  %v8428_v34 = vadd.f32 %v6686_v0, %v1384_v13  ;;  %v4600_v16 = vrot.slane %v4598_v46, 4  ;;  %v4603_v22 = vrot.slane %v4601_v21, 5  ;;  %v1342_v0 = vpop.f32.mrf.mxu1  ;;  %v1911_v13 = vpop.f32.mrf.mxu0  ;;  %s8834_s11 = scalar_lea.hbm %s8884_s3, %s6432_s7 }
 0x152   : > { %v5179_v56 = vsel %vm7205_vm6, %v5177_v53, %v5178_v32  ;;  %v4611_v3 = vshrl.u32 %v6294_v25, 16  ;;  %v4591_v18 = vrot.slane %v4590_v35, 4  ;;  %v4609_v48 = vrot.slane %v4607_v10, 5  ;;  %v8925_v53 = vld [vmem:[#allocation16_spill] sm:$0xff] }
 0x153   : > { %8924 = vst [vmem:[#allocation6_spill] sm:$0xff] %v8428_v34  ;;  %v4586_v30 = vsel %vm7219_vm7, %v4581_v50, %v4585_v17  ;;  %v6408_v57 = vcombine.low %v5176_v38, %v5179_v56  ;;  %v4604_v27 = vor.u32 %v4603_v22, %v4600_v16  ;;  %v4617_v49 = vshll.u32 %v6295_v52, 16  ;;  %v6692_v21 = vpop.f32.mrf.mxu1  ;;  %v8926_v56 = vld [vmem:[#allocation17_spill] sm:$0xff]  ;;  %v8927_v22 = vld [vmem:[#allocation18_spill] sm:$0xff] }
 0x154   : > { %v4613_v11 = vrot.slane %v4611_v3, 4  ;;  %v6392_v28 = vrot.slane %v6374_v51, 9  ;;  %v4596_v34 = vsel %vm7219_vm7, %v4591_v18, %v4595_v37  ;;  %v5182_v32 = vrot.slane %v6375_v6, 5 }
 0x155   : > { %6888 = vmatprep.mubr.msk.bf16.mxu0 %vm347_vm1, %v6408_v57  ;;  %v5185_v25 = vrot.slane %v6376_v31, 5  ;;  %v1382_v46 = vadd.f32 %v1339_v45, %v8925_v53  ;;  %v6311_v17 = vcombine.low %v4586_v30, %v4596_v34  ;;  %v4605_v50 = vrot.slane %v4604_v27, 4  ;;  %v2219_v37 = vpop.f32.mrf.mxu1  ;;  %v6726_v31 = vpop.f32.mrf.mxu0 }
 0x156   : > { %v4614_v38 = vor.u32 %v4613_v11, %v4609_v48  ;;  %v4619_v35 = vrot.slane %v4617_v49, 5  ;;  %v5183_v10 = vsel %vm7205_vm6, %v6392_v28, %v5182_v32  ;;  %v5184_v52 = vrot.slane %v5182_v32, 4 }
 0x157   : > { %v8443_v51 = vadd.f32 %v1908_v24, %v1382_v46  ;;  %v1385_v16 = vadd.f32 %v6653_v8, %v8926_v56  ;;  %6854 = vmatprep.mubr.msk.bf16.mxu1 %vm347_vm1, %v6311_v17  ;;  %v4610_v6 = vsel %vm7219_vm7, %v4605_v50, %v4609_v48  ;;  %v1383_v34 = vadd.f32 %v1342_v0, %v8927_v22  ;;  %v6693_v8 = vpop.f32.mrf.mxu1  ;;  %v3009_v0 = vpop.f32.mrf.mxu0 }
 0x158   : > { %v4615_v45 = vrot.slane %v4614_v38, 4  ;;  %v2348_v3 = vadd.f32 %v6692_v21, %v8050_v36  ;;  %v5186_v30 = vsel %vm7205_vm6, %v5184_v52, %v5185_v25  ;;  %v2346_v24 = vadd.f32 %v2219_v37, %v8059_v41 }
 0x159   : > { %v8453_v18 = vadd.f32 %v6687_v58, %v1385_v16  ;;  %v6409_v27 = vcombine.low %v5183_v10, %v5186_v30  ;;  %v8458_v11 = vadd.f32 %v1911_v13, %v1383_v34  ;;  %v2349_v42 = vadd.f32 %v6693_v8, %v8071_v63  ;;  %v2222_v28 = vpop.f32.mrf.mxu1  ;;  %v6727_v58 = vpop.f32.mrf.mxu0 }
 0x15a   : > { %v4620_v57 = vsel %vm7219_vm7, %v4615_v45, %v4619_v35  ;;  %v8460_v48 = vadd.f32 %v6726_v31, %v2348_v3  ;;  %v8462_v36 = vadd.f32 %v3009_v0, %v2346_v24  ;;  %v2347_v41 = vadd.f32 %v2222_v28, %v8088_v29 }
 0x15b   : > { %v6312_v49 = vcombine.low %v4610_v6, %v4620_v57  ;;  %6889 = vmatmul.mubr.msk.bf16.gmra.mxu0 %vm347_vm1, %v6409_v27  ;;  %v8468_v55 = vadd.f32 %v6727_v58, %v2349_v42  ;;  %v6696_v13 = vpop.f32.mrf.mxu1  ;;  %v3012_v32 = vpop.f32.mrf.mxu0 }
 0x15c   : > { %v2352_v25 = vadd.f32 %v6696_v13, %v8096_v47  ;;  %v8471_v53 = vadd.f32 %v3012_v32, %v2347_v41 }
 0x15d   : > { %6855 = vmatmul.mubr.msk.bf16.gmra.mxu1 %vm347_vm1, %v6312_v49  ;;  %v2235_v46 = vpop.f32.mrf.mxu1  ;;  %v6730_v21 = vpop.f32.mrf.mxu0 }
 0x15e   : > { %v2350_v63 = vadd.f32 %v2235_v46, %v8107_v40  ;;  %v8474_v17 = vadd.f32 %v6730_v21, %v2352_v25 }
 0x15f   : > { %v6697_v50 = vpop.f32.mrf.mxu1  ;;  %v3025_v38 = vpop.f32.mrf.mxu0 }
 0x160   : > { %v2353_v29 = vadd.f32 %v6697_v50, %v8118_v44  ;;  %v8477_v35 = vadd.f32 %v3025_v38, %v2350_v63 }
 0x161   : > { %v2238_v10 = vpop.f32.mrf.mxu1  ;;  %v6731_v52 = vpop.f32.mrf.mxu0 }
 0x162   : > { %v2351_v56 = vadd.f32 %v2238_v10, %v8133_v33  ;;  %v8480_v16 = vadd.f32 %v6731_v52, %v2353_v29 }
 0x163   : > { %v6700_v47 = vpop.f32.mrf.mxu1  ;;  %v3028_v37 = vpop.f32.mrf.mxu0 }
 0x164   : > { %v2356_v6 = vadd.f32 %v6700_v47, %v8158_v61  ;;  %v8483_v45 = vadd.f32 %v3028_v37, %v2351_v56 }
 0x165   : > { %v2251_v40 = vpop.f32.mrf.mxu1  ;;  %v6734_v3 = vpop.f32.mrf.mxu0 }
 0x166   : > { %v2354_v22 = vadd.f32 %v2251_v40, %v8172_v14  ;;  %v8487_v31 = vadd.f32 %v6734_v3, %v2356_v6 }
 0x167   : > { %v6701_v34 = vpop.f32.mrf.mxu1  ;;  %v3041_v24 = vpop.f32.mrf.mxu0 }
 0x168   : > { %v2357_v44 = vadd.f32 %v6701_v34, %v8178_v20  ;;  %v8490_v8 = vadd.f32 %v3041_v24, %v2354_v22 }
 0x169   : > { %v2254_v30 = vpop.f32.mrf.mxu1  ;;  %v6735_v27 = vpop.f32.mrf.mxu0 }
 0x16a   : > { %v2355_v33 = vadd.f32 %v2254_v30, %v8193_v1  ;;  %v8493_v0 = vadd.f32 %v6735_v27, %v2357_v44 }
 0x16b   : > { %v6704_v57 = vpop.f32.mrf.mxu1  ;;  %v3044_v14 = vpop.f32.mrf.mxu0 }
 0x16c   : > { %v2360_v61 = vadd.f32 %v6704_v57, %v8223_v15  ;;  %v8496_v28 = vadd.f32 %v3044_v14, %v2355_v33 }
 0x16d   : > { %v2267_v49 = vpop.f32.mrf.mxu1  ;;  %v6738_v58 = vpop.f32.mrf.mxu0 }
 0x16e   : > { %v2358_v42 = vadd.f32 %v2267_v49, %v8236_v19  ;;  %v8499_v13 = vadd.f32 %v6738_v58, %v2360_v61 }
 0x16f   : > { %v6705_v20 = vpop.f32.mrf.mxu1  ;;  %v3057_v32 = vpop.f32.mrf.mxu0 }
 0x170   : > { %v2361_v41 = vadd.f32 %v6705_v20, %v8247_v26  ;;  %v8502_v46 = vadd.f32 %v3057_v32, %v2358_v42 }
 0x171   : > { %v2270_v1 = vpop.f32.mrf.mxu1  ;;  %v6739_v21 = vpop.f32.mrf.mxu0 }
 0x172   : > { %v2359_v25 = vadd.f32 %v2270_v1, %v8263_v9  ;;  %v8505_v50 = vadd.f32 %v6739_v21, %v2361_v41 }
 0x173   : > { %v6708_v15 = vpop.f32.mrf.mxu1  ;;  %v3060_v38 = vpop.f32.mrf.mxu0 }
 0x174   : > { %v2364_v63 = vadd.f32 %v6708_v15, %v8286_v39  ;;  %v8508_v10 = vadd.f32 %v3060_v38, %v2359_v25 }
 0x175   : > { %v2283_v19 = vpop.f32.mrf.mxu1  ;;  %v6742_v52 = vpop.f32.mrf.mxu0 }
 0x176   : > { %v2362_v29 = vadd.f32 %v2283_v19, %v8307_v4  ;;  %8928 = vst [vmem:[#allocation7_spill] sm:$0xff] %v8508_v10  ;;  %v8511_v47 = vadd.f32 %v6742_v52, %v2364_v63 }
 0x177   : > { %v6709_v26 = vpop.f32.mrf.mxu1  ;;  %v3073_v37 = vpop.f32.mrf.mxu0 }
 0x178   : > { %v2365_v56 = vadd.f32 %v6709_v26, %v8315_v62  ;;  %8929 = vst [vmem:[#allocation8_spill] sm:$0xff] %v8511_v47  ;;  %v8514_v40 = vadd.f32 %v3073_v37, %v2362_v29 }
 0x179   : > { %v2286_v9 = vpop.f32.mrf.mxu1  ;;  %v6743_v22 = vpop.f32.mrf.mxu0 }
 0x17a   : > { %v2363_v6 = vadd.f32 %v2286_v9, %v8320_v60  ;;  %8930 = vst [vmem:[#allocation9_spill] sm:$0xff] %v8514_v40  ;;  %v8517_v3 = vadd.f32 %v6743_v22, %v2365_v56 }
 0x17b   : > { %v6712_v39 = vpop.f32.mrf.mxu1  ;;  %v3076_v44 = vpop.f32.mrf.mxu0 }
 0x17c   : > { %v2368_v34 = vadd.f32 %v6712_v39, %v8345_v5  ;;  %8931 = vst [vmem:[#allocation10_spill] sm:$0xff] %v8517_v3  ;;  %v8520_v24 = vadd.f32 %v3076_v44, %v2363_v6 }
 0x17d   : > { %v2299_v4 = vpop.f32.mrf.mxu1  ;;  %v6746_v33 = vpop.f32.mrf.mxu0 }
 0x17e   : > { %v2366_v30 = vadd.f32 %v2299_v4, %v8360_v54  ;;  %8932 = vst [vmem:[#allocation11_spill] sm:$0xff] %v8520_v24  ;;  %v8523_v27 = vadd.f32 %v6746_v33, %v2368_v34 }
 0x17f   : > { %v6713_v62 = vpop.f32.mrf.mxu1  ;;  %v3089_v61 = vpop.f32.mrf.mxu0 }
 0x180   : > { %v2369_v57 = vadd.f32 %v6713_v62, %v8362_v2  ;;  %8933 = vst [vmem:[#allocation12_spill] sm:$0xff] %v8523_v27  ;;  %v8526_v14 = vadd.f32 %v3089_v61, %v2366_v30 }
 0x181   : > { %v2302_v60 = vpop.f32.mrf.mxu1  ;;  %v6747_v42 = vpop.f32.mrf.mxu0 }
 0x182   : > { %v2367_v49 = vadd.f32 %v2302_v60, %v8375_v43  ;;  %8934 = vst [vmem:[#allocation13_spill] sm:$0xff] %v8526_v14  ;;  %v8529_v58 = vadd.f32 %v6747_v42, %v2369_v57 }
 0x183   : > { %v6716_v5 = vpop.f32.mrf.mxu1  ;;  %v3092_v41 = vpop.f32.mrf.mxu0 }
 0x184   : > { %v2372_v20 = vadd.f32 %v6716_v5, %v8387_v59  ;;  %8935 = vst [vmem:[#allocation14_spill] sm:$0xff] %v8529_v58  ;;  %v8532_v32 = vadd.f32 %v3092_v41, %v2367_v49  ;;  %v8937_v59 = vld [vmem:[#allocation6_spill] sm:$0xff] }
 0x185   : > { %v2315_v54 = vpop.f32.mrf.mxu1  ;;  %v6750_v21 = vpop.f32.mrf.mxu0 }
 0x186   : > { %v2370_v1 = vadd.f32 %v2315_v54, %v8404_v12  ;;  %8936 = vst [vmem:[#allocation15_spill] sm:$0xff] %v8532_v32  ;;  %v8536_v63 = vadd.f32 %v6750_v21, %v2372_v20 }
 0x187   : > { %v6717_v2 = vpop.f32.mrf.mxu1  ;;  %v3105_v38 = vpop.f32.mrf.mxu0 }
 0x188   : > { %v2373_v25 = vadd.f32 %v6717_v2, %v8406_v23  ;;  %v8539_v26 = vadd.f32 %v3105_v38, %v2370_v1 }
 0x189   : > { %v2318_v15 = vpop.f32.mrf.mxu1  ;;  %v6751_v56 = vpop.f32.mrf.mxu0 }
 0x18a   : > { %v2371_v43 = vadd.f32 %v2318_v15, %v8414_v7  ;;  %v8542_v9 = vadd.f32 %v6751_v56, %v2373_v25 }
 0x18b   : > { %v6720_v19 = vpop.f32.mrf.mxu1  ;;  %v3108_v23 = vpop.f32.mrf.mxu0 }
 0x18c   : > { %v2376_v29 = vadd.f32 %v6720_v19, %v8937_v59  ;;  %v8545_v39 = vadd.f32 %v3108_v23, %v2371_v43 }
 0x18d   : > { %v2331_v52 = vpop.f32.mrf.mxu1  ;;  %v6754_v22 = vpop.f32.mrf.mxu0 }
 0x18e   : > { %v2374_v12 = vadd.f32 %v2331_v52, %v8443_v51  ;;  %v8548_v4 = vadd.f32 %v6754_v22, %v2376_v29 }
 0x18f   : > { %v6721_v37 = vpop.f32.mrf.mxu1  ;;  %v3121_v30 = vpop.f32.mrf.mxu0 }
 0x190   : > { %v2377_v6 = vadd.f32 %v6721_v37, %v8453_v18  ;;  %v8552_v62 = vadd.f32 %v3121_v30, %v2374_v12 }
 0x191   : > { %v2334_v7 = vpop.f32.mrf.mxu1  ;;  %v6755_v33 = vpop.f32.mrf.mxu0 }
 0x192   : > { %v2375_v34 = vadd.f32 %v2334_v7, %v8458_v11  ;;  %v8556_v57 = vadd.f32 %v6755_v33, %v2377_v6 }
 0x193   : > { %v8550_v44 = vpop.f32.mrf.mxu1  ;;  %v3124_v18 = vpop.f32.mrf.mxu0 }
 0x194   : > { %v8560_v61 = vadd.f32 %v3124_v18, %v2375_v34 }
 0x195   : > { %v8554_v51 = vpop.f32.mrf.mxu1  ;;  %v8564_v11 = vpop.f32.mrf.mxu0 }
 0x197   : > { %v8558_v60 = vpop.f32.mrf.mxu1  ;;  %v8566_v5 = vpop.f32.mrf.mxu0 }
 0x199   : > { %v8562_v49 = vpop.f32.mrf.mxu1  ;;  %v8570_v20 = vpop.f32.mrf.mxu0 }
 0x19b   : > { %v8568_v42 = vpop.f32.mrf.mxu1  ;;  %v8574_v41 = vpop.f32.mrf.mxu0 }
 0x19d   : > { %v8572_v54 = vpop.f32.mrf.mxu1  ;;  %v8578_v2 = vpop.f32.mrf.mxu0 }
 0x19f   : > { %v8576_v1 = vpop.f32.mrf.mxu1  ;;  %v8582_v15 = vpop.f32.mrf.mxu0 }
 0x1a1   : > { %v8580_v25 = vpop.f32.mrf.mxu1  ;;  %v8586_v43 = vpop.f32.mrf.mxu0 }
 0x1a3   : > { %v8584_v21 = vpop.f32.mrf.mxu1  ;;  %v8590_v38 = vpop.f32.mrf.mxu0 }
 0x1a5   : > { %v8588_v19 = vpop.f32.mrf.mxu1  ;;  %v8594_v29 = vpop.f32.mrf.mxu0 }
 0x1a7   : > { %v8592_v59 = vpop.f32.mrf.mxu1  ;;  %v8598_v56 = vpop.f32.mrf.mxu0 }
 0x1a9   : > { %v8596_v52 = vpop.f32.mrf.mxu1  ;;  %v8602_v37 = vpop.f32.mrf.mxu0 }
 0x1ab   : > { %v8600_v12 = vpop.f32.mrf.mxu1  ;;  %v8606_v6 = vpop.f32.mrf.mxu0 }
 0x1ad   : > { %v8604_v23 = vpop.f32.mrf.mxu1  ;;  %v8610_v22 = vpop.f32.mrf.mxu0 }
 0x1ae   : > { %8939 = vst [vmem:[#allocation17_spill] sm:$0xff] %v8610_v22 }
 0x1af   : > { %v8608_v7 = vpop.f32.mrf.mxu1  ;;  %v8614_v30 = vpop.f32.mrf.mxu0 }
 0x1b0   : > { %8938 = vst [vmem:[#allocation16_spill] sm:$0xff] %v8608_v7  ;;  %8941 = vst [vmem:[#allocation6_spill] sm:$0xff] %v8614_v30 }
 0x1b1   : > { %v8612_v34 = vpop.f32.mrf.mxu1  ;;  %v8618_v18 = vpop.f32.mrf.mxu0 }
 0x1b2   : > { %8940 = vst [vmem:[#allocation18_spill] sm:$0xff] %v8612_v34  ;;  %8943 = vst [vmem:[#allocation20_spill] sm:$0xff] %v8618_v18 }
 0x1b3   : > { %v8616_v33 = vpop.f32.mrf.mxu1  ;;  %v8622_v58 = vpop.f32.mrf.mxu0 }
 0x1b4   : > { %8942 = vst [vmem:[#allocation19_spill] sm:$0xff] %v8616_v33  ;;  %8945 = vst [vmem:[#allocation22_spill] sm:$0xff] %v8622_v58 }
 0x1b5   : > { %v8620_v32 = vpop.f32.mrf.mxu1  ;;  %v8626_v27 = vpop.f32.mrf.mxu0 }
 0x1b6   : > { %8944 = vst [vmem:[#allocation21_spill] sm:$0xff] %v8620_v32  ;;  %8947 = vst [vmem:[#allocation24_spill] sm:$0xff] %v8626_v27 }
 0x1b7   : > { %v8624_v14 = vpop.f32.mrf.mxu1  ;;  %v8630_v3 = vpop.f32.mrf.mxu0 }
 0x1b8   : > { %8946 = vst [vmem:[#allocation23_spill] sm:$0xff] %v8624_v14  ;;  %8949 = vst [vmem:[#allocation26_spill] sm:$0xff] %v8630_v3 }
 0x1b9   : > { %v8628_v24 = vpop.f32.mrf.mxu1  ;;  %v8634_v47 = vpop.f32.mrf.mxu0 }
 0x1ba   : > { %8948 = vst [vmem:[#allocation25_spill] sm:$0xff] %v8628_v24  ;;  %8951 = vst [vmem:[#allocation28_spill] sm:$0xff] %v8634_v47 }
 0x1bb   : > { %v8632_v40 = vpop.f32.mrf.mxu1  ;;  %v8638_v33 = vpop.f32.mrf.mxu0 }
 0x1bc   : > { %8950 = vst [vmem:[#allocation27_spill] sm:$0xff] %v8632_v40  ;;  %8953 = vst [vmem:[#allocation30_spill] sm:$0xff] %v8638_v33 }
 0x1bd   : > { %v8636_v34 = vpop.f32.mrf.mxu1  ;;  %v8642_v32 = vpop.f32.mrf.mxu0 }
 0x1be   : > { %8952 = vst [vmem:[#allocation29_spill] sm:$0xff] %v8636_v34  ;;  %8955 = vst [vmem:[#allocation32_spill] sm:$0xff] %v8642_v32 }
 0x1bf   : > { %v8640_v18 = vpop.f32.mrf.mxu1  ;;  %v8646_v14 = vpop.f32.mrf.mxu0 }
 0x1c0   : > { %8954 = vst [vmem:[#allocation31_spill] sm:$0xff] %v8640_v18  ;;  %8957 = vst [vmem:[#allocation34_spill] sm:$0xff] %v8646_v14 }
 0x1c1   : > { %v8644_v58 = vpop.f32.mrf.mxu1  ;;  %v8649_v3 = vpop.f32.mrf.mxu0 }
 0x1c2   : > { %8956 = vst [vmem:[#allocation33_spill] sm:$0xff] %v8644_v58  ;;  %8958 = vst [vmem:[#allocation35_spill] sm:$0xff] %v8649_v3 }
 0x1c3   : > { %v8652_v10 = vpop.f32.mrf.mxu0 }
 0x1c4   : > { %8959 = vst [vmem:[#allocation36_spill] sm:$0xff] %v8652_v10 }
 0x1c5   : > { %v6818_v18 = vpop.f32.mrf.mxu0 }
 0x1c6   : > { %v6784_v27 = vpop.f32.mrf.mxu1 }
 0x1c7   : > { %v3728_v24 = vadd.f32 %v6784_v27, %v8536_v63  ;;  %v4094_v14 = vpop.f32.mrf.mxu0 }
 0x1c8   : > { %v3671_v40 = vpop.f32.mrf.mxu1 }
 0x1c9   : > { %v3726_v47 = vadd.f32 %v3671_v40, %v8539_v26  ;;  %v8655_v32 = vadd.f32 %v6818_v18, %v3728_v24  ;;  %v6819_v63 = vpop.f32.mrf.mxu0  ;;  %v3704_v24 = vadd.f32 %v8550_v44, %v8460_v48  ;;  %v3705_v48 = vadd.f32 %v8558_v60, %v8468_v55 }
 0x1ca   : > { %v6785_v34 = vpop.f32.mrf.mxu1 }
 0x1cb   : > { %v3729_v33 = vadd.f32 %v6785_v34, %v8542_v9  ;;  %v8658_v7 = vadd.f32 %v4094_v14, %v3726_v47  ;;  %v4097_v10 = vpop.f32.mrf.mxu0  ;;  %v3702_v14 = vadd.f32 %v8554_v51, %v8462_v36  ;;  %v3703_v51 = vadd.f32 %v8562_v49, %v8471_v53  ;;  %v8695_v53 = vld [vmem:[%s8883_s2] ss:$0 sm:$0xff] }
 0x1cc   : > { %v3674_v30 = vpop.f32.mrf.mxu1  ;;  %v4128_v55 = vadd.f32 %v8570_v20, %v3705_v48  ;;  %v3712_v48 = vadd.f32 %v8584_v21, %v8487_v31 }
 0x1cd   : > { %v3727_v58 = vadd.f32 %v3674_v30, %v8545_v39  ;;  %v8661_v40 = vadd.f32 %v6819_v63, %v3729_v33  ;;  %v6822_v30 = vpop.f32.mrf.mxu0 }
 0x1ce   : > { %v6788_v22 = vpop.f32.mrf.mxu1 }
 0x1cf   : > { %v3732_v27 = vadd.f32 %v6788_v22, %v8548_v4  ;;  %v8666_v34 = vadd.f32 %v4097_v10, %v3727_v58  ;;  %v4110_v33 = vpop.f32.mrf.mxu0 }
 0x1d0   : > { %v3687_v3 = vpop.f32.mrf.mxu1 }
 0x1d1   : > { %v3730_v26 = vadd.f32 %v3687_v3, %v8552_v62  ;;  %v8671_v4 = vadd.f32 %v6822_v30, %v3732_v27  ;;  %v4127_v62 = vadd.f32 %v8564_v11, %v3704_v24  ;;  %v6823_v58 = vpop.f32.mrf.mxu0  ;;  %v3709_v24 = vadd.f32 %v8576_v1, %v8480_v16 }
 0x1d2   : > { %v6789_v9 = vpop.f32.mrf.mxu1 }
 0x1d3   : > { %v3733_v39 = vadd.f32 %v6789_v9, %v8556_v57  ;;  %v8677_v10 = vadd.f32 %v4110_v33, %v3730_v26  ;;  %v4125_v57 = vadd.f32 %v8566_v5, %v3702_v14  ;;  %v4113_v11 = vpop.f32.mrf.mxu0  ;;  %v3706_v5 = vadd.f32 %v8572_v54, %v8477_v35 }
 0x1d4   : > { %v3690_v47 = vpop.f32.mrf.mxu1  ;;  %v4126_v9 = vadd.f32 %v8574_v41, %v3703_v51  ;;  %v3707_v14 = vadd.f32 %v8580_v25, %v8483_v45 }
 0x1d5   : > { %v3731_v22 = vadd.f32 %v3690_v47, %v8560_v61  ;;  %v8680_v18 = vadd.f32 %v6823_v58, %v3733_v39  ;;  %v3708_v61 = vadd.f32 %v8568_v42, %v8474_v17  ;;  %v4129_v47 = vadd.f32 %v8582_v15, %v3706_v5 }
 0x1d6   : > { %v6828_v3 = vpop.f32.mrf.mxu1  ;;  %v3710_v15 = vadd.f32 %v8588_v19, %v8490_v8  ;;  %v4130_v51 = vadd.f32 %v8590_v38, %v3707_v14 }
 0x1d7   : > { %v4917_v36 = vadd.f32 %v6828_v3, %v4127_v62  ;;  %v8687_v60 = vadd.f32 %v4113_v11, %v3731_v22  ;;  %v4131_v20 = vadd.f32 %v8578_v2, %v3708_v61  ;;  %v4132_v62 = vadd.f32 %v8586_v43, %v3709_v24 }
 0x1d8   : > { %v4788_v44 = vpop.f32.mrf.mxu1  ;;  %v3713_v61 = vadd.f32 %v8592_v59, %v8493_v0  ;;  %v4133_v38 = vadd.f32 %v8598_v56, %v3710_v15  ;;  %v3711_v0 = vadd.f32 %v8596_v52, %v8496_v28  ;;  %v8961_v15 = vld [vmem:[#allocation17_spill] sm:$0xff] }
 0x1d9   : > { %v4915_v63 = vadd.f32 %v4788_v44, %v4125_v57 }
 0x1da   : > { %v6829_v27 = vpop.f32.mrf.mxu1 }
 0x1db   : > { %v4918_v42 = vadd.f32 %v6829_v27, %v4128_v55  ;;  %v4135_v55 = vadd.f32 %v8594_v29, %v3712_v48 }
 0x1dc   : > { %v4791_v49 = vpop.f32.mrf.mxu1 }
 0x1dd   : > { %v6862_v26 = vpop.f32.mrf.mxu0  ;;  %v4916_v33 = vadd.f32 %v4791_v49, %v4126_v9 }
 0x1de   : > { %v5483_v17 = vadd.f32 %v6862_v26, %v4917_v36  ;;  %v6832_v35 = vpop.f32.mrf.mxu1  ;;  %v3716_v26 = vadd.f32 %v8600_v12, %v8499_v13  ;;  %v4136_v13 = vadd.f32 %v8602_v37, %v3713_v61  ;;  %v3714_v12 = vadd.f32 %v8604_v23, %v8502_v46  ;;  %v8965_v61 = vld [vmem:[#allocation8_spill] sm:$0xff] }
 0x1df   : > { %v5354_v39 = vpop.f32.mrf.mxu0  ;;  %v4921_v41 = vadd.f32 %v6832_v35, %v4131_v20 }
 0x1e0   : > { %v5586_v54 = vadd.f32 %v8695_v53, %v5483_v17  ;;  %v5481_v30 = vadd.f32 %v5354_v39, %v4915_v63  ;;  %v4804_v3 = vpop.f32.mrf.mxu1 }
 0x1e1   : > { %v6863_v22 = vpop.f32.mrf.mxu0  ;;  %v4919_v44 = vadd.f32 %v4804_v3, %v4129_v47  ;;  %v8960_v3 = vld [vmem:[#allocation16_spill] sm:$0xff] }
 0x1e2   : > { %vm5618_vm8 = vcmp.ge.f32.partialorder %v5586_v54, 0.0  ;;  %v5650_v2 = vmul.f32 0.01, %v5586_v54  ;;  %v5584_v16 = vadd.f32 %v8695_v53, %v5481_v30  ;;  %v5484_v1 = vadd.f32 %v6863_v22, %v4918_v42  ;;  %v6833_v45 = vpop.f32.mrf.mxu1 }
 0x1e3   : > { %v5357_v58 = vpop.f32.mrf.mxu0  ;;  %v4922_v21 = vadd.f32 %v6833_v45, %v4132_v62 }
 0x1e4   : > { %v5682_v25 = vsel %vm5618_vm8, %v5586_v54, %v5650_v2  ;;  %vm5616_vm9 = vcmp.ge.f32.partialorder %v5584_v16, 0.0  ;;  %v5648_v57 = vmul.f32 0.01, %v5584_v16  ;;  %v5587_v36 = vadd.f32 %v8695_v53, %v5484_v1  ;;  %v4807_v43 = vpop.f32.mrf.mxu1 }
 0x1e5   : > { %5714 = vst [vmem:[%s8717_s6 + $0x10] sm:$0xff] %v5682_v25  ;;  %v5482_v31 = vadd.f32 %v5357_v58, %v4916_v33  ;;  %v6866_v8 = vpop.f32.mrf.mxu0  ;;  %v4920_v9 = vadd.f32 %v4807_v43, %v4130_v51  ;;  %v3717_v2 = vadd.f32 %v8960_v3, %v8505_v50  ;;  %v4139_v58 = vadd.f32 %v8961_v15, %v3716_v26  ;;  %v8963_v25 = vld [vmem:[#allocation7_spill] sm:$0xff]  ;;  %v8967_v26 = vld [vmem:[#allocation20_spill] sm:$0xff] }
 0x1e6   : > { %v5680_v19 = vsel %vm5616_vm9, %v5584_v16, %v5648_v57  ;;  %vm5619_vm10 = vcmp.ge.f32.partialorder %v5587_v36, 0.0  ;;  %v5651_v11 = vmul.f32 0.01, %v5587_v36  ;;  %v5487_v27 = vadd.f32 %v6866_v8, %v4921_v41  ;;  %v6836_v5 = vpop.f32.mrf.mxu1  ;;  %v8964_v57 = vld [vmem:[#allocation18_spill] sm:$0xff] }
 0x1e7   : > { %5712 = vst [vmem:[%s8717_s6] sm:$0xff] %v5680_v19  ;;  %v5585_v59 = vadd.f32 %v8695_v53, %v5482_v31  ;;  %v5370_v63 = vpop.f32.mrf.mxu0  ;;  %v4925_v20 = vadd.f32 %v6836_v5, %v4135_v55  ;;  %v4134_v41 = vadd.f32 %v8606_v6, %v3711_v0  ;;  %v3715_v6 = vadd.f32 %v8964_v57, %v8963_v25  ;;  %v8966_v31 = vld [vmem:[#allocation19_spill] sm:$0xff] }
 0x1e8   : > { %v5683_v49 = vsel %vm5619_vm10, %v5587_v36, %v5651_v11  ;;  %v5590_v17 = vadd.f32 %v8695_v53, %v5487_v27  ;;  %v5485_v42 = vadd.f32 %v5370_v63, %v4919_v44  ;;  %v4820_v28 = vpop.f32.mrf.mxu1  ;;  %v8962_v44 = vld [vmem:[#allocation6_spill] sm:$0xff]  ;;  %v3720_v8 = vadd.f32 %v8966_v31, %v8965_v61  ;;  %v8975_v31 = vld [vmem:[#allocation28_spill] sm:$0xff] }
 0x1e9   : > { %5715 = vst [vmem:[%s8717_s6 + $0x18] sm:$0xff] %v5683_v49  ;;  %vm5617_vm11 = vcmp.ge.f32.partialorder %v5585_v59, 0.0  ;;  %v5649_v29 = vmul.f32 0.01, %v5585_v59  ;;  %v6867_v56 = vpop.f32.mrf.mxu0  ;;  %v4923_v30 = vadd.f32 %v4820_v28, %v4133_v38  ;;  %v4137_v45 = vadd.f32 %v8962_v44, %v3714_v12 }
 0x1ea   : > { %vm5622_vm12 = vcmp.ge.f32.partialorder %v5590_v17, 0.0  ;;  %v5654_v52 = vmul.f32 0.01, %v5590_v17  ;;  %v5588_v24 = vadd.f32 %v8695_v53, %v5485_v42  ;;  %v5488_v39 = vadd.f32 %v6867_v56, %v4922_v21  ;;  %v6837_v47 = vpop.f32.mrf.mxu1  ;;  %v8969_v42 = vld [vmem:[#allocation21_spill] sm:$0xff] }
 0x1eb   : > { %v5681_v35 = vsel %vm5617_vm11, %v5585_v59, %v5649_v29  ;;  %v5373_v54 = vpop.f32.mrf.mxu0  ;;  %v4926_v46 = vadd.f32 %v6837_v47, %v4136_v13  ;;  %v4140_v49 = vadd.f32 %v8967_v26, %v3717_v2  ;;  %v8972_v2 = vld [vmem:[#allocation10_spill] sm:$0xff]  ;;  %v8979_v26 = vld [vmem:[#allocation27_spill] sm:$0xff] }
 0x1ec   : > { %5713 = vst [vmem:[%s8717_s6 + $0x8] sm:$0xff] %v5681_v35  ;;  %v5686_v14 = vsel %vm5622_vm12, %v5590_v17, %v5654_v52  ;;  %vm5620_vm13 = vcmp.ge.f32.partialorder %v5588_v24, 0.0  ;;  %v5652_v22 = vmul.f32 0.01, %v5588_v24  ;;  %v5591_v33 = vadd.f32 %v8695_v53, %v5488_v39  ;;  %v4823_v23 = vpop.f32.mrf.mxu1  ;;  %v8968_v17 = vld [vmem:[#allocation9_spill] sm:$0xff] }
 0x1ed   : > { %5718 = vst [vmem:[%s8717_s6 + $0x30] sm:$0xff] %v5686_v14  ;;  %v5486_v37 = vadd.f32 %v5373_v54, %v4920_v9  ;;  %v6870_v16 = vpop.f32.mrf.mxu0  ;;  %v4924_v55 = vadd.f32 %v4823_v23, %v4134_v41  ;;  %v3718_v29 = vadd.f32 %v8969_v42, %v8968_v17  ;;  %v8971_v41 = vld [vmem:[#allocation24_spill] sm:$0xff] }
 0x1ee   : > { %v5684_v1 = vsel %vm5620_vm13, %v5588_v24, %v5652_v22  ;;  %vm5623_vm14 = vcmp.ge.f32.partialorder %v5591_v33, 0.0  ;;  %v5655_v62 = vmul.f32 0.01, %v5591_v33  ;;  %v5491_v48 = vadd.f32 %v6870_v16, %v4925_v20  ;;  %v6840_v51 = vpop.f32.mrf.mxu1  ;;  %v8970_v22 = vld [vmem:[#allocation22_spill] sm:$0xff] }
 0x1ef   : > { %5716 = vst [vmem:[%s8717_s6 + $0x20] sm:$0xff] %v5684_v1  ;;  %v5589_v50 = vadd.f32 %v8695_v53, %v5486_v37  ;;  %v5386_v36 = vpop.f32.mrf.mxu0  ;;  %v4929_v38 = vadd.f32 %v6840_v51, %v4139_v58  ;;  %v4143_v3 = vadd.f32 %v8971_v41, %v3720_v8  ;;  %v8973_v37 = vld [vmem:[#allocation23_spill] sm:$0xff] }
 0x1f0   : > { %v5687_v21 = vsel %vm5623_vm14, %v5591_v33, %v5655_v62  ;;  %v5594_v43 = vadd.f32 %v8695_v53, %v5491_v48  ;;  %v5489_v19 = vadd.f32 %v5386_v36, %v4923_v30  ;;  %v4836_v0 = vpop.f32.mrf.mxu1  ;;  %v4138_v33 = vadd.f32 %v8970_v22, %v3715_v6  ;;  %v8974_v62 = vld [vmem:[#allocation26_spill] sm:$0xff] }
 0x1f1   : > { %5719 = vst [vmem:[%s8717_s6 + $0x38] sm:$0xff] %v5687_v21  ;;  %vm5621_vm15 = vcmp.ge.f32.partialorder %v5589_v50, 0.0  ;;  %v5653_v11 = vmul.f32 0.01, %v5589_v50  ;;  %v6871_v27 = vpop.f32.mrf.mxu0  ;;  %v4927_v20 = vadd.f32 %v4836_v0, %v4137_v45  ;;  %v3721_v16 = vadd.f32 %v8973_v37, %v8972_v2  ;;  %v8976_v21 = vld [vmem:[#allocation11_spill] sm:$0xff] }
 0x1f2   : > { %vm5626_vm0 = vcmp.ge.f32.partialorder %v5594_v43, 0.0  ;;  %v5658_v59 = vmul.f32 0.01, %v5594_v43  ;;  %v5592_v63 = vadd.f32 %v8695_v53, %v5489_v19  ;;  %v5492_v5 = vadd.f32 %v6871_v27, %v4926_v46  ;;  %v6841_v28 = vpop.f32.mrf.mxu1 }
 0x1f3   : > { %v5685_v56 = vsel %vm5621_vm15, %v5589_v50, %v5653_v11  ;;  %v5389_v9 = vpop.f32.mrf.mxu0  ;;  %v4930_v35 = vadd.f32 %v6841_v28, %v4140_v49  ;;  %v4141_v48 = vadd.f32 %v8974_v62, %v3718_v29  ;;  %v4144_v8 = vadd.f32 %v8975_v31, %v3721_v16 }
 0x1f4   : > { %5717 = vst [vmem:[%s8717_s6 + $0x28] sm:$0xff] %v5685_v56  ;;  %v5690_v52 = vsel %vm5626_vm0, %v5594_v43, %v5658_v59  ;;  %vm5624_vm1 = vcmp.ge.f32.partialorder %v5592_v63, 0.0  ;;  %v5656_v24 = vmul.f32 0.01, %v5592_v63  ;;  %v5595_v39 = vadd.f32 %v8695_v53, %v5492_v5  ;;  %v4839_v54 = vpop.f32.mrf.mxu1  ;;  %v8977_v43 = vld [vmem:[#allocation25_spill] sm:$0xff]  ;;  %v8978_v5 = vld [vmem:[#allocation12_spill] sm:$0xff] }
 0x1f5   : > { %5722 = vst [vmem:[%s8717_s6 + $0x50] sm:$0xff] %v5690_v52  ;;  %v5490_v13 = vadd.f32 %v5389_v9, %v4924_v55  ;;  %v6874_v12 = vpop.f32.mrf.mxu0  ;;  %v4928_v57 = vadd.f32 %v4839_v54, %v4138_v33  ;;  %v3719_v19 = vadd.f32 %v8977_v43, %v8976_v21  ;;  %v3724_v49 = vadd.f32 %v8979_v26, %v8978_v5  ;;  %v8980_v52 = vld [vmem:[#allocation30_spill] sm:$0xff] }
 0x1f6   : > { %v5688_v30 = vsel %vm5624_vm1, %v5592_v63, %v5656_v24  ;;  %vm5627_vm2 = vcmp.ge.f32.partialorder %v5595_v39, 0.0  ;;  %v5659_v47 = vmul.f32 0.01, %v5595_v39  ;;  %v5495_v14 = vadd.f32 %v6874_v12, %v4929_v38  ;;  %v6844_v1 = vpop.f32.mrf.mxu1 }
 0x1f7   : > { %5720 = vst [vmem:[%s8717_s6 + $0x40] sm:$0xff] %v5688_v30  ;;  %v5593_v46 = vadd.f32 %v8695_v53, %v5490_v13  ;;  %v5402_v23 = vpop.f32.mrf.mxu0  ;;  %v4933_v6 = vadd.f32 %v6844_v1, %v4143_v3  ;;  %v4142_v24 = vadd.f32 %v8980_v52, %v3719_v19  ;;  %v8982_v13 = vld [vmem:[#allocation29_spill] sm:$0xff]  ;;  %v8983_v30 = vld [vmem:[#allocation14_spill] sm:$0xff]  ;;  %v8985_v3 = vld [vmem:[#allocation32_spill] sm:$0xff] }
 0x1f8   : > { %v5691_v15 = vsel %vm5627_vm2, %v5595_v39, %v5659_v47  ;;  %v5598_v58 = vadd.f32 %v8695_v53, %v5495_v14  ;;  %v5493_v44 = vadd.f32 %v5402_v23, %v4927_v20  ;;  %v4852_v50 = vpop.f32.mrf.mxu1  ;;  %v8981_v39 = vld [vmem:[#allocation13_spill] sm:$0xff]  ;;  %v8984_v47 = vld [vmem:[#allocation31_spill] sm:$0xff]  ;;  %v4147_v2 = vadd.f32 %v8985_v3, %v3724_v49 }
 0x1f9   : > { %5723 = vst [vmem:[%s8717_s6 + $0x58] sm:$0xff] %v5691_v15  ;;  %vm5625_vm3 = vcmp.ge.f32.partialorder %v5593_v46, 0.0  ;;  %v5657_v45 = vmul.f32 0.01, %v5593_v46  ;;  %v6875_v25 = vpop.f32.mrf.mxu0  ;;  %v4931_v55 = vadd.f32 %v4852_v50, %v4141_v48  ;;  %v3722_v12 = vadd.f32 %v8982_v13, %v8981_v39  ;;  %v8986_v15 = vld [vmem:[#allocation34_spill] sm:$0xff] }
 0x1fa   : > { %vm5630_vm4 = vcmp.ge.f32.partialorder %v5598_v58, 0.0  ;;  %v5662_v36 = vmul.f32 0.01, %v5598_v58  ;;  %v5596_v51 = vadd.f32 %v8695_v53, %v5493_v44  ;;  %v5496_v61 = vadd.f32 %v6875_v25, %v4930_v35  ;;  %v6845_v38 = vpop.f32.mrf.mxu1  ;;  %v8987_v44 = vld [vmem:[#allocation15_spill] sm:$0xff] }
 0x1fb   : > { %v5689_v11 = vsel %vm5625_vm3, %v5593_v46, %v5657_v45  ;;  %v5405_v27 = vpop.f32.mrf.mxu0  ;;  %v4934_v29 = vadd.f32 %v6845_v38, %v4144_v8  ;;  %v3725_v14 = vadd.f32 %v8984_v47, %v8983_v30  ;;  %v8988_v45 = vld [vmem:[#allocation33_spill] sm:$0xff]  ;;  %v8989_v8 = vld [vmem:[#allocation35_spill] sm:$0xff] }
 0x1fc   : > { %5721 = vst [vmem:[%s8717_s6 + $0x48] sm:$0xff] %v5689_v11  ;;  %v5694_v0 = vsel %vm5630_vm4, %v5598_v58, %v5662_v36  ;;  %vm5628_vm5 = vcmp.ge.f32.partialorder %v5596_v51, 0.0  ;;  %v5660_v59 = vmul.f32 0.01, %v5596_v51  ;;  %v5599_v63 = vadd.f32 %v8695_v53, %v5496_v61  ;;  %v4855_v28 = vpop.f32.mrf.mxu1 }
 0x1fd   : > { %5726 = vst [vmem:[%s8717_s6 + $0x70] sm:$0xff] %v5694_v0  ;;  %v5494_v17 = vadd.f32 %v5405_v27, %v4928_v57  ;;  %v6878_v42 = vpop.f32.mrf.mxu0  ;;  %v4932_v46 = vadd.f32 %v4855_v28, %v4142_v24  ;;  %v4145_v58 = vadd.f32 %v8986_v15, %v3722_v12  ;;  %v3723_v25 = vadd.f32 %v8988_v45, %v8987_v44 }
 0x1fe   : > { %v5692_v56 = vsel %vm5628_vm5, %v5596_v51, %v5660_v59  ;;  %vm5631_vm6 = vcmp.ge.f32.partialorder %v5599_v63, 0.0  ;;  %v5663_v9 = vmul.f32 0.01, %v5599_v63  ;;  %v5499_v20 = vadd.f32 %v6878_v42, %v4933_v6  ;;  %v8990_v59 = vld [vmem:[#allocation36_spill] sm:$0xff] }
 0x1ff   : > { %5724 = vst [vmem:[%s8717_s6 + $0x60] sm:$0xff] %v5692_v56  ;;  %v5597_v35 = vadd.f32 %v8695_v53, %v5494_v17  ;;  %v5418_v54 = vpop.f32.mrf.mxu0  ;;  %v4148_v21 = vadd.f32 %v8989_v8, %v3725_v14 }
 0x200   : > { %v5695_v22 = vsel %vm5631_vm6, %v5599_v63, %v5663_v9  ;;  %v5602_v33 = vadd.f32 %v8695_v53, %v5499_v20  ;;  %v5497_v41 = vadd.f32 %v5418_v54, %v4931_v55  ;;  %v4146_v63 = vadd.f32 %v8990_v59, %v3723_v25 }
 0x201   : > { %5727 = vst [vmem:[%s8717_s6 + $0x78] sm:$0xff] %v5695_v22  ;;  %vm5629_vm7 = vcmp.ge.f32.partialorder %v5597_v35, 0.0  ;;  %v5661_v37 = vmul.f32 0.01, %v5597_v35  ;;  %v6879_v16 = vpop.f32.mrf.mxu0  ;;  %v6848_v48 = vpop.f32.mrf.mxu1 }
 0x202   : > { %vm5634_vm8 = vcmp.ge.f32.partialorder %v5602_v33, 0.0  ;;  %v5666_v23 = vmul.f32 0.01, %v5602_v33  ;;  %v5600_v1 = vadd.f32 %v8695_v53, %v5497_v41  ;;  %v5500_v62 = vadd.f32 %v6879_v16, %v4934_v29 }
 0x203   : > { %v5693_v57 = vsel %vm5629_vm7, %v5597_v35, %v5661_v37  ;;  %v5421_v6 = vpop.f32.mrf.mxu0  ;;  %v4937_v50 = vadd.f32 %v6848_v48, %v4147_v2  ;;  %v4868_v31 = vpop.f32.mrf.mxu1 }
 0x204   : > { %5725 = vst [vmem:[%s8717_s6 + $0x68] sm:$0xff] %v5693_v57  ;;  %v5698_v36 = vsel %vm5634_vm8, %v5602_v33, %v5666_v23  ;;  %vm5632_vm9 = vcmp.ge.f32.partialorder %v5600_v1, 0.0  ;;  %v5664_v51 = vmul.f32 0.01, %v5600_v1  ;;  %v5603_v61 = vadd.f32 %v8695_v53, %v5500_v62 }
 0x205   : > { %5730 = vst [vmem:[%s8717_s6 + $0x90] sm:$0xff] %v5698_v36  ;;  %v5498_v43 = vadd.f32 %v5421_v6, %v4932_v46  ;;  %v6882_v19 = vpop.f32.mrf.mxu0  ;;  %v4935_v11 = vadd.f32 %v4868_v31, %v4145_v58  ;;  %v6849_v0 = vpop.f32.mrf.mxu1 }
 0x206   : > { %v5696_v27 = vsel %vm5632_vm9, %v5600_v1, %v5664_v51  ;;  %vm5635_vm10 = vcmp.ge.f32.partialorder %v5603_v61, 0.0  ;;  %v5667_v55 = vmul.f32 0.01, %v5603_v61  ;;  %v5503_v38 = vadd.f32 %v6882_v19, %v4937_v50 }
 0x207   : > { %5728 = vst [vmem:[%s8717_s6 + $0x80] sm:$0xff] %v5696_v27  ;;  %v5601_v5 = vadd.f32 %v8695_v53, %v5498_v43  ;;  %v5434_v26 = vpop.f32.mrf.mxu0  ;;  %v4938_v49 = vadd.f32 %v6849_v0, %v4148_v21  ;;  %v4871_v56 = vpop.f32.mrf.mxu1 }
 0x208   : > { %v5699_v17 = vsel %vm5635_vm10, %v5603_v61, %v5667_v55  ;;  %v5606_v42 = vadd.f32 %v8695_v53, %v5503_v38  ;;  %v5501_v29 = vadd.f32 %v5434_v26, %v4935_v11  ;;  %v4936_v28 = vadd.f32 %v4871_v56, %v4146_v63 }
 0x209   : > { %5731 = vst [vmem:[%s8717_s6 + $0x98] sm:$0xff] %v5699_v17  ;;  %vm5633_vm11 = vcmp.ge.f32.partialorder %v5601_v5, 0.0  ;;  %v5665_v9 = vmul.f32 0.01, %v5601_v5  ;;  %v6883_v20 = vpop.f32.mrf.mxu0 }
 0x20a   : > { %vm5638_vm12 = vcmp.ge.f32.partialorder %v5606_v42, 0.0  ;;  %v5670_v52 = vmul.f32 0.01, %v5606_v42  ;;  %v5604_v24 = vadd.f32 %v8695_v53, %v5501_v29  ;;  %v5504_v39 = vadd.f32 %v6883_v20, %v4938_v49 }
 0x20b   : > { %v5697_v13 = vsel %vm5633_vm11, %v5601_v5, %v5665_v9  ;;  %v5437_v12 = vpop.f32.mrf.mxu0 }
 0x20c   : > { %5729 = vst [vmem:[%s8717_s6 + $0x88] sm:$0xff] %v5697_v13  ;;  %v5702_v35 = vsel %vm5638_vm12, %v5606_v42, %v5670_v52  ;;  %vm5636_vm13 = vcmp.ge.f32.partialorder %v5604_v24, 0.0  ;;  %v5668_v54 = vmul.f32 0.01, %v5604_v24  ;;  %v5607_v30 = vadd.f32 %v8695_v53, %v5504_v39 }
 0x20d   : > { %5734 = vst [vmem:[%s8717_s6 + $0xb0] sm:$0xff] %v5702_v35  ;;  %v5502_v47 = vadd.f32 %v5437_v12, %v4936_v28 }
 0x20e   : > { %v5700_v14 = vsel %vm5636_vm13, %v5604_v24, %v5668_v54  ;;  %vm5639_vm14 = vcmp.ge.f32.partialorder %v5607_v30, 0.0  ;;  %v5671_v22 = vmul.f32 0.01, %v5607_v30  ;;  %v6886_v41 = vpop.f32.mrf.mxu0 }
 0x20f   : > { %5732 = vst [vmem:[%s8717_s6 + $0xa0] sm:$0xff] %v5700_v14  ;;  %v5605_v33 = vadd.f32 %v8695_v53, %v5502_v47  ;;  %v6852_v2 = vpop.f32.mrf.mxu1 }
 0x210   : > { %v5703_v3 = vsel %vm5639_vm14, %v5607_v30, %v5671_v22  ;;  %v4941_v16 = vadd.f32 %v6852_v2, %v8655_v32  ;;  %v5450_v46 = vpop.f32.mrf.mxu0 }
 0x211   : > { %5735 = vst [vmem:[%s8717_s6 + $0xb8] sm:$0xff] %v5703_v3  ;;  %vm5637_vm15 = vcmp.ge.f32.partialorder %v5605_v33, 0.0  ;;  %v5669_v37 = vmul.f32 0.01, %v5605_v33  ;;  %v4884_v23 = vpop.f32.mrf.mxu1 }
 0x212   : > { %v5507_v62 = vadd.f32 %v6886_v41, %v4941_v16  ;;  %v4939_v48 = vadd.f32 %v4884_v23, %v8658_v7  ;;  %v6887_v25 = vpop.f32.mrf.mxu0 }
 0x213   : > { %v5701_v1 = vsel %vm5637_vm15, %v5605_v33, %v5669_v37  ;;  %v6853_v15 = vpop.f32.mrf.mxu1 }
 0x214   : > { %5733 = vst [vmem:[%s8717_s6 + $0xa8] sm:$0xff] %v5701_v1  ;;  %v5610_v58 = vadd.f32 %v8695_v53, %v5507_v62  ;;  %v5505_v44 = vadd.f32 %v5450_v46, %v4939_v48  ;;  %v4942_v45 = vadd.f32 %v6853_v15, %v8661_v40  ;;  %v5453_v31 = vpop.f32.mrf.mxu0 }
 0x215   : > { %v4887_v57 = vpop.f32.mrf.mxu1 }
 0x216   : > { %vm5642_vm0 = vcmp.ge.f32.partialorder %v5610_v58, 0.0  ;;  %v5674_v6 = vmul.f32 0.01, %v5610_v58  ;;  %v5608_v32 = vadd.f32 %v8695_v53, %v5505_v44  ;;  %v5508_v50 = vadd.f32 %v6887_v25, %v4942_v45 }
 0x217   : > { %v4940_v36 = vadd.f32 %v4887_v57, %v8666_v34 }
 0x218   : > { %v5706_v7 = vsel %vm5642_vm0, %v5610_v58, %v5674_v6  ;;  %vm5640_vm1 = vcmp.ge.f32.partialorder %v5608_v32, 0.0  ;;  %v5672_v51 = vmul.f32 0.01, %v5608_v32  ;;  %v5611_v61 = vadd.f32 %v8695_v53, %v5508_v50 }
 0x219   : > { %5738 = vst [vmem:[%s8717_s6 + $0xd0] sm:$0xff] %v5706_v7  ;;  %v5506_v8 = vadd.f32 %v5453_v31, %v4940_v36 }
 0x21a   : > { %v5704_v40 = vsel %vm5640_vm1, %v5608_v32, %v5672_v51  ;;  %vm5643_vm2 = vcmp.ge.f32.partialorder %v5611_v61, 0.0  ;;  %v5675_v21 = vmul.f32 0.01, %v5611_v61 }
 0x21b   : > { %5736 = vst [vmem:[%s8717_s6 + $0xc0] sm:$0xff] %v5704_v40  ;;  %v5609_v43 = vadd.f32 %v8695_v53, %v5506_v8  ;;  %v6890_v11 = vpop.f32.mrf.mxu0 }
 0x21c   : > { %v5707_v19 = vsel %vm5643_vm2, %v5611_v61, %v5675_v21 }
 0x21d   : > { %5739 = vst [vmem:[%s8717_s6 + $0xd8] sm:$0xff] %v5707_v19  ;;  %vm5641_vm3 = vcmp.ge.f32.partialorder %v5609_v43, 0.0  ;;  %v5673_v34 = vmul.f32 0.01, %v5609_v43  ;;  %v6856_v27 = vpop.f32.mrf.mxu1  ;;  %v5466_v38 = vpop.f32.mrf.mxu0 }
 0x21e   : > { %v4945_v55 = vadd.f32 %v6856_v27, %v8671_v4 }
 0x21f   : > { %v5705_v0 = vsel %vm5641_vm3, %v5609_v43, %v5673_v34  ;;  %v4900_v59 = vpop.f32.mrf.mxu1  ;;  %v6891_v29 = vpop.f32.mrf.mxu0 }
 0x220   : > { %5737 = vst [vmem:[%s8717_s6 + $0xc8] sm:$0xff] %v5705_v0  ;;  %v5511_v63 = vadd.f32 %v6890_v11, %v4945_v55  ;;  %v4943_v5 = vadd.f32 %v4900_v59, %v8677_v10 }
 0x221   : > { %v6857_v26 = vpop.f32.mrf.mxu1  ;;  %v5469_v39 = vpop.f32.mrf.mxu0 }
 0x222   : > { %v5614_v49 = vadd.f32 %v8695_v53, %v5511_v63  ;;  %v5509_v17 = vadd.f32 %v5466_v38, %v4943_v5  ;;  %v4946_v42 = vadd.f32 %v6857_v26, %v8680_v18 }
 0x223   : > { %v4903_v56 = vpop.f32.mrf.mxu1 }
 0x224   : > { %vm5646_vm4 = vcmp.ge.f32.partialorder %v5614_v49, 0.0  ;;  %v5678_v4 = vmul.f32 0.01, %v5614_v49  ;;  %v5612_v9 = vadd.f32 %v8695_v53, %v5509_v17  ;;  %v5512_v20 = vadd.f32 %v6891_v29, %v4946_v42 }
 0x225   : > { %v4944_v28 = vadd.f32 %v4903_v56, %v8687_v60 }
 0x226   : > { %v5710_v10 = vsel %vm5646_vm4, %v5614_v49, %v5678_v4  ;;  %vm5644_vm5 = vcmp.ge.f32.partialorder %v5612_v9, 0.0  ;;  %v5676_v52 = vmul.f32 0.01, %v5612_v9  ;;  %v5615_v24 = vadd.f32 %v8695_v53, %v5512_v20 }
 0x227   : > { %5742 = vst [vmem:[%s8717_s6 + $0xf0] sm:$0xff] %v5710_v10  ;;  %v5510_v18 = vadd.f32 %v5469_v39, %v4944_v28 }
 0x228   : > { %v5708_v13 = vsel %vm5644_vm5, %v5612_v9, %v5676_v52  ;;  %vm5647_vm6 = vcmp.ge.f32.partialorder %v5615_v24, 0.0  ;;  %v5679_v12 = vmul.f32 0.01, %v5615_v24 }
 0x229   : > { %5740 = vst [vmem:[%s8717_s6 + $0xe0] sm:$0xff] %v5708_v13  ;;  %v5613_v60 = vadd.f32 %v8695_v53, %v5510_v18 }
 0x22a   : > { %v5711_v35 = vsel %vm5647_vm6, %v5615_v24, %v5679_v12 }
 0x22b   : > { %5743 = vst [vmem:[%s8717_s6 + $0xf8] sm:$0xff] %v5711_v35  ;;  %vm5645_vm7 = vcmp.ge.f32.partialorder %v5613_v60, 0.0  ;;  %v5677_v54 = vmul.f32 0.01, %v5613_v60 }
 0x22d   : > { %v5709_v30 = vsel %vm5645_vm7, %v5613_v60, %v5677_v54 }
 0x22e   : > { %5741 = vst [vmem:[%s8717_s6 + $0xe8] sm:$0xff] %v5709_v30 }
 0x22f   : > { %7007 = shalt.err (!%p7004_p3)
}
 0x230   : > { %s7008_s25 = scalar_lea.hbm %s8834_s11, 4096  ;;  %s7012_s28 = scalar_lea.hbm %s8884_s3, 8192 }
 0x231   : > { %p7009_p4 = scmp.ne.s32.totalorder %s8834_s11, %s7008_s25  ;;  %p7013_p9 = scmp.lt.s32.totalorder %s8834_s11, %s8884_s3 }
 0x232   : > { %p7014_p10 = scmp.lt.s32.totalorder %s7012_s28, %s7008_s25 }
 0x233   : > { %p7010_p7 = pnand %p7009_p4, %p7117_p5 }
 0x234   : > { %p7015_p11 = por %p7014_p10, %p7013_p9 }
 0x235   : > { %p7011_p8 = pneg %p7010_p7 }
 0x237   : > { %p7016_p12 = pnand %p7015_p11, %p7011_p8 }
 0x239   : > { %7019 = shalt.err (!%p7016_p12)
}
 0x23a   : > { %s7057_s4 = smov 128   ;;  %s7058_s5 = smov 8  }
 0x23b   : > { %6905 = dma.vmem_to_hbm [thread:$0]  (%p7117_p5), %s8836_s8, 4096, %s8834_s11, %s8841_s16, %s7057_s4, %s7057_s4, %s7058_s5  }
 0x23c PF: > { %p6911_p13 = scmp.ge.s32.totalorder %s7054_s15, 2  ;;  %s5773_s6 = sand.u32 1, %s7042_s12  }
 0x23d   : > { %s5774_s7 = scalar_lea.sflag [#allocation4], %s5773_s6 }
 0x23e   : > { %p6908_p0 = pnand %p6911_p13, %p7121_p6 }
 0x240   : > { %p6909_p1 = pneg %p6908_p0 }
 0x242   : > { %7037 = dma.done.wait (%p6909_p1), %s5774_s7, 4096  }
 0x243   : > { %7039 = vsyncadd (%p6909_p1), %s5774_s7, 4294963200  ;;  %p13_p2 = scmp.ge.s32.totalorder %s7104_s18, 4   ;;  %s8991_s12 = smov %s7046_s13 }
 0x244   : > { %s8992_s13 = smov %s7050_s14  ;;  %s8993_s14 = smov %s7115_s21 }
 0x245   : > { %s8994_s15 = smov %s7104_s18  ;;  %15 = sbr.rel (!%p13_p2) target bundleno = 3 (0x3), region = 77 }
 0x24a   :  { %5779 = vsyncpa [#allocation4], 1 }
 0x24b   :  { %5781 = vsyncpa [#allocation4 + $0x1], 1 }

</bundles_post_ra>
